<compile_context>
chip_gen: v7x
topology: tpu7x:2x2x1
jax: 0.10.0
libtpu: 0.0.40
codegen_flags: <defaults>
</compile_context>

<pallas_src>
import jax
import jax.numpy as jnp
from jax.experimental import pallas as pl
from jax.experimental.pallas import tpu as pltpu


# Flattened-spatial lengths.  Row stride is 28 for every buffer up to the
# max-pool; the pooled 12x12 image then lives at every-other column of the
# same flat layout, so block3/block4 use row stride 56 and column stride 2.
W0 = 28            # input width == row stride of all pre-pool buffers
S0 = 788           # padded input length      (>= L1 + 2*28 + 2)
L1 = 730           # block1 output length     (>= L2 + 2*28 + 2)
L2 = 672           # block2 / transition output length (>= LP + 1 + 28)
LP = 640           # 2x2-max buffer length    (>= L3 + 2*56 + 2*2)
L3 = 524           # block3 / block4 output length (>= 56*9 + 2*9 + 1)


# ---------------------------------------------------------------------------
# Fused Pallas kernel: one image per grid step
# ---------------------------------------------------------------------------

def _model2_kernel(x_ref, w1_ref, s1_ref, h1_ref, w2_ref, s2_ref, h2_ref,
                   wt_ref, bt_ref, w3_ref, s3_ref, h3_ref, w4_ref, b4_ref,
                   mask_ref, o_ref):

    def conv3x3(a, w_taps, out_len, row_step, col_step):
        # a: (Cin, S) flattened image; w_taps: (9, Cout, Cin) ref.
        # out[:, j] = sum_{di,dj} w[di,dj] @ a[:, j + di*row_step + dj*col_step]
        cin = w_taps.shape[2]
        acc = None
        for di in range(3):
            for dj in range(3):
                off = di * row_step + dj * col_step
                sl = a[:, off:off + out_len]                 # (Cin, out_len)
                tap = w_taps[di * 3 + dj]                    # (Cout, Cin)
                if cin == 1:                                 # outer product on VPU
                    part = tap * sl
                else:
                    part = jnp.dot(tap, sl, preferred_element_type=jnp.float32)
                acc = part if acc is None else acc + part
        return acc

    a0 = x_ref[...]                                                    # (1, S0)

    # block1: Conv2d(1,16,3) + BN(16) [+ Dropout=id] -> ReLU
    a1 = conv3x3(a0, w1_ref, L1, W0, 1)                                # (16, L1)
    a1 = jnp.maximum(a1 * s1_ref[...] + h1_ref[...], 0.0)

    # block2: Conv2d(16,8,3) + BN(8) [+ Dropout=id] -> ReLU
    a2 = conv3x3(a1, w2_ref, L2, W0, 1)                                # (8, L2)
    a2 = jnp.maximum(a2 * s2_ref[...] + h2_ref[...], 0.0)

    # transition: Conv2d(8,14,1) (bias, no ReLU)
    at = (jnp.dot(wt_ref[...], a2, preferred_element_type=jnp.float32)
          + bt_ref[...])                                               # (14, L2)

    # MaxPool2d(2,2): two lane-shifted maxes.  The pooled 12x12 image now sits
    # at flat index 2*hp*28 + 2*wp of m2 -- no compaction needed.
    mv = jnp.maximum(at[:, 0:LP + 1], at[:, W0:W0 + LP + 1])           # (14, LP+1)
    m2 = jnp.maximum(mv[:, 0:LP], mv[:, 1:LP + 1])                     # (14, LP)

    # block3: Conv2d(14,12,3) + BN(12) -> ReLU, directly on the strided layout.
    a3 = conv3x3(m2, w3_ref, L3, 2 * W0, 2)                            # (12, L3)
    a3 = jnp.maximum(a3 * s3_ref[...] + h3_ref[...], 0.0)

    # block4: Conv2d(12,10,1) -> ReLU -> AvgPool2d(10) -> log_softmax
    z = (jnp.dot(w4_ref[...], a3, preferred_element_type=jnp.float32)
         + b4_ref[...])
    z = jnp.maximum(z, 0.0)                                            # (10, L3)
    pooled = jnp.sum(z * mask_ref[...], axis=1, keepdims=True)         # (10, 1)
    mx = jnp.max(pooled, axis=0, keepdims=True)
    sh = pooled - mx
    lse = jnp.log(jnp.sum(jnp.exp(sh), axis=0, keepdims=True))
    o_ref[...] = sh - lse


# ---------------------------------------------------------------------------
# Wrapper: parameter packing + the single pallas_call
# ---------------------------------------------------------------------------

def _pack3x3(w):
    # PyTorch conv weight (Cout, Cin, 3, 3) -> (9, Cout, Cin), tap t = di*3+dj.
    cout, cin = w.shape[0], w.shape[1]
    return jnp.transpose(w, (2, 3, 0, 1)).reshape(9, cout, cin)


def _fold_bn(conv_bias, bn, eps=1e-5):
    scale = bn["gamma"] / jnp.sqrt(bn["var"] + eps)
    shift = (conv_bias - bn["mean"]) * scale + bn["beta"]
    return scale[:, None].astype(jnp.float32), shift[:, None].astype(jnp.float32)


def model2_forward(x_nchw, params):
    N = x_nchw.shape[0]
    assert x_nchw.shape[1:] == (1, 28, 28), x_nchw.shape

    x = x_nchw.reshape(N, 28 * 28).astype(jnp.float32)
    x = jnp.pad(x, ((0, 0), (0, S0 - 28 * 28))).reshape(N, 1, S0)

    w1 = _pack3x3(params["c1_w"]); s1, h1 = _fold_bn(params["c1_b"], params["bn1"])
    w2 = _pack3x3(params["c2_w"]); s2, h2 = _fold_bn(params["c2_b"], params["bn2"])
    wt = params["t1_w"][:, :, 0, 0]; bt = params["t1_b"][:, None]
    w3 = _pack3x3(params["c3_w"]); s3, h3 = _fold_bn(params["c3_b"], params["bn3"])
    w4 = params["c4_w"][:, :, 0, 0]; b4 = params["c4_b"][:, None]

    # AvgPool2d(10) mask over the strided block4 layout: valid columns are
    # j = 56*ho + 2*wo with ho, wo in [0, 10); fold the 1/100 mean into it.
    j = jnp.arange(L3)
    valid = (j % 2 == 0) & ((j // 2) % W0 < 10) & ((j // 2) // W0 < 10)
    mask = (valid.astype(jnp.float32) / 100.0)[None, :]                # (1, L3)

    def _full(shape):
        return pl.BlockSpec(shape, lambda n, _nd=len(shape): (0,) * _nd)

    out = pl.pallas_call(
        _model2_kernel,
        out_shape=jax.ShapeDtypeStruct((N, 10, 1), jnp.float32),
        grid=(N,),
        in_specs=[
            pl.BlockSpec((None, 1, S0), lambda n: (n, 0, 0)),
            _full((9, 16, 1)), _full((16, 1)), _full((16, 1)),
            _full((9, 8, 16)), _full((8, 1)), _full((8, 1)),
            _full((14, 8)), _full((14, 1)),
            _full((9, 12, 14)), _full((12, 1)), _full((12, 1)),
            _full((10, 12)), _full((10, 1)),
            _full((1, L3)),
        ],
        out_specs=pl.BlockSpec((None, 10, 1), lambda n: (n, 0, 0)),
        compiler_params=pltpu.CompilerParams(dimension_semantics=("parallel",)),
    )(x, w1, s1, h1, w2, s2, h2, wt, bt, w3, s3, h3, w4, b4, mask)
    return out.reshape(N, 10)


# ---------------------------------------------------------------------------
# Plain-XLA reference (same eval-mode semantics) for a numerical cross-check
# ---------------------------------------------------------------------------

def reference_forward(x_nchw, params, eps=1e-5):
    hi = jax.lax.Precision.HIGHEST
    x = jnp.transpose(x_nchw, (0, 2, 3, 1)).astype(jnp.float32)        # NHWC

    def conv(x, w, b):
        wt = jnp.transpose(w, (2, 3, 1, 0))                            # HWIO
        y = jax.lax.conv_general_dilated(
            x, wt, (1, 1), "VALID",
            dimension_numbers=("NHWC", "HWIO", "NHWC"), precision=hi)
        return y + b

    def bn(x, p):
        return (x - p["mean"]) / jnp.sqrt(p["var"] + eps) * p["gamma"] + p["beta"]

    x = jax.nn.relu(bn(conv(x, params["c1_w"], params["c1_b"]), params["bn1"]))
    x = jax.nn.relu(bn(conv(x, params["c2_w"], params["c2_b"]), params["bn2"]))
    x = conv(x, params["t1_w"], params["t1_b"])
    N, H, Wd, C = x.shape
    x = x.reshape(N, H // 2, 2, Wd // 2, 2, C).max(axis=(2, 4))        # MaxPool2d(2,2)
    x = jax.nn.relu(bn(conv(x, params["c3_w"], params["c3_b"]), params["bn3"]))
    x = jax.nn.relu(conv(x, params["c4_w"], params["c4_b"]))
    x = jnp.mean(x, axis=(1, 2))                                       # AvgPool2d(10)
    return jax.nn.log_softmax(x, axis=-1)


# ---------------------------------------------------------------------------
# Parameter init (eval-mode BN stats)
# ---------------------------------------------------------------------------

def init_params():
    key = jax.random.PRNGKey(42)
    ks = jax.random.split(key, 10)

    def cw(k, cout, cin, kh, kw):
        return 0.3 * jax.random.normal(k, (cout, cin, kh, kw), jnp.float32)

    def cb(k, cout):
        return 0.1 * jax.random.normal(k, (cout,), jnp.float32)

    params = {
        "c1_w": cw(ks[0], 16, 1, 3, 3), "c1_b": cb(ks[1], 16),
        "c2_w": cw(ks[2], 8, 16, 3, 3), "c2_b": cb(ks[3], 8),
        "t1_w": cw(ks[4], 14, 8, 1, 1), "t1_b": cb(ks[5], 14),
        "c3_w": cw(ks[6], 12, 14, 3, 3), "c3_b": cb(ks[7], 12),
        "c4_w": cw(ks[8], 10, 12, 1, 1), "c4_b": cb(ks[9], 10),
    }
    for name, c in (("bn1", 16), ("bn2", 8), ("bn3", 12)):
        params[name] = dict(
            gamma=jnp.ones((c,), jnp.float32), beta=jnp.zeros((c,), jnp.float32),
            mean=jnp.zeros((c,), jnp.float32), var=jnp.ones((c,), jnp.float32))
    return params


if __name__ == "__main__":
    params = init_params()
    key = jax.random.PRNGKey(0)
    # MNIST-style input implied by the architecture (AvgPool2d(10) needs 28x28).
    x = jax.random.normal(key, (2, 1, 28, 28), jnp.float32)            # NCHW

    fwd = jax.jit(lambda xx: model2_forward(xx, params))
    out = jax.block_until_ready(fwd(x))

    assert out.shape == (2, 10), out.shape
    # log-probabilities: each row must exponentiate-sum to 1
    assert bool(jnp.allclose(jnp.sum(jnp.exp(out), axis=1), 1.0, atol=1e-4))
    # cross-check against the plain-XLA reference of the same module
    ref = jax.block_until_ready(jax.jit(lambda xx: reference_forward(xx, params))(x))
    max_err = float(jnp.max(jnp.abs(out - ref)))
    assert max_err < 0.1, f"max |pallas - reference| = {max_err}"
    print("KERNEL_OK")
</pallas_src>

<mosaic_0001>
module attributes {stable_mosaic.version = 11 : i64} {
  func.func @_model2_kernel(%arg0: i32, %arg1: memref<1x1x788xf32, #tpu.memory_space<vmem>>, %arg2: memref<9x16x1xf32, #tpu.memory_space<vmem>>, %arg3: memref<16x1xf32, #tpu.memory_space<vmem>>, %arg4: memref<16x1xf32, #tpu.memory_space<vmem>>, %arg5: memref<9x8x16xf32, #tpu.memory_space<vmem>>, %arg6: memref<8x1xf32, #tpu.memory_space<vmem>>, %arg7: memref<8x1xf32, #tpu.memory_space<vmem>>, %arg8: memref<14x8xf32, #tpu.memory_space<vmem>>, %arg9: memref<14x1xf32, #tpu.memory_space<vmem>>, %arg10: memref<9x12x14xf32, #tpu.memory_space<vmem>>, %arg11: memref<12x1xf32, #tpu.memory_space<vmem>>, %arg12: memref<12x1xf32, #tpu.memory_space<vmem>>, %arg13: memref<10x12xf32, #tpu.memory_space<vmem>>, %arg14: memref<10x1xf32, #tpu.memory_space<vmem>>, %arg15: memref<1x524xf32, #tpu.memory_space<vmem>>, %arg16: memref<1x10x1xf32, #tpu.memory_space<vmem>>) attributes {dimension_semantics = [#tpu.dimension_semantics<parallel>], iteration_bounds = array<i64: 2>, scalar_prefetch = 0 : i64, scratch_operands = 0 : i64, tpu.core_type = #tpu.core_type<tc>, window_params = [{transform_indices = @transform_0, window_bounds = array<i64: 1, 1, 788>}, {pipeline_mode = #tpu.pipeline_mode<synchronous>, transform_indices = @transform_1, window_bounds = array<i64: 9, 16, 1>}, {pipeline_mode = #tpu.pipeline_mode<synchronous>, transform_indices = @transform_2, window_bounds = array<i64: 16, 1>}, {pipeline_mode = #tpu.pipeline_mode<synchronous>, transform_indices = @transform_3, window_bounds = array<i64: 16, 1>}, {pipeline_mode = #tpu.pipeline_mode<synchronous>, transform_indices = @transform_4, window_bounds = array<i64: 9, 8, 16>}, {pipeline_mode = #tpu.pipeline_mode<synchronous>, transform_indices = @transform_5, window_bounds = array<i64: 8, 1>}, {pipeline_mode = #tpu.pipeline_mode<synchronous>, transform_indices = @transform_6, window_bounds = array<i64: 8, 1>}, {pipeline_mode = #tpu.pipeline_mode<synchronous>, transform_indices = @transform_7, window_bounds = array<i64: 14, 8>}, {pipeline_mode = #tpu.pipeline_mode<synchronous>, transform_indices = @transform_8, window_bounds = array<i64: 14, 1>}, {pipeline_mode = #tpu.pipeline_mode<synchronous>, transform_indices = @transform_9, window_bounds = array<i64: 9, 12, 14>}, {pipeline_mode = #tpu.pipeline_mode<synchronous>, transform_indices = @transform_10, window_bounds = array<i64: 12, 1>}, {pipeline_mode = #tpu.pipeline_mode<synchronous>, transform_indices = @transform_11, window_bounds = array<i64: 12, 1>}, {pipeline_mode = #tpu.pipeline_mode<synchronous>, transform_indices = @transform_12, window_bounds = array<i64: 10, 12>}, {pipeline_mode = #tpu.pipeline_mode<synchronous>, transform_indices = @transform_13, window_bounds = array<i64: 10, 1>}, {pipeline_mode = #tpu.pipeline_mode<synchronous>, transform_indices = @transform_14, window_bounds = array<i64: 1, 524>}, {transform_indices = @transform_15, window_bounds = array<i64: 1, 10, 1>}]} {
    %c0 = arith.constant 0 : index
    %c0_0 = arith.constant 0 : index
    %c0_1 = arith.constant 0 : index
    %0 = vector.load %arg1[%c0, %c0_0, %c0_1] : memref<1x1x788xf32, #tpu.memory_space<vmem>>, vector<1x1x788xf32>
    %1 = vector.shape_cast %0 : vector<1x1x788xf32> to vector<1x788xf32>
    %2 = vector.extract_strided_slice %1 {offsets = [0, 0], sizes = [1, 730], strides = [1, 1]} : vector<1x788xf32> to vector<1x730xf32>
    %c0_2 = arith.constant 0 : index
    %c0_3 = arith.constant 0 : index
    %c0_4 = arith.constant 0 : index
    %3 = vector.load %arg2[%c0_2, %c0_3, %c0_4] : memref<9x16x1xf32, #tpu.memory_space<vmem>>, vector<1x16x1xf32>
    %4 = vector.shape_cast %3 : vector<1x16x1xf32> to vector<16x1xf32>
    %5 = vector.broadcast %4 : vector<16x1xf32> to vector<16x730xf32>
    %6 = vector.broadcast %2 : vector<1x730xf32> to vector<16x730xf32>
    %7 = arith.mulf %5, %6 : vector<16x730xf32>
    %8 = vector.extract_strided_slice %1 {offsets = [0, 1], sizes = [1, 730], strides = [1, 1]} : vector<1x788xf32> to vector<1x730xf32>
    %c1 = arith.constant 1 : index
    %c0_5 = arith.constant 0 : index
    %c0_6 = arith.constant 0 : index
    %9 = vector.load %arg2[%c1, %c0_5, %c0_6] : memref<9x16x1xf32, #tpu.memory_space<vmem>>, vector<1x16x1xf32>
    %10 = vector.shape_cast %9 : vector<1x16x1xf32> to vector<16x1xf32>
    %11 = vector.broadcast %10 : vector<16x1xf32> to vector<16x730xf32>
    %12 = vector.broadcast %8 : vector<1x730xf32> to vector<16x730xf32>
    %13 = arith.mulf %11, %12 : vector<16x730xf32>
    %14 = arith.addf %7, %13 : vector<16x730xf32>
    %15 = vector.extract_strided_slice %1 {offsets = [0, 2], sizes = [1, 730], strides = [1, 1]} : vector<1x788xf32> to vector<1x730xf32>
    %c2 = arith.constant 2 : index
    %c0_7 = arith.constant 0 : index
    %c0_8 = arith.constant 0 : index
    %16 = vector.load %arg2[%c2, %c0_7, %c0_8] : memref<9x16x1xf32, #tpu.memory_space<vmem>>, vector<1x16x1xf32>
    %17 = vector.shape_cast %16 : vector<1x16x1xf32> to vector<16x1xf32>
    %18 = vector.broadcast %17 : vector<16x1xf32> to vector<16x730xf32>
    %19 = vector.broadcast %15 : vector<1x730xf32> to vector<16x730xf32>
    %20 = arith.mulf %18, %19 : vector<16x730xf32>
    %21 = arith.addf %14, %20 : vector<16x730xf32>
    %22 = vector.extract_strided_slice %1 {offsets = [0, 28], sizes = [1, 730], strides = [1, 1]} : vector<1x788xf32> to vector<1x730xf32>
    %c3 = arith.constant 3 : index
    %c0_9 = arith.constant 0 : index
    %c0_10 = arith.constant 0 : index
    %23 = vector.load %arg2[%c3, %c0_9, %c0_10] : memref<9x16x1xf32, #tpu.memory_space<vmem>>, vector<1x16x1xf32>
    %24 = vector.shape_cast %23 : vector<1x16x1xf32> to vector<16x1xf32>
    %25 = vector.broadcast %24 : vector<16x1xf32> to vector<16x730xf32>
    %26 = vector.broadcast %22 : vector<1x730xf32> to vector<16x730xf32>
    %27 = arith.mulf %25, %26 : vector<16x730xf32>
    %28 = arith.addf %21, %27 : vector<16x730xf32>
    %29 = vector.extract_strided_slice %1 {offsets = [0, 29], sizes = [1, 730], strides = [1, 1]} : vector<1x788xf32> to vector<1x730xf32>
    %c4 = arith.constant 4 : index
    %c0_11 = arith.constant 0 : index
    %c0_12 = arith.constant 0 : index
    %30 = vector.load %arg2[%c4, %c0_11, %c0_12] : memref<9x16x1xf32, #tpu.memory_space<vmem>>, vector<1x16x1xf32>
    %31 = vector.shape_cast %30 : vector<1x16x1xf32> to vector<16x1xf32>
    %32 = vector.broadcast %31 : vector<16x1xf32> to vector<16x730xf32>
    %33 = vector.broadcast %29 : vector<1x730xf32> to vector<16x730xf32>
    %34 = arith.mulf %32, %33 : vector<16x730xf32>
    %35 = arith.addf %28, %34 : vector<16x730xf32>
    %36 = vector.extract_strided_slice %1 {offsets = [0, 30], sizes = [1, 730], strides = [1, 1]} : vector<1x788xf32> to vector<1x730xf32>
    %c5 = arith.constant 5 : index
    %c0_13 = arith.constant 0 : index
    %c0_14 = arith.constant 0 : index
    %37 = vector.load %arg2[%c5, %c0_13, %c0_14] : memref<9x16x1xf32, #tpu.memory_space<vmem>>, vector<1x16x1xf32>
    %38 = vector.shape_cast %37 : vector<1x16x1xf32> to vector<16x1xf32>
    %39 = vector.broadcast %38 : vector<16x1xf32> to vector<16x730xf32>
    %40 = vector.broadcast %36 : vector<1x730xf32> to vector<16x730xf32>
    %41 = arith.mulf %39, %40 : vector<16x730xf32>
    %42 = arith.addf %35, %41 : vector<16x730xf32>
    %43 = vector.extract_strided_slice %1 {offsets = [0, 56], sizes = [1, 730], strides = [1, 1]} : vector<1x788xf32> to vector<1x730xf32>
    %c6 = arith.constant 6 : index
    %c0_15 = arith.constant 0 : index
    %c0_16 = arith.constant 0 : index
    %44 = vector.load %arg2[%c6, %c0_15, %c0_16] : memref<9x16x1xf32, #tpu.memory_space<vmem>>, vector<1x16x1xf32>
    %45 = vector.shape_cast %44 : vector<1x16x1xf32> to vector<16x1xf32>
    %46 = vector.broadcast %45 : vector<16x1xf32> to vector<16x730xf32>
    %47 = vector.broadcast %43 : vector<1x730xf32> to vector<16x730xf32>
    %48 = arith.mulf %46, %47 : vector<16x730xf32>
    %49 = arith.addf %42, %48 : vector<16x730xf32>
    %50 = vector.extract_strided_slice %1 {offsets = [0, 57], sizes = [1, 730], strides = [1, 1]} : vector<1x788xf32> to vector<1x730xf32>
    %c7 = arith.constant 7 : index
    %c0_17 = arith.constant 0 : index
    %c0_18 = arith.constant 0 : index
    %51 = vector.load %arg2[%c7, %c0_17, %c0_18] : memref<9x16x1xf32, #tpu.memory_space<vmem>>, vector<1x16x1xf32>
    %52 = vector.shape_cast %51 : vector<1x16x1xf32> to vector<16x1xf32>
    %53 = vector.broadcast %52 : vector<16x1xf32> to vector<16x730xf32>
    %54 = vector.broadcast %50 : vector<1x730xf32> to vector<16x730xf32>
    %55 = arith.mulf %53, %54 : vector<16x730xf32>
    %56 = arith.addf %49, %55 : vector<16x730xf32>
    %57 = vector.extract_strided_slice %1 {offsets = [0, 58], sizes = [1, 730], strides = [1, 1]} : vector<1x788xf32> to vector<1x730xf32>
    %c8 = arith.constant 8 : index
    %c0_19 = arith.constant 0 : index
    %c0_20 = arith.constant 0 : index
    %58 = vector.load %arg2[%c8, %c0_19, %c0_20] : memref<9x16x1xf32, #tpu.memory_space<vmem>>, vector<1x16x1xf32>
    %59 = vector.shape_cast %58 : vector<1x16x1xf32> to vector<16x1xf32>
    %60 = vector.broadcast %59 : vector<16x1xf32> to vector<16x730xf32>
    %61 = vector.broadcast %57 : vector<1x730xf32> to vector<16x730xf32>
    %62 = arith.mulf %60, %61 : vector<16x730xf32>
    %63 = arith.addf %56, %62 : vector<16x730xf32>
    %c0_21 = arith.constant 0 : index
    %c0_22 = arith.constant 0 : index
    %64 = vector.load %arg3[%c0_21, %c0_22] : memref<16x1xf32, #tpu.memory_space<vmem>>, vector<16x1xf32>
    %65 = vector.broadcast %64 : vector<16x1xf32> to vector<16x730xf32>
    %66 = arith.mulf %63, %65 : vector<16x730xf32>
    %c0_23 = arith.constant 0 : index
    %c0_24 = arith.constant 0 : index
    %67 = vector.load %arg4[%c0_23, %c0_24] : memref<16x1xf32, #tpu.memory_space<vmem>>, vector<16x1xf32>
    %68 = vector.broadcast %67 : vector<16x1xf32> to vector<16x730xf32>
    %69 = arith.addf %66, %68 : vector<16x730xf32>
    %cst = arith.constant 0.000000e+00 : f32
    %70 = vector.broadcast %cst : f32 to vector<16x730xf32>
    %71 = arith.maximumf %69, %70 : vector<16x730xf32>
    %72 = vector.extract_strided_slice %71 {offsets = [0, 0], sizes = [16, 672], strides = [1, 1]} : vector<16x730xf32> to vector<16x672xf32>
    %c0_25 = arith.constant 0 : index
    %c0_26 = arith.constant 0 : index
    %c0_27 = arith.constant 0 : index
    %73 = vector.load %arg5[%c0_25, %c0_26, %c0_27] : memref<9x8x16xf32, #tpu.memory_space<vmem>>, vector<1x8x16xf32>
    %74 = vector.shape_cast %73 : vector<1x8x16xf32> to vector<8x16xf32>
    %cst_28 = arith.constant dense<0.000000e+00> : vector<8x672xf32>
    %75 = tpu.matmul %74, %72, %cst_28 {dimension_numbers = #tpu.dot_dimension_numbers<[1], [0], [0], [1], [0, 0, 1, 1], [], []>} : vector<8x16xf32>, vector<16x672xf32>, vector<8x672xf32> -> vector<8x672xf32>
    %76 = vector.extract_strided_slice %71 {offsets = [0, 1], sizes = [16, 672], strides = [1, 1]} : vector<16x730xf32> to vector<16x672xf32>
    %c1_29 = arith.constant 1 : index
    %c0_30 = arith.constant 0 : index
    %c0_31 = arith.constant 0 : index
    %77 = vector.load %arg5[%c1_29, %c0_30, %c0_31] : memref<9x8x16xf32, #tpu.memory_space<vmem>>, vector<1x8x16xf32>
    %78 = vector.shape_cast %77 : vector<1x8x16xf32> to vector<8x16xf32>
    %cst_32 = arith.constant dense<0.000000e+00> : vector<8x672xf32>
    %79 = tpu.matmul %78, %76, %cst_32 {dimension_numbers = #tpu.dot_dimension_numbers<[1], [0], [0], [1], [0, 0, 1, 1], [], []>} : vector<8x16xf32>, vector<16x672xf32>, vector<8x672xf32> -> vector<8x672xf32>
    %80 = arith.addf %75, %79 : vector<8x672xf32>
    %81 = vector.extract_strided_slice %71 {offsets = [0, 2], sizes = [16, 672], strides = [1, 1]} : vector<16x730xf32> to vector<16x672xf32>
    %c2_33 = arith.constant 2 : index
    %c0_34 = arith.constant 0 : index
    %c0_35 = arith.constant 0 : index
    %82 = vector.load %arg5[%c2_33, %c0_34, %c0_35] : memref<9x8x16xf32, #tpu.memory_space<vmem>>, vector<1x8x16xf32>
    %83 = vector.shape_cast %82 : vector<1x8x16xf32> to vector<8x16xf32>
    %cst_36 = arith.constant dense<0.000000e+00> : vector<8x672xf32>
    %84 = tpu.matmul %83, %81, %cst_36 {dimension_numbers = #tpu.dot_dimension_numbers<[1], [0], [0], [1], [0, 0, 1, 1], [], []>} : vector<8x16xf32>, vector<16x672xf32>, vector<8x672xf32> -> vector<8x672xf32>
    %85 = arith.addf %80, %84 : vector<8x672xf32>
    %86 = vector.extract_strided_slice %71 {offsets = [0, 28], sizes = [16, 672], strides = [1, 1]} : vector<16x730xf32> to vector<16x672xf32>
    %c3_37 = arith.constant 3 : index
    %c0_38 = arith.constant 0 : index
    %c0_39 = arith.constant 0 : index
    %87 = vector.load %arg5[%c3_37, %c0_38, %c0_39] : memref<9x8x16xf32, #tpu.memory_space<vmem>>, vector<1x8x16xf32>
    %88 = vector.shape_cast %87 : vector<1x8x16xf32> to vector<8x16xf32>
    %cst_40 = arith.constant dense<0.000000e+00> : vector<8x672xf32>
    %89 = tpu.matmul %88, %86, %cst_40 {dimension_numbers = #tpu.dot_dimension_numbers<[1], [0], [0], [1], [0, 0, 1, 1], [], []>} : vector<8x16xf32>, vector<16x672xf32>, vector<8x672xf32> -> vector<8x672xf32>
    %90 = arith.addf %85, %89 : vector<8x672xf32>
    %91 = vector.extract_strided_slice %71 {offsets = [0, 29], sizes = [16, 672], strides = [1, 1]} : vector<16x730xf32> to vector<16x672xf32>
    %c4_41 = arith.constant 4 : index
    %c0_42 = arith.constant 0 : index
    %c0_43 = arith.constant 0 : index
    %92 = vector.load %arg5[%c4_41, %c0_42, %c0_43] : memref<9x8x16xf32, #tpu.memory_space<vmem>>, vector<1x8x16xf32>
    %93 = vector.shape_cast %92 : vector<1x8x16xf32> to vector<8x16xf32>
    %cst_44 = arith.constant dense<0.000000e+00> : vector<8x672xf32>
    %94 = tpu.matmul %93, %91, %cst_44 {dimension_numbers = #tpu.dot_dimension_numbers<[1], [0], [0], [1], [0, 0, 1, 1], [], []>} : vector<8x16xf32>, vector<16x672xf32>, vector<8x672xf32> -> vector<8x672xf32>
    %95 = arith.addf %90, %94 : vector<8x672xf32>
    %96 = vector.extract_strided_slice %71 {offsets = [0, 30], sizes = [16, 672], strides = [1, 1]} : vector<16x730xf32> to vector<16x672xf32>
    %c5_45 = arith.constant 5 : index
    %c0_46 = arith.constant 0 : index
    %c0_47 = arith.constant 0 : index
    %97 = vector.load %arg5[%c5_45, %c0_46, %c0_47] : memref<9x8x16xf32, #tpu.memory_space<vmem>>, vector<1x8x16xf32>
    %98 = vector.shape_cast %97 : vector<1x8x16xf32> to vector<8x16xf32>
    %cst_48 = arith.constant dense<0.000000e+00> : vector<8x672xf32>
    %99 = tpu.matmul %98, %96, %cst_48 {dimension_numbers = #tpu.dot_dimension_numbers<[1], [0], [0], [1], [0, 0, 1, 1], [], []>} : vector<8x16xf32>, vector<16x672xf32>, vector<8x672xf32> -> vector<8x672xf32>
    %100 = arith.addf %95, %99 : vector<8x672xf32>
    %101 = vector.extract_strided_slice %71 {offsets = [0, 56], sizes = [16, 672], strides = [1, 1]} : vector<16x730xf32> to vector<16x672xf32>
    %c6_49 = arith.constant 6 : index
    %c0_50 = arith.constant 0 : index
    %c0_51 = arith.constant 0 : index
    %102 = vector.load %arg5[%c6_49, %c0_50, %c0_51] : memref<9x8x16xf32, #tpu.memory_space<vmem>>, vector<1x8x16xf32>
    %103 = vector.shape_cast %102 : vector<1x8x16xf32> to vector<8x16xf32>
    %cst_52 = arith.constant dense<0.000000e+00> : vector<8x672xf32>
    %104 = tpu.matmul %103, %101, %cst_52 {dimension_numbers = #tpu.dot_dimension_numbers<[1], [0], [0], [1], [0, 0, 1, 1], [], []>} : vector<8x16xf32>, vector<16x672xf32>, vector<8x672xf32> -> vector<8x672xf32>
    %105 = arith.addf %100, %104 : vector<8x672xf32>
    %106 = vector.extract_strided_slice %71 {offsets = [0, 57], sizes = [16, 672], strides = [1, 1]} : vector<16x730xf32> to vector<16x672xf32>
    %c7_53 = arith.constant 7 : index
    %c0_54 = arith.constant 0 : index
    %c0_55 = arith.constant 0 : index
    %107 = vector.load %arg5[%c7_53, %c0_54, %c0_55] : memref<9x8x16xf32, #tpu.memory_space<vmem>>, vector<1x8x16xf32>
    %108 = vector.shape_cast %107 : vector<1x8x16xf32> to vector<8x16xf32>
    %cst_56 = arith.constant dense<0.000000e+00> : vector<8x672xf32>
    %109 = tpu.matmul %108, %106, %cst_56 {dimension_numbers = #tpu.dot_dimension_numbers<[1], [0], [0], [1], [0, 0, 1, 1], [], []>} : vector<8x16xf32>, vector<16x672xf32>, vector<8x672xf32> -> vector<8x672xf32>
    %110 = arith.addf %105, %109 : vector<8x672xf32>
    %111 = vector.extract_strided_slice %71 {offsets = [0, 58], sizes = [16, 672], strides = [1, 1]} : vector<16x730xf32> to vector<16x672xf32>
    %c8_57 = arith.constant 8 : index
    %c0_58 = arith.constant 0 : index
    %c0_59 = arith.constant 0 : index
    %112 = vector.load %arg5[%c8_57, %c0_58, %c0_59] : memref<9x8x16xf32, #tpu.memory_space<vmem>>, vector<1x8x16xf32>
    %113 = vector.shape_cast %112 : vector<1x8x16xf32> to vector<8x16xf32>
    %cst_60 = arith.constant dense<0.000000e+00> : vector<8x672xf32>
    %114 = tpu.matmul %113, %111, %cst_60 {dimension_numbers = #tpu.dot_dimension_numbers<[1], [0], [0], [1], [0, 0, 1, 1], [], []>} : vector<8x16xf32>, vector<16x672xf32>, vector<8x672xf32> -> vector<8x672xf32>
    %115 = arith.addf %110, %114 : vector<8x672xf32>
    %c0_61 = arith.constant 0 : index
    %c0_62 = arith.constant 0 : index
    %116 = vector.load %arg6[%c0_61, %c0_62] : memref<8x1xf32, #tpu.memory_space<vmem>>, vector<8x1xf32>
    %117 = vector.broadcast %116 : vector<8x1xf32> to vector<8x672xf32>
    %118 = arith.mulf %115, %117 : vector<8x672xf32>
    %c0_63 = arith.constant 0 : index
    %c0_64 = arith.constant 0 : index
    %119 = vector.load %arg7[%c0_63, %c0_64] : memref<8x1xf32, #tpu.memory_space<vmem>>, vector<8x1xf32>
    %120 = vector.broadcast %119 : vector<8x1xf32> to vector<8x672xf32>
    %121 = arith.addf %118, %120 : vector<8x672xf32>
    %cst_65 = arith.constant 0.000000e+00 : f32
    %122 = vector.broadcast %cst_65 : f32 to vector<8x672xf32>
    %123 = arith.maximumf %121, %122 : vector<8x672xf32>
    %c0_66 = arith.constant 0 : index
    %c0_67 = arith.constant 0 : index
    %124 = vector.load %arg8[%c0_66, %c0_67] : memref<14x8xf32, #tpu.memory_space<vmem>>, vector<14x8xf32>
    %cst_68 = arith.constant dense<0.000000e+00> : vector<14x672xf32>
    %125 = tpu.matmul %124, %123, %cst_68 {dimension_numbers = #tpu.dot_dimension_numbers<[1], [0], [0], [1], [0, 0, 1, 1], [], []>} : vector<14x8xf32>, vector<8x672xf32>, vector<14x672xf32> -> vector<14x672xf32>
    %c0_69 = arith.constant 0 : index
    %c0_70 = arith.constant 0 : index
    %126 = vector.load %arg9[%c0_69, %c0_70] : memref<14x1xf32, #tpu.memory_space<vmem>>, vector<14x1xf32>
    %127 = vector.broadcast %126 : vector<14x1xf32> to vector<14x672xf32>
    %128 = arith.addf %125, %127 : vector<14x672xf32>
    %129 = vector.extract_strided_slice %128 {offsets = [0, 0], sizes = [14, 641], strides = [1, 1]} : vector<14x672xf32> to vector<14x641xf32>
    %130 = vector.extract_strided_slice %128 {offsets = [0, 28], sizes = [14, 641], strides = [1, 1]} : vector<14x672xf32> to vector<14x641xf32>
    %131 = arith.maximumf %129, %130 : vector<14x641xf32>
    %132 = vector.extract_strided_slice %131 {offsets = [0, 0], sizes = [14, 640], strides = [1, 1]} : vector<14x641xf32> to vector<14x640xf32>
    %133 = vector.extract_strided_slice %131 {offsets = [0, 1], sizes = [14, 640], strides = [1, 1]} : vector<14x641xf32> to vector<14x640xf32>
    %134 = arith.maximumf %132, %133 : vector<14x640xf32>
    %135 = vector.extract_strided_slice %134 {offsets = [0, 0], sizes = [14, 524], strides = [1, 1]} : vector<14x640xf32> to vector<14x524xf32>
    %c0_71 = arith.constant 0 : index
    %c0_72 = arith.constant 0 : index
    %c0_73 = arith.constant 0 : index
    %136 = vector.load %arg10[%c0_71, %c0_72, %c0_73] : memref<9x12x14xf32, #tpu.memory_space<vmem>>, vector<1x12x14xf32>
    %137 = vector.shape_cast %136 : vector<1x12x14xf32> to vector<12x14xf32>
    %cst_74 = arith.constant dense<0.000000e+00> : vector<12x524xf32>
    %138 = tpu.matmul %137, %135, %cst_74 {dimension_numbers = #tpu.dot_dimension_numbers<[1], [0], [0], [1], [0, 0, 1, 1], [], []>} : vector<12x14xf32>, vector<14x524xf32>, vector<12x524xf32> -> vector<12x524xf32>
    %139 = vector.extract_strided_slice %134 {offsets = [0, 2], sizes = [14, 524], strides = [1, 1]} : vector<14x640xf32> to vector<14x524xf32>
    %c1_75 = arith.constant 1 : index
    %c0_76 = arith.constant 0 : index
    %c0_77 = arith.constant 0 : index
    %140 = vector.load %arg10[%c1_75, %c0_76, %c0_77] : memref<9x12x14xf32, #tpu.memory_space<vmem>>, vector<1x12x14xf32>
    %141 = vector.shape_cast %140 : vector<1x12x14xf32> to vector<12x14xf32>
    %cst_78 = arith.constant dense<0.000000e+00> : vector<12x524xf32>
    %142 = tpu.matmul %141, %139, %cst_78 {dimension_numbers = #tpu.dot_dimension_numbers<[1], [0], [0], [1], [0, 0, 1, 1], [], []>} : vector<12x14xf32>, vector<14x524xf32>, vector<12x524xf32> -> vector<12x524xf32>
    %143 = arith.addf %138, %142 : vector<12x524xf32>
    %144 = vector.extract_strided_slice %134 {offsets = [0, 4], sizes = [14, 524], strides = [1, 1]} : vector<14x640xf32> to vector<14x524xf32>
    %c2_79 = arith.constant 2 : index
    %c0_80 = arith.constant 0 : index
    %c0_81 = arith.constant 0 : index
    %145 = vector.load %arg10[%c2_79, %c0_80, %c0_81] : memref<9x12x14xf32, #tpu.memory_space<vmem>>, vector<1x12x14xf32>
    %146 = vector.shape_cast %145 : vector<1x12x14xf32> to vector<12x14xf32>
    %cst_82 = arith.constant dense<0.000000e+00> : vector<12x524xf32>
    %147 = tpu.matmul %146, %144, %cst_82 {dimension_numbers = #tpu.dot_dimension_numbers<[1], [0], [0], [1], [0, 0, 1, 1], [], []>} : vector<12x14xf32>, vector<14x524xf32>, vector<12x524xf32> -> vector<12x524xf32>
    %148 = arith.addf %143, %147 : vector<12x524xf32>
    %149 = vector.extract_strided_slice %134 {offsets = [0, 56], sizes = [14, 524], strides = [1, 1]} : vector<14x640xf32> to vector<14x524xf32>
    %c3_83 = arith.constant 3 : index
    %c0_84 = arith.constant 0 : index
    %c0_85 = arith.constant 0 : index
    %150 = vector.load %arg10[%c3_83, %c0_84, %c0_85] : memref<9x12x14xf32, #tpu.memory_space<vmem>>, vector<1x12x14xf32>
    %151 = vector.shape_cast %150 : vector<1x12x14xf32> to vector<12x14xf32>
    %cst_86 = arith.constant dense<0.000000e+00> : vector<12x524xf32>
    %152 = tpu.matmul %151, %149, %cst_86 {dimension_numbers = #tpu.dot_dimension_numbers<[1], [0], [0], [1], [0, 0, 1, 1], [], []>} : vector<12x14xf32>, vector<14x524xf32>, vector<12x524xf32> -> vector<12x524xf32>
    %153 = arith.addf %148, %152 : vector<12x524xf32>
    %154 = vector.extract_strided_slice %134 {offsets = [0, 58], sizes = [14, 524], strides = [1, 1]} : vector<14x640xf32> to vector<14x524xf32>
    %c4_87 = arith.constant 4 : index
    %c0_88 = arith.constant 0 : index
    %c0_89 = arith.constant 0 : index
    %155 = vector.load %arg10[%c4_87, %c0_88, %c0_89] : memref<9x12x14xf32, #tpu.memory_space<vmem>>, vector<1x12x14xf32>
    %156 = vector.shape_cast %155 : vector<1x12x14xf32> to vector<12x14xf32>
    %cst_90 = arith.constant dense<0.000000e+00> : vector<12x524xf32>
    %157 = tpu.matmul %156, %154, %cst_90 {dimension_numbers = #tpu.dot_dimension_numbers<[1], [0], [0], [1], [0, 0, 1, 1], [], []>} : vector<12x14xf32>, vector<14x524xf32>, vector<12x524xf32> -> vector<12x524xf32>
    %158 = arith.addf %153, %157 : vector<12x524xf32>
    %159 = vector.extract_strided_slice %134 {offsets = [0, 60], sizes = [14, 524], strides = [1, 1]} : vector<14x640xf32> to vector<14x524xf32>
    %c5_91 = arith.constant 5 : index
    %c0_92 = arith.constant 0 : index
    %c0_93 = arith.constant 0 : index
    %160 = vector.load %arg10[%c5_91, %c0_92, %c0_93] : memref<9x12x14xf32, #tpu.memory_space<vmem>>, vector<1x12x14xf32>
    %161 = vector.shape_cast %160 : vector<1x12x14xf32> to vector<12x14xf32>
    %cst_94 = arith.constant dense<0.000000e+00> : vector<12x524xf32>
    %162 = tpu.matmul %161, %159, %cst_94 {dimension_numbers = #tpu.dot_dimension_numbers<[1], [0], [0], [1], [0, 0, 1, 1], [], []>} : vector<12x14xf32>, vector<14x524xf32>, vector<12x524xf32> -> vector<12x524xf32>
    %163 = arith.addf %158, %162 : vector<12x524xf32>
    %164 = vector.extract_strided_slice %134 {offsets = [0, 112], sizes = [14, 524], strides = [1, 1]} : vector<14x640xf32> to vector<14x524xf32>
    %c6_95 = arith.constant 6 : index
    %c0_96 = arith.constant 0 : index
    %c0_97 = arith.constant 0 : index
    %165 = vector.load %arg10[%c6_95, %c0_96, %c0_97] : memref<9x12x14xf32, #tpu.memory_space<vmem>>, vector<1x12x14xf32>
    %166 = vector.shape_cast %165 : vector<1x12x14xf32> to vector<12x14xf32>
    %cst_98 = arith.constant dense<0.000000e+00> : vector<12x524xf32>
    %167 = tpu.matmul %166, %164, %cst_98 {dimension_numbers = #tpu.dot_dimension_numbers<[1], [0], [0], [1], [0, 0, 1, 1], [], []>} : vector<12x14xf32>, vector<14x524xf32>, vector<12x524xf32> -> vector<12x524xf32>
    %168 = arith.addf %163, %167 : vector<12x524xf32>
    %169 = vector.extract_strided_slice %134 {offsets = [0, 114], sizes = [14, 524], strides = [1, 1]} : vector<14x640xf32> to vector<14x524xf32>
    %c7_99 = arith.constant 7 : index
    %c0_100 = arith.constant 0 : index
    %c0_101 = arith.constant 0 : index
    %170 = vector.load %arg10[%c7_99, %c0_100, %c0_101] : memref<9x12x14xf32, #tpu.memory_space<vmem>>, vector<1x12x14xf32>
    %171 = vector.shape_cast %170 : vector<1x12x14xf32> to vector<12x14xf32>
    %cst_102 = arith.constant dense<0.000000e+00> : vector<12x524xf32>
    %172 = tpu.matmul %171, %169, %cst_102 {dimension_numbers = #tpu.dot_dimension_numbers<[1], [0], [0], [1], [0, 0, 1, 1], [], []>} : vector<12x14xf32>, vector<14x524xf32>, vector<12x524xf32> -> vector<12x524xf32>
    %173 = arith.addf %168, %172 : vector<12x524xf32>
    %174 = vector.extract_strided_slice %134 {offsets = [0, 116], sizes = [14, 524], strides = [1, 1]} : vector<14x640xf32> to vector<14x524xf32>
    %c8_103 = arith.constant 8 : index
    %c0_104 = arith.constant 0 : index
    %c0_105 = arith.constant 0 : index
    %175 = vector.load %arg10[%c8_103, %c0_104, %c0_105] : memref<9x12x14xf32, #tpu.memory_space<vmem>>, vector<1x12x14xf32>
    %176 = vector.shape_cast %175 : vector<1x12x14xf32> to vector<12x14xf32>
    %cst_106 = arith.constant dense<0.000000e+00> : vector<12x524xf32>
    %177 = tpu.matmul %176, %174, %cst_106 {dimension_numbers = #tpu.dot_dimension_numbers<[1], [0], [0], [1], [0, 0, 1, 1], [], []>} : vector<12x14xf32>, vector<14x524xf32>, vector<12x524xf32> -> vector<12x524xf32>
    %178 = arith.addf %173, %177 : vector<12x524xf32>
    %c0_107 = arith.constant 0 : index
    %c0_108 = arith.constant 0 : index
    %179 = vector.load %arg11[%c0_107, %c0_108] : memref<12x1xf32, #tpu.memory_space<vmem>>, vector<12x1xf32>
    %180 = vector.broadcast %179 : vector<12x1xf32> to vector<12x524xf32>
    %181 = arith.mulf %178, %180 : vector<12x524xf32>
    %c0_109 = arith.constant 0 : index
    %c0_110 = arith.constant 0 : index
    %182 = vector.load %arg12[%c0_109, %c0_110] : memref<12x1xf32, #tpu.memory_space<vmem>>, vector<12x1xf32>
    %183 = vector.broadcast %182 : vector<12x1xf32> to vector<12x524xf32>
    %184 = arith.addf %181, %183 : vector<12x524xf32>
    %cst_111 = arith.constant 0.000000e+00 : f32
    %185 = vector.broadcast %cst_111 : f32 to vector<12x524xf32>
    %186 = arith.maximumf %184, %185 : vector<12x524xf32>
    %c0_112 = arith.constant 0 : index
    %c0_113 = arith.constant 0 : index
    %187 = vector.load %arg13[%c0_112, %c0_113] : memref<10x12xf32, #tpu.memory_space<vmem>>, vector<10x12xf32>
    %cst_114 = arith.constant dense<0.000000e+00> : vector<10x524xf32>
    %188 = tpu.matmul %187, %186, %cst_114 {dimension_numbers = #tpu.dot_dimension_numbers<[1], [0], [0], [1], [0, 0, 1, 1], [], []>} : vector<10x12xf32>, vector<12x524xf32>, vector<10x524xf32> -> vector<10x524xf32>
    %c0_115 = arith.constant 0 : index
    %c0_116 = arith.constant 0 : index
    %189 = vector.load %arg14[%c0_115, %c0_116] : memref<10x1xf32, #tpu.memory_space<vmem>>, vector<10x1xf32>
    %190 = vector.broadcast %189 : vector<10x1xf32> to vector<10x524xf32>
    %191 = arith.addf %188, %190 : vector<10x524xf32>
    %cst_117 = arith.constant 0.000000e+00 : f32
    %192 = vector.broadcast %cst_117 : f32 to vector<10x524xf32>
    %193 = arith.maximumf %191, %192 : vector<10x524xf32>
    %c0_118 = arith.constant 0 : index
    %c0_119 = arith.constant 0 : index
    %194 = vector.load %arg15[%c0_118, %c0_119] : memref<1x524xf32, #tpu.memory_space<vmem>>, vector<1x524xf32>
    %195 = vector.broadcast %194 : vector<1x524xf32> to vector<10x524xf32>
    %196 = arith.mulf %193, %195 : vector<10x524xf32>
    %cst_120 = arith.constant dense<0.000000e+00> : vector<10xf32>
    %197 = vector.multi_reduction <add>, %196, %cst_120 [1] : vector<10x524xf32> to vector<10xf32>
    %198 = vector.shape_cast %197 : vector<10xf32> to vector<10x1xf32>
    %cst_121 = arith.constant dense<0xFF800000> : vector<1xf32>
    %199 = vector.multi_reduction <maximumf>, %198, %cst_121 [0] : vector<10x1xf32> to vector<1xf32>
    %200 = vector.shape_cast %199 : vector<1xf32> to vector<1x1xf32>
    %201 = vector.broadcast %200 : vector<1x1xf32> to vector<10x1xf32>
    %202 = arith.subf %198, %201 : vector<10x1xf32>
    %203 = math.exp %202 : vector<10x1xf32>
    %cst_122 = arith.constant dense<0.000000e+00> : vector<1xf32>
    %204 = vector.multi_reduction <add>, %203, %cst_122 [0] : vector<10x1xf32> to vector<1xf32>
    %205 = vector.shape_cast %204 : vector<1xf32> to vector<1x1xf32>
    %206 = math.log %205 : vector<1x1xf32>
    %207 = vector.broadcast %206 : vector<1x1xf32> to vector<10x1xf32>
    %208 = arith.subf %202, %207 : vector<10x1xf32>
    %c0_123 = arith.constant 0 : index
    %c0_124 = arith.constant 0 : index
    %c0_125 = arith.constant 0 : index
    %209 = vector.load %arg16[%c0_123, %c0_124, %c0_125] : memref<1x10x1xf32, #tpu.memory_space<vmem>>, vector<1x10x1xf32>
    %210 = vector.shape_cast %209 : vector<1x10x1xf32> to vector<10x1xf32>
    %211 = vector.shape_cast %208 : vector<10x1xf32> to vector<1x10x1xf32>
    tpu.vector_store %arg16[%c0_123, %c0_124, %c0_125], %211 {strides = array<i32>} : memref<1x10x1xf32, #tpu.memory_space<vmem>>, vector<1x10x1xf32>,
    return
  }
  func.func @transform_0(%arg0: i32) -> (i32, i32, i32) {
    %c0_i32 = arith.constant 0 : i32
    %c0_i32_0 = arith.constant 0 : i32
    %c0_i32_1 = arith.constant 0 : i32
    return %arg0, %c0_i32, %c0_i32_0 : i32, i32, i32
  }
  func.func @transform_1(%arg0: i32) -> (i32, i32, i32) {
    %c0_i32 = arith.constant 0 : i32
    %c0_i32_0 = arith.constant 0 : i32
    %c0_i32_1 = arith.constant 0 : i32
    %c0_i32_2 = arith.constant 0 : i32
    return %c0_i32, %c0_i32_0, %c0_i32_1 : i32, i32, i32
  }
  func.func @transform_2(%arg0: i32) -> (i32, i32) {
    %c0_i32 = arith.constant 0 : i32
    %c0_i32_0 = arith.constant 0 : i32
    %c0_i32_1 = arith.constant 0 : i32
    return %c0_i32, %c0_i32_0 : i32, i32
  }
  func.func @transform_3(%arg0: i32) -> (i32, i32) {
    %c0_i32 = arith.constant 0 : i32
    %c0_i32_0 = arith.constant 0 : i32
    %c0_i32_1 = arith.constant 0 : i32
    return %c0_i32, %c0_i32_0 : i32, i32
  }
  func.func @transform_4(%arg0: i32) -> (i32, i32, i32) {
    %c0_i32 = arith.constant 0 : i32
    %c0_i32_0 = arith.constant 0 : i32
    %c0_i32_1 = arith.constant 0 : i32
    %c0_i32_2 = arith.constant 0 : i32
    return %c0_i32, %c0_i32_0, %c0_i32_1 : i32, i32, i32
  }
  func.func @transform_5(%arg0: i32) -> (i32, i32) {
    %c0_i32 = arith.constant 0 : i32
    %c0_i32_0 = arith.constant 0 : i32
    %c0_i32_1 = arith.constant 0 : i32
    return %c0_i32, %c0_i32_0 : i32, i32
  }
  func.func @transform_6(%arg0: i32) -> (i32, i32) {
    %c0_i32 = arith.constant 0 : i32
    %c0_i32_0 = arith.constant 0 : i32
    %c0_i32_1 = arith.constant 0 : i32
    return %c0_i32, %c0_i32_0 : i32, i32
  }
  func.func @transform_7(%arg0: i32) -> (i32, i32) {
    %c0_i32 = arith.constant 0 : i32
    %c0_i32_0 = arith.constant 0 : i32
    %c0_i32_1 = arith.constant 0 : i32
    return %c0_i32, %c0_i32_0 : i32, i32
  }
  func.func @transform_8(%arg0: i32) -> (i32, i32) {
    %c0_i32 = arith.constant 0 : i32
    %c0_i32_0 = arith.constant 0 : i32
    %c0_i32_1 = arith.constant 0 : i32
    return %c0_i32, %c0_i32_0 : i32, i32
  }
  func.func @transform_9(%arg0: i32) -> (i32, i32, i32) {
    %c0_i32 = arith.constant 0 : i32
    %c0_i32_0 = arith.constant 0 : i32
    %c0_i32_1 = arith.constant 0 : i32
    %c0_i32_2 = arith.constant 0 : i32
    return %c0_i32, %c0_i32_0, %c0_i32_1 : i32, i32, i32
  }
  func.func @transform_10(%arg0: i32) -> (i32, i32) {
    %c0_i32 = arith.constant 0 : i32
    %c0_i32_0 = arith.constant 0 : i32
    %c0_i32_1 = arith.constant 0 : i32
    return %c0_i32, %c0_i32_0 : i32, i32
  }
  func.func @transform_11(%arg0: i32) -> (i32, i32) {
    %c0_i32 = arith.constant 0 : i32
    %c0_i32_0 = arith.constant 0 : i32
    %c0_i32_1 = arith.constant 0 : i32
    return %c0_i32, %c0_i32_0 : i32, i32
  }
  func.func @transform_12(%arg0: i32) -> (i32, i32) {
    %c0_i32 = arith.constant 0 : i32
    %c0_i32_0 = arith.constant 0 : i32
    %c0_i32_1 = arith.constant 0 : i32
    return %c0_i32, %c0_i32_0 : i32, i32
  }
  func.func @transform_13(%arg0: i32) -> (i32, i32) {
    %c0_i32 = arith.constant 0 : i32
    %c0_i32_0 = arith.constant 0 : i32
    %c0_i32_1 = arith.constant 0 : i32
    return %c0_i32, %c0_i32_0 : i32, i32
  }
  func.func @transform_14(%arg0: i32) -> (i32, i32) {
    %c0_i32 = arith.constant 0 : i32
    %c0_i32_0 = arith.constant 0 : i32
    %c0_i32_1 = arith.constant 0 : i32
    return %c0_i32, %c0_i32_0 : i32, i32
  }
  func.func @transform_15(%arg0: i32) -> (i32, i32, i32) {
    %c0_i32 = arith.constant 0 : i32
    %c0_i32_0 = arith.constant 0 : i32
    %c0_i32_1 = arith.constant 0 : i32
    return %arg0, %c0_i32, %c0_i32_0 : i32, i32, i32
  }
}

</mosaic_0001>

<bundles_post_ra>
// kernel: _lambda_.1
= control target key start
LH: loop header
LB: loop body
LE: loop exit
PB: predicated region body
PF: predicated region fallthrough
CT: control target
= control target key end

     0   :  { %s11209_s0 = inlined_call_operand.vmem [shape: f32[2,1,788], index: 0, kind: input, shape index: {}]   ;;  %s11210_s1 = inlined_call_operand.vmem [shape: f32[9,16,1], index: 1, kind: input, shape index: {}]   ;;  %s11211_s2 = inlined_call_operand.vmem [shape: f32[16,1], index: 2, kind: input, shape index: {}]   ;;  %s11212_s3 = inlined_call_operand.hbm [shape: f32[16,1], index: 3, kind: input, shape index: {}]   ;;  %s11213_s4 = inlined_call_operand.hbm [shape: f32[9,8,16], index: 4, kind: input, shape index: {}]   ;;  %s11214_s5 = inlined_call_operand.vmem [shape: f32[8,1], index: 5, kind: input, shape index: {}]   ;;  %s11215_s6 = inlined_call_operand.hbm [shape: f32[8,1], index: 6, kind: input, shape index: {}]   ;;  %s11216_s7 = inlined_call_operand.hbm [shape: f32[14,8], index: 7, kind: input, shape index: {}]   ;;  %s11217_s8 = inlined_call_operand.hbm [shape: f32[14,1], index: 8, kind: input, shape index: {}]   ;;  %s11218_s9 = inlined_call_operand.vmem [shape: f32[9,12,14], index: 9, kind: input, shape index: {}]   ;;  %s11219_s10 = inlined_call_operand.vmem [shape: f32[12,1], index: 10, kind: input, shape index: {}]   ;;  %s11220_s11 = inlined_call_operand.hbm [shape: f32[12,1], index: 11, kind: input, shape index: {}]   ;;  %s11221_s12 = inlined_call_operand.vmem [shape: f32[10,12], index: 12, kind: input, shape index: {}]   ;;  %s11222_s13 = inlined_call_operand.vmem [shape: f32[10,1], index: 13, kind: input, shape index: {}]   ;;  %s11223_s14 = inlined_call_operand.vmem [shape: f32[1,524], index: 14, kind: input, shape index: {}]   ;;  %s11224_s15 = inlined_call_operand.vmem [shape: f32[2,10,1], index: 15, kind: output, shape index: {}]  }
   0x1   :  { %11266 = sst [smem:[#allocation53_spill]] %s11218_s9 }
   0x2   :  { %11267 = sst [smem:[#allocation54_spill]] %s11221_s12 }
   0x3   :  { %11268 = sst [smem:[#allocation55_spill]] %s11223_s14 }
   0x4   :  { %11269 = sst [smem:[#allocation56_spill]] %s11224_s15 }
   0x5   :  { %20 = vsyncpa [#allocation3], 0 }
   0x6   :  { %21 = vsyncpa [#allocation5], 0 }
   0x7   :  { %22 = vsyncpa [#allocation8], 0 }
   0x8   :  { %23 = vsyncpa [#allocation11], 0  ;;  %s9025_s18 = smov 0  }
   0x9 LB: > { %11270 = sst [smem:[#allocation16_spill]] %s8919_s18  ;;  %s9031_s19 = sadd.s32 4294967295, %s8919_s18   ;;  %s8919_s18 = sphi %s9025_s18, %s29_s18  }
   0xa   : > { %p7412_p0 = scmp.ge.s32.totalorder %s8919_s18, 1  ;;  %p380_p1 = scmp.lt.s32.totalorder %s8919_s18, 3 }
   0xb   : > { %p11228_p2 = scmp.eq.s32.totalorder %s9031_s19, 0  ;;  %s8921_s21 = smov [#allocation4]  }
   0xc   : > { %p9036_p3 = pnand %p7412_p0, %p380_p1  ;;  %s411_s22 = sshll.u32 %s8921_s21, 4  ;;  %s9040_s22 = int_to_ptr.vmem [resolvable:$true] %s411_s22 }
   0xd   : > { %s8922_s23 = smov [#allocation7]   ;;  %s8923_s26 = smov [#allocation2]  }
   0xe   : > { %s11271_s20 = scalar_select %p9036_p3, 1, 0 }
   0xf   : > { %p8158_p4 = pneg %p9036_p3  ;;  %s438_s24 = sshll.u32 %s8922_s23, 4  ;;  %s9044_s24 = int_to_ptr.vmem [resolvable:$true] %s438_s24 }
  0x10   : > { %s398_s27 = sshll.u32 %s8923_s26, 4  ;;  %s8924_s28 = smov [#allocation6]   ;;  %s9052_s27 = int_to_ptr.vmem [resolvable:$true] %s398_s27 }
  0x11   : > { %p9048_p5 = pnand %p11228_p2, %p8158_p4  ;;  %s9054_s29 = sshll.u32 %s8924_s28, 4  ;;  %s429_s29 = int_to_ptr.vmem [resolvable:$true] %s9054_s29 }
  0x12   : > { %s8729_s17 = scalar_lea.hbm %s11213_s4, 1152 }
  0x13   : > { %p8730_p6 = scmp.ne.s32.totalorder %s11213_s4, %s8729_s17  ;;  %p9064_p7 = pneg %p9048_p5 }
  0x14   : > { %p8736_p10 = scmp.lt.u32.totalorder %s8729_s17, %s11213_s4 }
  0x15   : > { %p8732_p8 = pnand %p9064_p7, %p8730_p6 }
  0x17   : > { %p8733_p9 = pneg %p8732_p8 }
  0x19   : > { %p8738_p11 = pnand %p8736_p10, %p8733_p9 }
  0x1b   : > { %8741 = shalt.err (!%p8738_p11)
}
  0x1c   : > { %s8742_s30 = scalar_lea.vmem %s9040_s22, 1152  ;;  %p8750_p1 = scmp.lt.s32.totalorder %s9040_s22, %s9040_s22 }
  0x1d   : > { %p8743_p12 = scmp.ne.s32.totalorder %s9040_s22, %s8742_s30  ;;  %p8751_p4 = scmp.lt.s32.totalorder %s8742_s30, %s8742_s30 }
  0x1f   : > { %p8745_p13 = pnand %p8743_p12, %p9064_p7  ;;  %p8752_p6 = por %p8751_p4, %p8750_p1 }
  0x21   : > { %p8746_p0 = pneg %p8745_p13 }
  0x23   : > { %p8753_p8 = pnand %p8752_p6, %p8746_p0 }
  0x25   : > { %8756 = shalt.err (!%p8753_p8)
}
  0x26   : > { %s8925_s16 = smov 128   ;;  %s8926_s17 = smov 8  }
  0x27   : > { %8164 = dma.hbm_to_vmem [thread:$0]  (!%p9048_p5), %s11213_s4, 1152, %s9040_s22, [#allocation5], %s8925_s16, %s8925_s16, %s8926_s17  }
  0x28   : > { %s8757_s30 = scalar_lea.hbm %s11216_s7, 256 }
  0x29   : > { %p8758_p9 = scmp.ne.s32.totalorder %s11216_s7, %s8757_s30  ;;  %p8764_p12 = scmp.lt.u32.totalorder %s8757_s30, %s11216_s7 }
  0x2b   : > { %p8760_p10 = pnand %p8758_p9, %p9064_p7 }
  0x2d   : > { %p8761_p11 = pneg %p8760_p10 }
  0x2f   : > { %p8766_p13 = pnand %p8764_p12, %p8761_p11 }
  0x31   : > { %8769 = shalt.err (!%p8766_p13)
}
  0x32   : > { %s8770_s22 = scalar_lea.vmem %s9044_s24, 256  ;;  %p8778_p6 = scmp.lt.s32.totalorder %s9044_s24, %s9044_s24 }
  0x33   : > { %p8771_p0 = scmp.ne.s32.totalorder %s9044_s24, %s8770_s22  ;;  %p8779_p8 = scmp.lt.s32.totalorder %s8770_s22, %s8770_s22 }
  0x35   : > { %p8773_p1 = pnand %p8771_p0, %p9064_p7  ;;  %p8780_p9 = por %p8779_p8, %p8778_p6 }
  0x37   : > { %p8774_p4 = pneg %p8773_p1 }
  0x39   : > { %p8781_p10 = pnand %p8780_p9, %p8774_p4 }
  0x3b   : > { %8784 = shalt.err (!%p8781_p10)
}
  0x3c   : > { %8170 = dma.hbm_to_vmem [thread:$0]  (!%p9048_p5), %s11216_s7, 256, %s9044_s24, [#allocation8], %s8925_s16, %s8925_s16, %s8926_s17  }
  0x3d   : > { %s8785_s21 = scalar_lea.hbm %s11212_s3, 256 }
  0x3e   : > { %p8786_p11 = scmp.ne.s32.totalorder %s11212_s3, %s8785_s21  ;;  %p8792_p0 = scmp.lt.u32.totalorder %s8785_s21, %s11212_s3 }
  0x40   : > { %p8788_p12 = pnand %p8786_p11, %p9064_p7 }
  0x42   : > { %p8789_p13 = pneg %p8788_p12 }
  0x44   : > { %p8794_p1 = pnand %p8792_p0, %p8789_p13 }
  0x46   : > { %8797 = shalt.err (!%p8794_p1)
}
  0x47   : > { %s8798_s24 = scalar_lea.vmem %s9052_s27, 256  ;;  %p8806_p9 = scmp.lt.s32.totalorder %s9052_s27, %s9052_s27 }
  0x48   : > { %p8799_p4 = scmp.ne.s32.totalorder %s9052_s27, %s8798_s24  ;;  %p8807_p10 = scmp.lt.s32.totalorder %s8798_s24, %s8798_s24 }
  0x4a   : > { %p8801_p6 = pnand %p8799_p4, %p9064_p7  ;;  %p8808_p11 = por %p8807_p10, %p8806_p9 }
  0x4c   : > { %p8802_p8 = pneg %p8801_p6 }
  0x4e   : > { %p8809_p12 = pnand %p8808_p11, %p8802_p8 }
  0x50   : > { %8812 = shalt.err (!%p8809_p12)
}
  0x51   : > { %8161 = dma.hbm_to_vmem [thread:$0]  (!%p9048_p5), %s11212_s3, 256, %s9052_s27, [#allocation3], %s8925_s16, %s8925_s16, %s8926_s17  }
  0x52   : > { %s8813_s15 = scalar_lea.hbm %s11215_s6, 128 }
  0x53   : > { %p8814_p13 = scmp.ne.s32.totalorder %s11215_s6, %s8813_s15  ;;  %p8820_p4 = scmp.lt.u32.totalorder %s8813_s15, %s11215_s6 }
  0x55   : > { %p8816_p0 = pnand %p8814_p13, %p9064_p7 }
  0x57   : > { %p8817_p1 = pneg %p8816_p0 }
  0x59   : > { %p8822_p6 = pnand %p8820_p4, %p8817_p1 }
  0x5b   : > { %8825 = shalt.err (!%p8822_p6)
}
  0x5c   : > { %s8826_s30 = scalar_lea.vmem %s429_s29, 128  ;;  %p8834_p11 = scmp.lt.s32.totalorder %s429_s29, %s429_s29 }
  0x5d   : > { %p8827_p8 = scmp.ne.s32.totalorder %s429_s29, %s8826_s30  ;;  %p8835_p12 = scmp.lt.s32.totalorder %s8826_s30, %s8826_s30 }
  0x5f   : > { %p8829_p9 = pnand %p8827_p8, %p9064_p7  ;;  %p8836_p2 = por %p8835_p12, %p8834_p11 }
  0x61   : > { %p8830_p10 = pneg %p8829_p9 }
  0x63   : > { %p8837_p3 = pnand %p8836_p2, %p8830_p10 }
  0x65   : > { %8840 = shalt.err (!%p8837_p3)
}
  0x66   : > { %8167 = dma.hbm_to_vmem [thread:$0]  (!%p9048_p5), %s11215_s6, 128, %s429_s29, [#allocation5]  }
  0x67   : > { %s8927_s22 = smov [#allocation9]   ;;  %s8928_s12 = smov [#allocation10]  }
  0x68   : > { %s451_s9 = sshll.u32 %s8927_s22, 4  ;;  %s470_s14 = sshll.u32 %s8928_s12, 4  ;;  %s452_s9 = int_to_ptr.vmem [resolvable:$true] %s451_s9  ;;  %s471_s14 = int_to_ptr.vmem [resolvable:$true] %s470_s14 }
  0x69   : > { %s8841_s23 = scalar_lea.hbm %s11217_s8, 256 }
  0x6a   : > { %p8842_p2 = scmp.ne.s32.totalorder %s11217_s8, %s8841_s23  ;;  %p8848_p0 = scmp.lt.u32.totalorder %s8841_s23, %s11217_s8 }
  0x6c   : > { %p8844_p3 = pnand %p8842_p2, %p9064_p7 }
  0x6e   : > { %p8845_p13 = pneg %p8844_p3 }
  0x70   : > { %p8850_p1 = pnand %p8848_p0, %p8845_p13 }
  0x72   : > { %8853 = shalt.err (!%p8850_p1)
}
  0x73   : > { %s8854_s29 = scalar_lea.vmem %s452_s9, 256  ;;  %p8862_p9 = scmp.lt.s32.totalorder %s452_s9, %s452_s9 }
  0x74   : > { %p8855_p4 = scmp.ne.s32.totalorder %s452_s9, %s8854_s29  ;;  %p8863_p10 = scmp.lt.s32.totalorder %s8854_s29, %s8854_s29 }
  0x76   : > { %p8857_p6 = pnand %p8855_p4, %p9064_p7  ;;  %p8864_p11 = por %p8863_p10, %p8862_p9 }
  0x78   : > { %p8858_p8 = pneg %p8857_p6 }
  0x7a   : > { %p8865_p12 = pnand %p8864_p11, %p8858_p8 }
  0x7c   : > { %8868 = shalt.err (!%p8865_p12)
}
  0x7d   : > { %8173 = dma.hbm_to_vmem [thread:$0]  (!%p9048_p5), %s11217_s8, 256, %s452_s9, [#allocation8], %s8925_s16, %s8925_s16, %s8926_s17  }
  0x7e   : > { %s8869_s21 = scalar_lea.hbm %s11220_s11, 256 }
  0x7f   : > { %p8870_p2 = scmp.ne.s32.totalorder %s11220_s11, %s8869_s21  ;;  %p8876_p0 = scmp.lt.u32.totalorder %s8869_s21, %s11220_s11 }
  0x81   : > { %p8872_p3 = pnand %p8870_p2, %p9064_p7 }
  0x83   : > { %p8873_p13 = pneg %p8872_p3 }
  0x85   : > { %p8878_p1 = pnand %p8876_p0, %p8873_p13 }
  0x87   : > { %8881 = shalt.err (!%p8878_p1)
}
  0x88   : > { %s8882_s27 = scalar_lea.vmem %s471_s14, 256  ;;  %p8890_p9 = scmp.lt.s32.totalorder %s471_s14, %s471_s14 }
  0x89   : > { %p8883_p4 = scmp.ne.s32.totalorder %s471_s14, %s8882_s27  ;;  %p8891_p10 = scmp.lt.s32.totalorder %s8882_s27, %s8882_s27 }
  0x8b   : > { %p8885_p6 = pnand %p8883_p4, %p9064_p7  ;;  %p8892_p11 = por %p8891_p10, %p8890_p9 }
  0x8d   : > { %p8886_p8 = pneg %p8885_p6 }
  0x8f   : > { %p8893_p12 = pnand %p8892_p11, %p8886_p8 }
  0x91   : > { %8896 = shalt.err (!%p8893_p12)
}
  0x92   : > { %8176 = dma.hbm_to_vmem [thread:$0]  (!%p9048_p5), %s11220_s11, 256, %s471_s14, [#allocation11], %s8925_s16, %s8925_s16, %s8926_s17  }
  0x93   : > { %p11274_p2 = scmp.ne.s32.totalorder %s11271_s20, 0 }
  0x95   : > { %502 = sbr.rel (%p11274_p2) target bundleno = 2479 (0x9af), region = 80 }
  0x9c   : > { %p11275_p7 = scmp.eq.s32.totalorder %s9031_s19, 0 }
  0x9e   : > { %8902 = dma.done.wait (%p11275_p7), [#allocation3], 256   ;;  %p11276_p3 = pmov %p11275_p7 }
  0xa0   : > { %8904 = vsyncadd (%p11276_p3), [#allocation3], 4294967040  ;;  %p11277_p13 = pmov %p11276_p3 }
  0xa1   : > { %p11278_p0 = pmov %p11276_p3 }
  0xa2   : > { %8906 = dma.done.wait (%p11277_p13), [#allocation5], 1280  }
  0xa3   : > { %8908 = vsyncadd (%p11278_p0), [#allocation5], 4294966016  ;;  %p11279_p1 = pmov %p11278_p0 }
  0xa4   : > { %p11280_p5 = pmov %p11278_p0 }
  0xa5   : > { %8910 = dma.done.wait (%p11279_p1), [#allocation8], 512  }
  0xa6   : > { %8912 = vsyncadd (%p11280_p5), [#allocation8], 4294966784  ;;  %p11281_p4 = pmov %p11278_p0 }
  0xa7   : > { %p11282_p6 = pmov %p11278_p0 }
  0xa8   : > { %8914 = dma.done.wait (%p11281_p4), [#allocation11], 256  }
  0xa9   : > { %8916 = vsyncadd (%p11282_p6), [#allocation11], 4294967040  ;;  %v8929_v0 = vmov 0   ;;  %v7431_v1 = vld [vmem:[%s11210_s1 + $0x20] sm:$0xff]  ;;  %v7429_v2 = vld [vmem:[%s11210_s1 + $0x10] sm:$0xff]  ;;  %p569_p8 = scmp.lt.s32.totalorder %s9031_s19, 1  ;;  %v592_v11 = vlaneseq }
  0xaa   : > { %8222 = vset.pattern.permute.xlu1 %v8929_v0  ;;  %8221 = vset.pattern.permute.xlu0 %v8929_v0  ;;  %v7432_v3 = vld [vmem:[%s11210_s1 + $0x28] sm:$0xff]  ;;  %v7430_v4 = vld [vmem:[%s11210_s1 + $0x18] sm:$0xff]  ;;  %v7433_v6 = vld [vmem:[%s11210_s1 + $0x30] sm:$0xff]  ;;  %s8930_s17 = smov 127   ;;  %s8931_s14 = smov 126   ;;  %vm695_vm0 = vcmask 1039360  }
  0xab   : > { %735 = vperm.xlu1 %8222, %v7431_v1   ;;  %639 = vperm.xlu0 %8221, %v7429_v2   ;;  %v7434_v5 = vld [vmem:[%s11210_s1 + $0x38] sm:$0xff]  ;;  %v7436_v7 = vld [vmem:[%s11210_s1 + $0x48] sm:$0xff]  ;;  %v7435_v8 = vld [vmem:[%s11210_s1 + $0x40] sm:$0xff]  ;;  %s11371_s19 = smov (!%p569_p8, %s9031_s19), 1  ;;  %v9263_v14 = vshrl.u32 %v592_v11, 7  ;;  %s8932_s24 = smov 100  }
  0xac   : > { %v7438_v9 = vld [vmem:[%s11210_s1 + $0x58] sm:$0xff]  ;;  %v7437_v10 = vld [vmem:[%s11210_s1 + $0x50] sm:$0xff]  ;;  %s8133_s25 = smul.u32 7, %s11371_s19  ;;  %v7440_v12 = vld [vmem:[%s11210_s1 + $0x68] sm:$0xff]  ;;  %s8933_s22 = smov 99   ;;  %vm791_vm1 = vcmask 1031168  }
  0xad   : > { %v7439_v13 = vld [vmem:[%s11210_s1 + $0x60] sm:$0xff]  ;;  %11283 = vst [vmem:[#allocation17_spill] sm:$0xff] %v9263_v14  ;;  %v1129_v15 = vsub.s32 6, %v9263_v14  ;;  %v7442_v17 = vld [vmem:[%s11210_s1 + $0x78] sm:$0xff]  ;;  %v7441_v18 = vld [vmem:[%s11210_s1 + $0x70] sm:$0xff]  ;;  %v11232_v24 = vsub.s32 2, %v9263_v14 }
  0xae   : > { %s572_s15 = scalar_lea.vmem %s11209_s0, %s8133_s25  ;;  %v7444_v20 = vld [vmem:[%s11210_s1 + $0x88] sm:$0xff]  ;;  %v7443_v21 = vld [vmem:[%s11210_s1 + $0x80] sm:$0xff]  ;;  %v11233_v25 = vsub.s32 1, %v9263_v14  ;;  %v11231_v28 = vsub.s32 3, %v9263_v14  ;;  %v11234_v36 = vsub.s32 0, %v9263_v14  ;;  %v614_v50 = vsub.s32 5, %v9263_v14 }
  0xaf   : > { %740 = vperm.xlu1 %8222, %v7432_v3   ;;  %644 = vperm.xlu0 %8221, %v7430_v4   ;;  %v578_v16 = vld [vmem:[%s572_s15] sm:$0x7f]  ;;  %v580_v22 = vld [vmem:[%s11210_s1 + $0x8] sm:$0xff]  ;;  %v11230_v51 = vsub.s32 4, %v9263_v14  ;;  %s8934_s12 = smov 98   ;;  %s8935_s15 = smov 72  }
  0xb0   : > { %v9272_v19 = vrot.slane %v578_v16, %v1129_v15  ;;  %v579_v23 = vld [vmem:[%s11210_s1] sm:$0xff]  ;;  %v9290_v26 = vrot.slane %v578_v16, %v11232_v24  ;;  %v9294_v27 = vrot.slane %v578_v16, %v11233_v25  ;;  %v9301_v32 = vrot.slane %v578_v16, %v11231_v28  ;;  %s8936_s30 = smov 71   ;;  %s8937_s27 = smov 70  }
  0xb1   : > { %v9314_v39 = vrot.slane %v578_v16, %v11234_v36  ;;  %v9338_v54 = vrot.slane %v578_v16, %v614_v50  ;;  %v9342_v55 = vrot.slane %v578_v16, %v11230_v51  ;;  %vm887_vm2 = vcmask 818176   ;;  %s8939_s18 = smov 124   ;;  %s8940_s20 = smov 68  }
  0xb2   : > { %vm983_vm3 = vcmask 809984   ;;  %vm1079_vm4 = vcmask 801792   ;;  %vm1188_vm5 = vcmask 588800   ;;  %vm1294_vm6 = vcmask 580608   ;;  %s8941_s25 = smov 16   ;;  %s8942_s16 = smov 14  }
  0xb3   : > { %836 = vperm.xlu1 %8222, %v7434_v5   ;;  %831 = vperm.xlu0 %8221, %v7433_v6   ;;  %vm1400_vm7 = vcmask 572416   ;;  %vm1558_vm8 = vcmask 130048   ;;  %vm3925_vm9 = vcmask 64512   ;;  %vm4354_vm10 = vcmask 1045504   ;;  %s11368_s21 = sld [smem:[#allocation56_spill]] }
  0xb4   : > { %vm8944_vm11 = vmmov 1   ;;  %vm4347_vm13 = vcmask 113664   ;;  %vm4862_vm14 = vcmask 1014784   ;;  %vm5736_vm15 = vcmask 556032  }
  0xb5   : > { %vm10581_vm12 = vmpackc.low %vm4354_vm10, %vm8944_vm11 }
  0xb7   : > { %932 = vperm.xlu1 %8222, %v7436_v7   ;;  %927 = vperm.xlu0 %8221, %v7435_v8  }
  0xbb   : > { %1028 = vperm.xlu1 %8222, %v7438_v9   ;;  %1023 = vperm.xlu0 %8221, %v7437_v10  }
  0xbf   : > { %1124 = vperm.xlu1 %8222, %v7440_v12   ;;  %1119 = vperm.xlu0 %8221, %v7439_v13  }
  0xc3   : > { %1235 = vperm.xlu1 %8222, %v7442_v17   ;;  %1230 = vperm.xlu0 %8221, %v7441_v18  }
  0xc7   : > { %1341 = vperm.xlu1 %8222, %v7444_v20   ;;  %1336 = vperm.xlu0 %8221, %v7443_v21  }
  0xcb   : > { %588 = vperm.xlu1 %8222, %v580_v22   ;;  %583 = vperm.xlu0 %8221, %v579_v23  }
 0x12a   : > { %v640_v29 = vpop.permute.xlu0 %639  ;;  %v736_v42 = vpop.permute.xlu1 %735 }
 0x12b   : > { %v649_v30 = vmul.f32 %v640_v29, %v9290_v26  ;;  %v648_v31 = vmul.f32 %v640_v29, %v9294_v27  ;;  %v650_v35 = vmul.f32 %v640_v29, %v9301_v32  ;;  %v647_v41 = vmul.f32 %v640_v29, %v9314_v39 }
 0x12c   : > { %v745_v43 = vmul.f32 %v736_v42, %v9290_v26  ;;  %v744_v44 = vmul.f32 %v736_v42, %v9294_v27  ;;  %v746_v47 = vmul.f32 %v736_v42, %v9301_v32  ;;  %v743_v53 = vmul.f32 %v736_v42, %v9314_v39 }
 0x12d   : > { %675 = vrot.lane.b32.xlu1 %v649_v30, %s8930_s17  ;;  %673 = vrot.lane.b32.xlu0 %v648_v31, %s8930_s17  ;;  %v652_v56 = vmul.f32 %v640_v29, %v9338_v54  ;;  %v651_v57 = vmul.f32 %v640_v29, %v9342_v55  ;;  %v748_v6 = vmul.f32 %v736_v42, %v9338_v54 }
 0x12e   : > { %v645_v33 = vpop.permute.xlu0 %644  ;;  %v741_v45 = vpop.permute.xlu1 %740  ;;  %v747_v7 = vmul.f32 %v736_v42, %v9342_v55 }
 0x12f   : > { %v654_v34 = vmul.f32 %v645_v33, %v9294_v27  ;;  %v656_v37 = vmul.f32 %v645_v33, %v9301_v32  ;;  %v655_v38 = vmul.f32 %v645_v33, %v9290_v26  ;;  %v653_v40 = vmul.f32 %v645_v33, %v9314_v39 }
 0x130   : > { %v750_v46 = vmul.f32 %v741_v45, %v9294_v27  ;;  %v752_v48 = vmul.f32 %v741_v45, %v9301_v32  ;;  %v751_v49 = vmul.f32 %v741_v45, %v9290_v26  ;;  %v749_v52 = vmul.f32 %v741_v45, %v9314_v39 }
 0x131   : > { %685 = vrot.lane.b32.xlu1 %v654_v34, %s8930_s17  ;;  %677 = vrot.lane.b32.xlu0 %v650_v35, %s8930_s17  ;;  %v658_v58 = vmul.f32 %v645_v33, %v9338_v54  ;;  %v657_v59 = vmul.f32 %v645_v33, %v9342_v55  ;;  %v754_v8 = vmul.f32 %v741_v45, %v9338_v54 }
 0x132   : > { %v832_v60 = vpop.permute.xlu0 %831  ;;  %v837_v63 = vpop.permute.xlu1 %836  ;;  %v753_v9 = vmul.f32 %v741_v45, %v9342_v55 }
 0x133   : > { %v841_v61 = vmul.f32 %v832_v60, %v9290_v26  ;;  %v840_v62 = vmul.f32 %v832_v60, %v9294_v27  ;;  %v846_v0 = vmul.f32 %v837_v63, %v9294_v27  ;;  %v842_v1 = vmul.f32 %v832_v60, %v9301_v32 }
 0x134   : > { %v848_v2 = vmul.f32 %v837_v63, %v9301_v32  ;;  %v847_v3 = vmul.f32 %v837_v63, %v9290_v26  ;;  %v845_v4 = vmul.f32 %v837_v63, %v9314_v39  ;;  %v839_v5 = vmul.f32 %v832_v60, %v9314_v39 }
 0x135   : > { %689 = vrot.lane.b32.xlu1 %v656_v37, %s8930_s17  ;;  %687 = vrot.lane.b32.xlu0 %v655_v38, %s8930_s17  ;;  %v844_v22 = vmul.f32 %v832_v60, %v9338_v54  ;;  %v843_v23 = vmul.f32 %v832_v60, %v9342_v55  ;;  %v850_v29 = vmul.f32 %v837_v63, %v9338_v54 }
 0x136   : > { %v928_v10 = vpop.permute.xlu0 %927  ;;  %v933_v13 = vpop.permute.xlu1 %932  ;;  %v849_v30 = vmul.f32 %v837_v63, %v9342_v55 }
 0x137   : > { %v937_v11 = vmul.f32 %v928_v10, %v9290_v26  ;;  %v936_v12 = vmul.f32 %v928_v10, %v9294_v27  ;;  %v942_v15 = vmul.f32 %v933_v13, %v9294_v27  ;;  %v938_v16 = vmul.f32 %v928_v10, %v9301_v32 }
 0x138   : > { %v944_v17 = vmul.f32 %v933_v13, %v9301_v32  ;;  %v943_v18 = vmul.f32 %v933_v13, %v9290_v26  ;;  %v941_v20 = vmul.f32 %v933_v13, %v9314_v39  ;;  %v935_v21 = vmul.f32 %v928_v10, %v9314_v39 }
 0x139   : > { %683 = vrot.lane.b32.xlu1 %v653_v40, %s8930_s17  ;;  %671 = vrot.lane.b32.xlu0 %v647_v41, %s8930_s17 }
 0x13a   : > { %v9400_v31 = vpop.permute.xlu0 %1023  ;;  %v9404_v33 = vpop.permute.xlu1 %1028 }
 0x13b   : > { %v1033_v34 = vmul.f32 %v9400_v31, %v9290_v26  ;;  %v1032_v35 = vmul.f32 %v9400_v31, %v9294_v27  ;;  %v1038_v37 = vmul.f32 %v9404_v33, %v9294_v27  ;;  %v1034_v38 = vmul.f32 %v9400_v31, %v9301_v32 }
 0x13c   : > { %v1040_v42 = vmul.f32 %v9404_v33, %v9301_v32 }
 0x13d   : > { %771 = vrot.lane.b32.xlu1 %v745_v43, %s8931_s14  ;;  %769 = vrot.lane.b32.xlu0 %v744_v44, %s8931_s14  ;;  %v1039_v43 = vmul.f32 %v9404_v33, %v9290_v26 }
 0x13e   : > { %v9416_v40 = vpop.permute.xlu1 %1124  ;;  %v9418_v41 = vpop.permute.xlu0 %1119 }
 0x13f   : > { %v1133_v60 = vmul.f32 %v9418_v41, %v9294_v27  ;;  %v1140_v63 = vmul.f32 %v9416_v40, %v9294_v27 }
 0x141   : > { %781 = vrot.lane.b32.xlu1 %v750_v46, %s8931_s14  ;;  %773 = vrot.lane.b32.xlu0 %v746_v47, %s8931_s14  ;;  %v1037_v46 = vmul.f32 %v9404_v33, %v9314_v39  ;;  %v1031_v47 = vmul.f32 %v9400_v31, %v9314_v39 }
 0x142   : > { %v9428_v44 = vpop.permute.xlu1 %1235  ;;  %v9430_v45 = vpop.permute.xlu0 %1230 }
 0x145   : > { %785 = vrot.lane.b32.xlu1 %v752_v48, %s8931_s14  ;;  %783 = vrot.lane.b32.xlu0 %v751_v49, %s8931_s14  ;;  %v940_v48 = vmul.f32 %v928_v10, %v9338_v54  ;;  %v939_v49 = vmul.f32 %v928_v10, %v9342_v55 }
 0x146   : > { %v9440_v50 = vpop.permute.xlu1 %1341 }
 0x149   : > { %779 = vrot.lane.b32.xlu1 %v749_v52, %s8931_s14  ;;  %767 = vrot.lane.b32.xlu0 %v743_v53, %s8931_s14  ;;  %v9442_v52 = vpop.permute.xlu0 %1336  ;;  %v946_v53 = vmul.f32 %v933_v13, %v9338_v54 }
 0x14d   : > { %681 = vrot.lane.b32.xlu1 %v652_v56, %s8930_s17  ;;  %679 = vrot.lane.b32.xlu0 %v651_v57, %s8930_s17  ;;  %v945_v56 = vmul.f32 %v933_v13, %v9342_v55  ;;  %v9450_v57 = vpop.permute.xlu1 %588 }
 0x151   : > { %693 = vrot.lane.b32.xlu1 %v658_v58, %s8930_s17  ;;  %691 = vrot.lane.b32.xlu0 %v657_v59, %s8930_s17  ;;  %v9452_v58 = vpop.permute.xlu0 %583  ;;  %v1134_v59 = vmul.f32 %v9418_v41, %v9290_v26 }
 0x155   : > { %867 = vrot.lane.b32.xlu1 %v841_v61, %s8932_s24  ;;  %865 = vrot.lane.b32.xlu0 %v840_v62, %s8932_s24 }
 0x159   : > { %877 = vrot.lane.b32.xlu1 %v846_v0, %s8932_s24  ;;  %869 = vrot.lane.b32.xlu0 %v842_v1, %s8932_s24  ;;  %v1135_v0 = vmul.f32 %v9418_v41, %v9301_v32 }
 0x15d   : > { %881 = vrot.lane.b32.xlu1 %v848_v2, %s8932_s24  ;;  %879 = vrot.lane.b32.xlu0 %v847_v3, %s8932_s24  ;;  %v1142_v3 = vmul.f32 %v9416_v40, %v9301_v32 }
 0x161   : > { %875 = vrot.lane.b32.xlu1 %v845_v4, %s8932_s24  ;;  %863 = vrot.lane.b32.xlu0 %v839_v5, %s8932_s24  ;;  %v1141_v4 = vmul.f32 %v9416_v40, %v9290_v26  ;;  %v1438_v5 = vld [vmem:[%s11211_s2 + $0x8] sm:$0xff] }
 0x165   : > { %777 = vrot.lane.b32.xlu1 %v748_v6, %s8931_s14  ;;  %775 = vrot.lane.b32.xlu0 %v747_v7, %s8931_s14  ;;  %v1437_v6 = vld [vmem:[%s11211_s2] sm:$0xff] }
 0x169   : > { %789 = vrot.lane.b32.xlu1 %v754_v8, %s8931_s14  ;;  %787 = vrot.lane.b32.xlu0 %v753_v9, %s8931_s14 }
 0x16d   : > { %963 = vrot.lane.b32.xlu1 %v937_v11, %s8933_s22  ;;  %961 = vrot.lane.b32.xlu0 %v936_v12, %s8933_s22  ;;  %v1139_v11 = vmul.f32 %v9416_v40, %v9314_v39  ;;  %v1132_v12 = vmul.f32 %v9418_v41, %v9314_v39 }
 0x171   : > { %973 = vrot.lane.b32.xlu1 %v942_v15, %s8933_s22  ;;  %965 = vrot.lane.b32.xlu0 %v938_v16, %s8933_s22  ;;  %v1036_v16 = vmul.f32 %v9400_v31, %v9338_v54 }
 0x175   : > { %977 = vrot.lane.b32.xlu1 %v944_v17, %s8933_s22  ;;  %975 = vrot.lane.b32.xlu0 %v943_v18, %s8933_s22  ;;  %v1035_v17 = vmul.f32 %v9400_v31, %v9342_v55  ;;  %v1239_v31 = vmul.f32 %v9430_v45, %v9294_v27 }
 0x179   : > { %971 = vrot.lane.b32.xlu1 %v941_v20, %s8933_s22  ;;  %959 = vrot.lane.b32.xlu0 %v935_v21, %s8933_s22  ;;  %v1042_v21 = vmul.f32 %v9404_v33, %v9338_v54 }
 0x17d   : > { %873 = vrot.lane.b32.xlu1 %v844_v22, %s8932_s24  ;;  %871 = vrot.lane.b32.xlu0 %v843_v23, %s8932_s24  ;;  %v1041_v22 = vmul.f32 %v9404_v33, %v9342_v55 }
 0x181   : > { %885 = vrot.lane.b32.xlu1 %v850_v29, %s8932_s24  ;;  %883 = vrot.lane.b32.xlu0 %v849_v30, %s8932_s24  ;;  %v1240_v30 = vmul.f32 %v9430_v45, %v9290_v26 }
 0x185   : > { %1059 = vrot.lane.b32.xlu1 %v1033_v34, %s8934_s12  ;;  %1057 = vrot.lane.b32.xlu0 %v1032_v35, %s8934_s12  ;;  %v1246_v35 = vmul.f32 %v9428_v44, %v9294_v27 }
 0x189   : > { %1069 = vrot.lane.b32.xlu1 %v1038_v37, %s8934_s12  ;;  %1061 = vrot.lane.b32.xlu0 %v1034_v38, %s8934_s12  ;;  %v1241_v37 = vmul.f32 %v9430_v45, %v9301_v32 }
 0x18d   : > { %1073 = vrot.lane.b32.xlu1 %v1040_v42, %s8934_s12  ;;  %1071 = vrot.lane.b32.xlu0 %v1039_v43, %s8934_s12  ;;  %v1248_v43 = vmul.f32 %v9428_v44, %v9301_v32 }
 0x191   : > { %1067 = vrot.lane.b32.xlu1 %v1037_v46, %s8934_s12  ;;  %1055 = vrot.lane.b32.xlu0 %v1031_v47, %s8934_s12  ;;  %v1247_v46 = vmul.f32 %v9428_v44, %v9290_v26  ;;  %v1462_v47 = vld [vmem:[#allocation2 + $0x8] sm:$0xff] }
 0x195   : > { %969 = vrot.lane.b32.xlu1 %v940_v48, %s8933_s22  ;;  %967 = vrot.lane.b32.xlu0 %v939_v49, %s8933_s22  ;;  %v1461_v48 = vld [vmem:[#allocation2] sm:$0xff] }
 0x199   : > { %981 = vrot.lane.b32.xlu1 %v946_v53, %s8933_s22  ;;  %979 = vrot.lane.b32.xlu0 %v945_v56, %s8933_s22 }
 0x19d   : > { %1164 = vrot.lane.b32.xlu1 %v1134_v59, %s8935_s15  ;;  %1162 = vrot.lane.b32.xlu0 %v1133_v60, %s8935_s15  ;;  %v1245_v60 = vmul.f32 %v9428_v44, %v9314_v39 }
 0x19f   : > { %v9460_v61 = vpop.permute.xlu1 %675  ;;  %v9462_v62 = vpop.permute.xlu0 %673 }
 0x1a1   : > { %1176 = vrot.lane.b32.xlu1 %v1140_v63, %s8935_s15  ;;  %1166 = vrot.lane.b32.xlu0 %v1135_v0, %s8935_s15  ;;  %v1238_v63 = vmul.f32 %v9430_v45, %v9314_v39 }
 0x1a3   : > { %v9470_v1 = vpop.permute.xlu1 %685  ;;  %v9472_v2 = vpop.permute.xlu0 %677 }
 0x1a5   : > { %1180 = vrot.lane.b32.xlu1 %v1142_v3, %s8935_s15  ;;  %1178 = vrot.lane.b32.xlu0 %v1141_v4, %s8935_s15  ;;  %v1137_v4 = vmul.f32 %v9418_v41, %v9338_v54 }
 0x1a7   : > { %v9486_v7 = vpop.permute.xlu1 %689  ;;  %v9488_v8 = vpop.permute.xlu0 %687 }
 0x1a9   : > { %1446 = vperm.xlu1 %8222, %v1438_v5   ;;  %1441 = vperm.xlu0 %8221, %v1437_v6   ;;  %v1136_v5 = vmul.f32 %v9418_v41, %v9342_v55 }
 0x1ab   : > { %v9490_v9 = vpop.permute.xlu1 %683  ;;  %v9492_v10 = vpop.permute.xlu0 %671 }
 0x1ad   : > { %1174 = vrot.lane.b32.xlu1 %v1139_v11, %s8935_s15  ;;  %1160 = vrot.lane.b32.xlu0 %v1132_v12, %s8935_s15  ;;  %v1144_v12 = vmul.f32 %v9416_v40, %v9338_v54 }
 0x1af   : > { %v9500_v13 = vpop.permute.xlu1 %771  ;;  %v9502_v15 = vpop.permute.xlu0 %769 }
 0x1b1   : > { %1065 = vrot.lane.b32.xlu1 %v1036_v16, %s8934_s12  ;;  %1063 = vrot.lane.b32.xlu0 %v1035_v17, %s8934_s12  ;;  %v1143_v16 = vmul.f32 %v9416_v40, %v9342_v55 }
 0x1b3   : > { %v9510_v18 = vpop.permute.xlu1 %781  ;;  %v9512_v20 = vpop.permute.xlu0 %773 }
 0x1b5   : > { %1077 = vrot.lane.b32.xlu1 %v1042_v21, %s8934_s12  ;;  %1075 = vrot.lane.b32.xlu0 %v1041_v22, %s8934_s12  ;;  %v1346_v22 = vmul.f32 %v9442_v52, %v9290_v26 }
 0x1b7   : > { %v9520_v23 = vpop.permute.xlu1 %785  ;;  %v9522_v29 = vpop.permute.xlu0 %783 }
 0x1b9   : > { %1270 = vrot.lane.b32.xlu1 %v1240_v30, %s8936_s30  ;;  %1268 = vrot.lane.b32.xlu0 %v1239_v31, %s8936_s30  ;;  %v1345_v30 = vmul.f32 %v9442_v52, %v9294_v27 }
 0x1bb   : > { %v9530_v33 = vpop.permute.xlu1 %779  ;;  %v9532_v34 = vpop.permute.xlu0 %767 }
 0x1bd   : > { %1282 = vrot.lane.b32.xlu1 %v1246_v35, %s8936_s30  ;;  %1272 = vrot.lane.b32.xlu0 %v1241_v37, %s8936_s30  ;;  %v1352_v37 = vmul.f32 %v9440_v50, %v9294_v27 }
 0x1bf   : > { %v9540_v38 = vpop.permute.xlu1 %681  ;;  %v9542_v42 = vpop.permute.xlu0 %679 }
 0x1c1   : > { %1286 = vrot.lane.b32.xlu1 %v1248_v43, %s8936_s30  ;;  %1284 = vrot.lane.b32.xlu0 %v1247_v46, %s8936_s30  ;;  %v1347_v43 = vmul.f32 %v9442_v52, %v9301_v32 }
 0x1c3   : > { %v9550_v49 = vpop.permute.xlu1 %693  ;;  %v9552_v53 = vpop.permute.xlu0 %691 }
 0x1c5   : > { %1470 = vperm.xlu1 %8222, %v1462_v47   ;;  %1465 = vperm.xlu0 %8221, %v1461_v48   ;;  %v1354_v48 = vmul.f32 %v9440_v50, %v9301_v32 }
 0x1c7   : > { %v9554_v56 = vpop.permute.xlu1 %867  ;;  %v9556_v59 = vpop.permute.xlu0 %865 }
 0x1c9   : > { %1280 = vrot.lane.b32.xlu1 %v1245_v60, %s8936_s30  ;;  %1266 = vrot.lane.b32.xlu0 %v1238_v63, %s8936_s30  ;;  %v1353_v60 = vmul.f32 %v9440_v50, %v9290_v26 }
 0x1cb   : > { %v9564_v0 = vpop.permute.xlu1 %877  ;;  %v9566_v3 = vpop.permute.xlu0 %869 }
 0x1cd   : > { %1170 = vrot.lane.b32.xlu1 %v1137_v4, %s8935_s15  ;;  %1168 = vrot.lane.b32.xlu0 %v1136_v5, %s8935_s15  ;;  %v1351_v5 = vmul.f32 %v9440_v50, %v9314_v39 }
 0x1cf   : > { %v9574_v6 = vpop.permute.xlu1 %881  ;;  %v9576_v11 = vpop.permute.xlu0 %879 }
 0x1d1   : > { %1184 = vrot.lane.b32.xlu1 %v1144_v12, %s8935_s15  ;;  %1182 = vrot.lane.b32.xlu0 %v1143_v16, %s8935_s15  ;;  %v1344_v12 = vmul.f32 %v9442_v52, %v9314_v39 }
 0x1d3   : > { %v9584_v17 = vpop.permute.xlu1 %875  ;;  %v9586_v21 = vpop.permute.xlu0 %863 }
 0x1d5   : > { %1376 = vrot.lane.b32.xlu1 %v1346_v22, %s8937_s27  ;;  %1374 = vrot.lane.b32.xlu0 %v1345_v30, %s8937_s27  ;;  %v1243_v30 = vmul.f32 %v9430_v45, %v9338_v54 }
 0x1d7   : > { %v9594_v31 = vpop.permute.xlu1 %777  ;;  %v9596_v35 = vpop.permute.xlu0 %775 }
 0x1d9   : > { %1388 = vrot.lane.b32.xlu1 %v1352_v37, %s8937_s27  ;;  %1378 = vrot.lane.b32.xlu0 %v1347_v43, %s8937_s27  ;;  %v1242_v37 = vmul.f32 %v9430_v45, %v9342_v55 }
 0x1db   : > { %v9604_v46 = vpop.permute.xlu1 %789  ;;  %v9606_v47 = vpop.permute.xlu0 %787 }
 0x1dd   : > { %1392 = vrot.lane.b32.xlu1 %v1354_v48, %s8937_s27  ;;  %1390 = vrot.lane.b32.xlu0 %v1353_v60, %s8937_s27  ;;  %v1250_v60 = vmul.f32 %v9428_v44, %v9338_v54 }
 0x1df   : > { %v9614_v63 = vpop.permute.xlu1 %963  ;;  %v9616_v4 = vpop.permute.xlu0 %961 }
 0x1e1   : > { %1386 = vrot.lane.b32.xlu1 %v1351_v5, %s8937_s27  ;;  %1372 = vrot.lane.b32.xlu0 %v1344_v12, %s8937_s27  ;;  %v1249_v5 = vmul.f32 %v9428_v44, %v9342_v55 }
 0x1e3   : > { %v9624_v16 = vpop.permute.xlu1 %973  ;;  %v9626_v22 = vpop.permute.xlu0 %965 }
 0x1e5   : > { %1276 = vrot.lane.b32.xlu1 %v1243_v30, %s8936_s30  ;;  %1274 = vrot.lane.b32.xlu0 %v1242_v37, %s8936_s30  ;;  %v1349_v30 = vmul.f32 %v9442_v52, %v9338_v54  ;;  %v1348_v37 = vmul.f32 %v9442_v52, %v9342_v55 }
 0x1e7   : > { %v9634_v43 = vpop.permute.xlu1 %977  ;;  %v9636_v48 = vpop.permute.xlu0 %975 }
 0x1e9   : > { %1290 = vrot.lane.b32.xlu1 %v1250_v60, %s8936_s30  ;;  %1288 = vrot.lane.b32.xlu0 %v1249_v5, %s8936_s30  ;;  %v1356_v60 = vmul.f32 %v9440_v50, %v9338_v54  ;;  %v1355_v5 = vmul.f32 %v9440_v50, %v9342_v55 }
 0x1eb   : > { %v9644_v12 = vpop.permute.xlu1 %971  ;;  %v9646_v51 = vpop.permute.xlu0 %959 }
 0x1ed   : > { %1382 = vrot.lane.b32.xlu1 %v1349_v30, %s8937_s27  ;;  %1380 = vrot.lane.b32.xlu0 %v1348_v37, %s8937_s27  ;;  %v1145_v30 = vmul.f32 %v9272_v19, %v9416_v40  ;;  %v1138_v37 = vmul.f32 %v9272_v19, %v9418_v41 }
 0x1ef   : > { %v9654_v28 = vpop.permute.xlu1 %873  ;;  %v9656_v24 = vpop.permute.xlu0 %871 }
 0x1f0   : > { %11284 = vst [vmem:[#allocation18_spill] sm:$0xff] %v9654_v28 }
 0x1f1   : > { %1396 = vrot.lane.b32.xlu1 %v1356_v60, %s8937_s27  ;;  %1394 = vrot.lane.b32.xlu0 %v1355_v5, %s8937_s27  ;;  %v1251_v60 = vmul.f32 %v9428_v44, %v9272_v19  ;;  %v1244_v5 = vmul.f32 %v9430_v45, %v9272_v19 }
 0x1f3   : > { %v9664_v25 = vpop.permute.xlu1 %885  ;;  %v9666_v36 = vpop.permute.xlu0 %883 }
 0x1f4   : > { %11285 = vst [vmem:[#allocation19_spill] sm:$0xff] %v9664_v25  ;;  %11286 = vst [vmem:[#allocation20_spill] sm:$0xff] %v9666_v36 }
 0x1f5   : > { %1186 = vrot.lane.b32.xlu1 %v1145_v30, %s8935_s15  ;;  %1172 = vrot.lane.b32.xlu0 %v1138_v37, %s8935_s15  ;;  %v1357_v30 = vmul.f32 %v9440_v50, %v9272_v19  ;;  %v1350_v37 = vmul.f32 %v9442_v52, %v9272_v19 }
 0x1f7   : > { %v9674_v14 = vpop.permute.xlu1 %1059  ;;  %v9676_v28 = vpop.permute.xlu0 %1057 }
 0x1f8   : > { %11287 = vst [vmem:[#allocation21_spill] sm:$0xff] %v9674_v14  ;;  %11288 = vst [vmem:[#allocation22_spill] sm:$0xff] %v9676_v28  ;;  %v798_v28 = vsel %vm791_vm1, %v9510_v18, %v9522_v29 }
 0x1f9   : > { %1292 = vrot.lane.b32.xlu1 %v1251_v60, %s8936_s30  ;;  %1278 = vrot.lane.b32.xlu0 %v1244_v5, %s8936_s30 }
 0x1fb   : > { %v9684_v40 = vpop.permute.xlu1 %1069  ;;  %v9686_v41 = vpop.permute.xlu0 %1061 }
 0x1fc   : > { %11289 = vst [vmem:[#allocation23_spill] sm:$0xff] %v9684_v40  ;;  %11290 = vst [vmem:[#allocation24_spill] sm:$0xff] %v9686_v41 }
 0x1fd   : > { %1398 = vrot.lane.b32.xlu1 %v1357_v30, %s8937_s27  ;;  %1384 = vrot.lane.b32.xlu0 %v1350_v37, %s8937_s27 }
 0x1ff   : > { %v9694_v44 = vpop.permute.xlu1 %1073  ;;  %v9696_v45 = vpop.permute.xlu0 %1071 }
 0x200   : > { %11291 = vst [vmem:[#allocation25_spill] sm:$0xff] %v9694_v44  ;;  %11292 = vst [vmem:[#allocation26_spill] sm:$0xff] %v9696_v45 }
 0x203   : > { %v9698_v60 = vpop.permute.xlu1 %1067  ;;  %v9700_v5 = vpop.permute.xlu0 %1055 }
 0x204   : > { %11293 = vst [vmem:[#allocation27_spill] sm:$0xff] %v9698_v60  ;;  %11294 = vst [vmem:[#allocation28_spill] sm:$0xff] %v9700_v5 }
 0x207   : > { %v9702_v40 = vpop.permute.xlu1 %969  ;;  %v9704_v41 = vpop.permute.xlu0 %967 }
 0x208   : > { %11295 = vst [vmem:[#allocation29_spill] sm:$0xff] %v9702_v40  ;;  %11296 = vst [vmem:[#allocation30_spill] sm:$0xff] %v9704_v41 }
 0x20b   : > { %v9706_v50 = vpop.permute.xlu1 %981  ;;  %v9708_v25 = vpop.permute.xlu0 %979 }
 0x20c   : > { %11297 = vst [vmem:[#allocation31_spill] sm:$0xff] %v9706_v50  ;;  %11298 = vst [vmem:[#allocation32_spill] sm:$0xff] %v9708_v25 }
 0x20f   : > { %v9710_v19 = vpop.permute.xlu1 %1164  ;;  %v9712_v52 = vpop.permute.xlu0 %1162 }
 0x210   : > { %11299 = vst [vmem:[#allocation33_spill] sm:$0xff] %v9710_v19  ;;  %11300 = vst [vmem:[#allocation34_spill] sm:$0xff] %v9712_v52  ;;  %v696_v19 = vsel %vm695_vm0, %v9492_v10, %v9462_v62 }
 0x213   : > { %v9714_v30 = vpop.permute.xlu1 %1176  ;;  %v9716_v37 = vpop.permute.xlu0 %1166 }
 0x214   : > { %11301 = vst [vmem:[#allocation35_spill] sm:$0xff] %v9714_v30  ;;  %11302 = vst [vmem:[#allocation36_spill] sm:$0xff] %v9716_v37 }
 0x217   : > { %v9718_v44 = vpop.permute.xlu1 %1180  ;;  %v9720_v60 = vpop.permute.xlu0 %1178 }
 0x218   : > { %11303 = vst [vmem:[#allocation37_spill] sm:$0xff] %v9718_v44  ;;  %11304 = vst [vmem:[#allocation38_spill] sm:$0xff] %v9720_v60 }
 0x228   : > { %v9722_v5 = vpop.permute.xlu1 %1446  ;;  %v9724_v40 = vpop.permute.xlu0 %1441 }
 0x229   : > { %11305 = vst [vmem:[#allocation39_spill] sm:$0xff] %v9722_v5  ;;  %11306 = vst [vmem:[#allocation40_spill] sm:$0xff] %v9724_v40  ;;  %v623_v5 = vmul.f32 %v9294_v27, %v9452_v58  ;;  %v624_v40 = vmul.f32 %v9290_v26, %v9452_v58 }
 0x22c   : > { %v9726_v41 = vpop.permute.xlu1 %1174  ;;  %v9728_v50 = vpop.permute.xlu0 %1160 }
 0x22d   : > { %11307 = vst [vmem:[#allocation41_spill] sm:$0xff] %v9726_v41  ;;  %11308 = vst [vmem:[#allocation42_spill] sm:$0xff] %v9728_v50  ;;  %v9756_v50 = vmul.f32 %v9338_v54, %v9452_v58  ;;  %v625_v41 = vmul.f32 %v9301_v32, %v9452_v58 }
 0x22f   : > { %11315 = vst [vmem:[#allocation49_spill] sm:$0xff] %v9756_v50  ;;  %v626_v50 = vmul.f32 %v9342_v55, %v9452_v58 }
 0x230   : > { %v9730_v25 = vpop.permute.xlu1 %1065  ;;  %v9732_v45 = vpop.permute.xlu0 %1063 }
 0x231   : > { %11309 = vst [vmem:[#allocation43_spill] sm:$0xff] %v9730_v25  ;;  %11310 = vst [vmem:[#allocation44_spill] sm:$0xff] %v9732_v45  ;;  %v630_v25 = vmul.f32 %v9290_v26, %v9450_v57  ;;  %v622_v45 = vmul.f32 %v9314_v39, %v9452_v58  ;;  %v697_v26 = vsel %vm695_vm0, %v9462_v62, %v9460_v61 }
 0x232   : > { %v793_v58 = vsel %vm791_vm1, %v9502_v15, %v9500_v13 }
 0x233   : > { %v718_v14 = vadd.f32 %v696_v19, %v622_v45  ;;  %v704_v45 = vsel %vm695_vm0, %v9486_v7, %v9552_v53 }
 0x234   : > { %v9734_v52 = vpop.permute.xlu1 %1077  ;;  %v9736_v30 = vpop.permute.xlu0 %1075 }
 0x235   : > { %11311 = vst [vmem:[#allocation45_spill] sm:$0xff] %v9734_v52  ;;  %11312 = vst [vmem:[#allocation46_spill] sm:$0xff] %v9736_v30  ;;  %v629_v52 = vmul.f32 %v9294_v27, %v9450_v57  ;;  %v628_v30 = vmul.f32 %v9314_v39, %v9450_v57  ;;  %v698_v27 = vsel %vm695_vm0, %v9460_v61, %v9472_v2 }
 0x236   : > { %v702_v39 = vsel %vm695_vm0, %v9470_v1, %v9488_v8  ;;  %v631_v61 = vmul.f32 %v9301_v32, %v9450_v57 }
 0x238   : > { %v9738_v37 = vpop.permute.xlu1 %1270  ;;  %v9740_v44 = vpop.permute.xlu0 %1268 }
 0x239   : > { %11313 = vst [vmem:[#allocation47_spill] sm:$0xff] %v9738_v37  ;;  %11314 = vst [vmem:[#allocation48_spill] sm:$0xff] %v9740_v44  ;;  %v9783_v37 = vmul.f32 %v9338_v54, %v9450_v57  ;;  %v719_v54 = vadd.f32 %v697_v26, %v623_v5 }
 0x23b   : > { %11318 = vst [vmem:[#allocation52_spill] sm:$0xff] %v9783_v37  ;;  %v725_v37 = vadd.f32 %v702_v39, %v629_v52 }
 0x23c   : > { %v9760_v60 = vpop.permute.xlu1 %1282  ;;  %v9762_v44 = vpop.permute.xlu0 %1272 }
 0x23d   : > { %11316 = vst [vmem:[#allocation50_spill] sm:$0xff] %v9760_v60  ;;  %11317 = vst [vmem:[#allocation51_spill] sm:$0xff] %v9762_v44  ;;  %v703_v60 = vsel %vm695_vm0, %v9488_v8, %v9486_v7  ;;  %v701_v44 = vsel %vm695_vm0, %v9490_v9, %v9470_v1  ;;  %v794_v8 = vsel %vm791_vm1, %v9500_v13, %v9512_v20 }
 0x23e   : > { %v632_v1 = vmul.f32 %v9342_v55, %v9450_v57  ;;  %v720_v9 = vadd.f32 %v698_v27, %v624_v40  ;;  %v726_v62 = vadd.f32 %v703_v60, %v630_v25  ;;  %v724_v10 = vadd.f32 %v701_v44, %v628_v30 }
 0x23f   : > { %v799_v13 = vsel %vm791_vm1, %v9522_v29, %v9520_v23  ;;  %v815_v55 = vadd.f32 %v793_v58, %v719_v54  ;;  %v797_v40 = vsel %vm791_vm1, %v9530_v33, %v9510_v18  ;;  %v792_v25 = vsel %vm791_vm1, %v9532_v34, %v9502_v15 }
 0x240   : > { %v9798_v32 = vpop.permute.xlu1 %1286  ;;  %v9800_v36 = vpop.permute.xlu0 %1284  ;;  %v816_v57 = vadd.f32 %v794_v8, %v720_v9  ;;  %v699_v44 = vsel %vm695_vm0, %v9472_v2, %v9542_v42  ;;  %v700_v29 = vsel %vm695_vm0, %v9542_v42, %v9540_v38  ;;  %v821_v60 = vadd.f32 %v798_v28, %v725_v37 }
 0x241   : > { %v822_v5 = vadd.f32 %v799_v13, %v726_v62  ;;  %v705_v18 = vsel %vm695_vm0, %v9552_v53, %v9550_v49  ;;  %v889_v15 = vsel %vm887_vm2, %v9556_v59, %v9554_v56  ;;  %v820_v34 = vadd.f32 %v797_v40, %v724_v10  ;;  %v11319_v40 = vld [vmem:[#allocation21_spill] sm:$0xff] }
 0x242   : > { %v890_v7 = vsel %vm887_vm2, %v9554_v56, %v9566_v3  ;;  %v894_v28 = vsel %vm887_vm2, %v9564_v0, %v9576_v11  ;;  %v895_v42 = vsel %vm887_vm2, %v9576_v11, %v9574_v6  ;;  %v814_v53 = vadd.f32 %v792_v25, %v718_v14  ;;  %v11320_v25 = vld [vmem:[#allocation22_spill] sm:$0xff] }
 0x243   : > { %v721_v19 = vadd.f32 %v699_v44, %v625_v41  ;;  %v722_v52 = vadd.f32 %v700_v29, %v626_v50  ;;  %v727_v30 = vadd.f32 %v704_v45, %v631_v61  ;;  %v728_v37 = vadd.f32 %v705_v18, %v632_v1  ;;  %v11321_v45 = vld [vmem:[#allocation18_spill] sm:$0xff] }
 0x244   : > { %v9829_v2 = vpop.permute.xlu1 %1470  ;;  %v9831_v33 = vpop.permute.xlu0 %1465  ;;  %v911_v26 = vadd.f32 %v889_v15, %v815_v55  ;;  %v893_v27 = vsel %vm887_vm2, %v9584_v17, %v9564_v0  ;;  %v888_v56 = vsel %vm887_vm2, %v9586_v21, %v9556_v59  ;;  %v912_v39 = vadd.f32 %v890_v7, %v816_v57  ;;  %v11326_v7 = vld [vmem:[#allocation34_spill] sm:$0xff] }
 0x245   : > { %v917_v58 = vadd.f32 %v894_v28, %v821_v60  ;;  %v918_v8 = vadd.f32 %v895_v42, %v822_v5  ;;  %v795_v14 = vsel %vm791_vm1, %v9512_v20, %v9596_v35  ;;  %v796_v50 = vsel %vm791_vm1, %v9596_v35, %v9594_v31  ;;  %v11322_v5 = vld [vmem:[#allocation20_spill] sm:$0xff] }
 0x246   : > { %v800_v0 = vsel %vm791_vm1, %v9520_v23, %v9606_v47  ;;  %v801_v59 = vsel %vm791_vm1, %v9606_v47, %v9604_v46  ;;  %v985_v20 = vsel %vm983_vm3, %v9616_v4, %v9614_v63  ;;  %v916_v17 = vadd.f32 %v893_v27, %v820_v34  ;;  %v11325_v34 = vld [vmem:[#allocation33_spill] sm:$0xff] }
 0x247   : > { %v910_v21 = vadd.f32 %v888_v56, %v814_v53  ;;  %v986_v61 = vsel %vm983_vm3, %v9614_v63, %v9626_v22  ;;  %v817_v35 = vadd.f32 %v795_v14, %v721_v19  ;;  %v990_v23 = vsel %vm983_vm3, %v9624_v16, %v9636_v48  ;;  %v11329_v27 = vld [vmem:[#allocation25_spill] sm:$0xff]  ;;  %v11332_v14 = vld [vmem:[#allocation48_spill] sm:$0xff] }
 0x248   : > { %v9851_v11 = vpop.permute.xlu1 %1280  ;;  %v9853_v41 = vpop.permute.xlu0 %1266  ;;  %v991_v47 = vsel %vm983_vm3, %v9636_v48, %v9634_v43  ;;  %v989_v1 = vsel %vm983_vm3, %v9644_v12, %v9624_v16  ;;  %v818_v54 = vadd.f32 %v796_v50, %v722_v52  ;;  %v823_v9 = vadd.f32 %v800_v0, %v727_v30  ;;  %v11328_v52 = vld [vmem:[#allocation23_spill] sm:$0xff] }
 0x249   : > { %v824_v62 = vadd.f32 %v801_v59, %v728_v37  ;;  %v1007_v10 = vadd.f32 %v985_v20, %v911_v26  ;;  %v1008_v55 = vadd.f32 %v986_v61, %v912_v39  ;;  %v984_v57 = vsel %vm983_vm3, %v9646_v51, %v9616_v4  ;;  %v11323_v51 = vld [vmem:[#allocation19_spill] sm:$0xff]  ;;  %v11333_v61 = vld [vmem:[#allocation28_spill] sm:$0xff] }
 0x24a   : > { %v891_v48 = vsel %vm887_vm2, %v9566_v3, %v9656_v24  ;;  %v1081_v16 = vsel %vm1079_vm4, %v11320_v25, %v11319_v40  ;;  %v1013_v12 = vadd.f32 %v990_v23, %v917_v58  ;;  %v1014_v44 = vadd.f32 %v991_v47, %v918_v8  ;;  %v11324_v3 = vld [vmem:[#allocation24_spill] sm:$0xff]  ;;  %v11330_v39 = vld [vmem:[#allocation27_spill] sm:$0xff]  ;;  %v11334_v23 = vld [vmem:[#allocation30_spill] sm:$0xff] }
 0x24b   : > { %v1012_v29 = vadd.f32 %v989_v1, %v916_v17  ;;  %v892_v60 = vsel %vm887_vm2, %v9656_v24, %v11321_v45  ;;  %v896_v18 = vsel %vm887_vm2, %v9574_v6, %v11322_v5  ;;  %v897_v4 = vsel %vm887_vm2, %v11322_v5, %v11323_v51  ;;  %v11327_v24 = vld [vmem:[#allocation26_spill] sm:$0xff]  ;;  %v11331_v8 = vld [vmem:[#allocation47_spill] sm:$0xff]  ;;  %v11335_v1 = vld [vmem:[#allocation36_spill] sm:$0xff] }
 0x24c   : > { %v9879_v13 = vpop.permute.xlu1 %1170  ;;  %v9881_v63 = vpop.permute.xlu0 %1168  ;;  %v1082_v15 = vsel %vm1079_vm4, %v11319_v40, %v11324_v3  ;;  %v1190_v28 = vsel %vm1188_vm5, %v11326_v7, %v11325_v34  ;;  %v1006_v42 = vadd.f32 %v984_v57, %v910_v21  ;;  %v913_v53 = vadd.f32 %v891_v48, %v817_v35  ;;  %v11336_v48 = vld [vmem:[#allocation29_spill] sm:$0xff] }
 0x24d   : > { %v1103_v19 = vadd.f32 %v1081_v16, %v1007_v10  ;;  %v1086_v30 = vsel %vm1079_vm4, %v11328_v52, %v11327_v24  ;;  %v914_v26 = vadd.f32 %v892_v60, %v818_v54  ;;  %v1087_v56 = vsel %vm1079_vm4, %v11327_v24, %v11329_v27  ;;  %v11337_v16 = vld [vmem:[#allocation32_spill] sm:$0xff]  ;;  %v11339_v60 = vld [vmem:[#allocation51_spill] sm:$0xff] }
 0x24e   : > { %v1085_v58 = vsel %vm1079_vm4, %v11330_v39, %v11328_v52  ;;  %v1296_v50 = vsel %vm1294_vm6, %v11332_v14, %v11331_v8  ;;  %v919_v0 = vadd.f32 %v896_v18, %v823_v9  ;;  %v920_v59 = vadd.f32 %v897_v4, %v824_v62 }
 0x24f   : > { %v1104_v20 = vadd.f32 %v1082_v15, %v1008_v55  ;;  %v1214_v17 = vadd.f32 %v1190_v28, %v1103_v19  ;;  %v1109_v21 = vadd.f32 %v1086_v30, %v1013_v12  ;;  %v1080_v35 = vsel %vm1079_vm4, %v11333_v61, %v11320_v25  ;;  %v11338_v12 = vld [vmem:[#allocation31_spill] sm:$0xff]  ;;  %v11340_v28 = vld [vmem:[#allocation38_spill] sm:$0xff]  ;;  %v11343_v30 = vld [vmem:[#allocation41_spill] sm:$0xff] }
 0x250   : > { %v9910_v6 = vpop.permute.xlu1 %1184  ;;  %v9912_v37 = vpop.permute.xlu0 %1182  ;;  %v987_v47 = vsel %vm983_vm3, %v9626_v22, %v11334_v23  ;;  %v1191_v54 = vsel %vm1188_vm5, %v11325_v34, %v11335_v1  ;;  %v1110_v10 = vadd.f32 %v1087_v56, %v1014_v44  ;;  %v1108_v57 = vadd.f32 %v1085_v58, %v1012_v29  ;;  %v11341_v19 = vld [vmem:[#allocation35_spill] sm:$0xff] }
 0x251   : > { %v988_v9 = vsel %vm983_vm3, %v11334_v23, %v11336_v48  ;;  %v1320_v62 = vadd.f32 %v1296_v50, %v1214_v17  ;;  %v992_v25 = vsel %vm983_vm3, %v9634_v43, %v11337_v16  ;;  %v993_v22 = vsel %vm983_vm3, %v11337_v16, %v11338_v12  ;;  %v11342_v43 = vld [vmem:[#allocation37_spill] sm:$0xff] }
 0x252   : > { %v1297_v44 = vsel %vm1294_vm6, %v11331_v8, %v11339_v60  ;;  %v1102_v5 = vadd.f32 %v1080_v35, %v1006_v42  ;;  %v1009_v18 = vadd.f32 %v987_v47, %v913_v53  ;;  %v1215_v4 = vadd.f32 %v1191_v54, %v1104_v20  ;;  %v11344_v42 = vld [vmem:[#allocation42_spill] sm:$0xff]  ;;  %v11346_v35 = vld [vmem:[#allocation40_spill] sm:$0xff] }
 0x253   : > { %v1010_v34 = vadd.f32 %v988_v9, %v914_v26  ;;  %v1196_v24 = vsel %vm1188_vm5, %v11341_v19, %v11340_v28  ;;  %v1197_v52 = vsel %vm1188_vm5, %v11340_v28, %v11342_v43  ;;  %v1195_v56 = vsel %vm1188_vm5, %v11343_v30, %v11341_v19  ;;  %v11345_v20 = vld [vmem:[#allocation50_spill] sm:$0xff]  ;;  %v11350_v30 = vld [vmem:[#allocation45_spill] sm:$0xff] }
 0x254   : > { %v1377_v55 = vpop.permute.xlu1 %1376  ;;  %v1375_v40 = vpop.permute.xlu0 %1374  ;;  %v1015_v39 = vadd.f32 %v992_v25, %v919_v0  ;;  %v9954_v58 = vadd.f32 %v993_v22, %v920_v59  ;;  %v1189_v53 = vsel %vm1188_vm5, %v11344_v42, %v11326_v7  ;;  %v1321_v26 = vadd.f32 %v1297_v44, %v1215_v4  ;;  %v11348_v25 = vld [vmem:[#allocation43_spill] sm:$0xff]  ;;  %v11349_v44 = vld [vmem:[#allocation46_spill] sm:$0xff] }
 0x255   : > { %v1402_v29 = vsel %vm1400_vm7, %v1375_v40, %v1377_v55  ;;  %v1302_v17 = vsel %vm1294_vm6, %v11345_v20, %v9800_v36  ;;  %v1303_v61 = vsel %vm1294_vm6, %v9800_v36, %v9798_v32  ;;  %v1220_v23 = vadd.f32 %v1196_v24, %v1109_v21 }
 0x256   : > { %v1426_v15 = vadd.f32 %v1402_v29, %v1320_v62  ;;  %v1221_v47 = vadd.f32 %v1197_v52, %v1110_v10  ;;  %v1219_v7 = vadd.f32 %v1195_v56, %v1108_v57  ;;  %v1213_v9 = vadd.f32 %v1189_v53, %v1102_v5  ;;  %v11347_v62 = vld [vmem:[#allocation44_spill] sm:$0xff] }
 0x257   : > { %v1083_v16 = vsel %vm1079_vm4, %v11324_v3, %v11347_v62  ;;  %v1084_v22 = vsel %vm1079_vm4, %v11347_v62, %v11348_v25  ;;  %v1088_v36 = vsel %vm1079_vm4, %v11329_v27, %v11349_v44  ;;  %v1326_v29 = vadd.f32 %v1302_v17, %v1220_v23 }
 0x258   : > { %v1389_v8 = vpop.permute.xlu1 %1388  ;;  %v9959_v50 = vpop.permute.xlu0 %1378  ;;  %v1450_v0 = vmul.f32 %v11346_v35, %v1426_v15  ;;  %v1327_v4 = vadd.f32 %v1303_v61, %v1221_v47  ;;  %v1301_v21 = vsel %vm1294_vm6, %v9851_v11, %v11345_v20  ;;  %v1295_v3 = vsel %vm1294_vm6, %v9853_v41, %v11332_v14 }
 0x259   : > { %v1403_v59 = vsel %vm1400_vm7, %v1377_v55, %v9959_v50  ;;  %v1105_v28 = vadd.f32 %v1083_v16, %v1009_v18  ;;  %v1106_v52 = vadd.f32 %v1084_v22, %v1010_v34  ;;  %v1089_v56 = vsel %vm1079_vm4, %v11349_v44, %v11350_v30 }
 0x25a   : > { %v1427_v54 = vadd.f32 %v1403_v59, %v1321_v26  ;;  %v1474_v5 = vadd.f32 %v9831_v33, %v1450_v0  ;;  %v1111_v42 = vadd.f32 %v1088_v36, %v1015_v39  ;;  %v1325_v41 = vadd.f32 %v1301_v21, %v1219_v7  ;;  %v11351_v26 = vld [vmem:[#allocation39_spill] sm:$0xff] }
 0x25b   : > { %v1319_v14 = vadd.f32 %v1295_v3, %v1213_v9  ;;  %v1192_v0 = vsel %vm1188_vm5, %v11335_v1, %v9881_v63  ;;  %v1193_v44 = vsel %vm1188_vm5, %v9881_v63, %v9879_v13 }
 0x25c   : > { %v1451_v10 = vmul.f32 %v11346_v35, %v1427_v54  ;;  %v9983_v57 = vpop.permute.xlu1 %1392  ;;  %v1391_v55 = vpop.permute.xlu0 %1390  ;;  %v1486_v34 = vmax.f32 %v1474_v5, 0.0  ;;  %v1216_v36 = vadd.f32 %v1192_v0, %v1105_v28  ;;  %v1217_v28 = vadd.f32 %v1193_v44, %v1106_v52 }
 0x25d   : > { %v1408_v15 = vsel %vm1400_vm7, %v1389_v8, %v1391_v55  ;;  %v1409_v27 = vsel %vm1400_vm7, %v1391_v55, %v9983_v57 }
 0x25e   : > { %v9993_v19 = vadd.f32 %v9831_v33, %v1451_v10  ;;  %v1432_v11 = vadd.f32 %v1408_v15, %v1326_v29  ;;  %v1433_v24 = vadd.f32 %v1409_v27, %v1327_v4  ;;  %v1198_v29 = vsel %vm1188_vm5, %v11342_v43, %v9912_v37 }
 0x25f   : > { %v1112_v43 = vadd.f32 %v1089_v56, %v9954_v58 }
 0x260   : > { %v1487_v53 = vmax.f32 %v9993_v19, 0.0  ;;  %v1456_v20 = vmul.f32 %v11351_v26, %v1432_v11  ;;  %v1457_v17 = vmul.f32 %v11351_v26, %v1433_v24  ;;  %v1387_v18 = vpop.permute.xlu1 %1386  ;;  %v1373_v61 = vpop.permute.xlu0 %1372  ;;  %v1199_v11 = vsel %vm1188_vm5, %v9912_v37, %v9910_v6 }
 0x261   : > { %v1407_v59 = vsel %vm1400_vm7, %v1387_v18, %v1389_v8  ;;  %v1401_v23 = vsel %vm1400_vm7, %v1373_v61, %v1375_v40  ;;  %v1222_v24 = vadd.f32 %v1198_v29, %v1111_v42  ;;  %v1223_v56 = vadd.f32 %v1199_v11, %v1112_v43 }
 0x262   : > { %v1480_v39 = vadd.f32 %v9829_v2, %v1456_v20  ;;  %v10008_v47 = vadd.f32 %v9829_v2, %v1457_v17  ;;  %v1431_v7 = vadd.f32 %v1407_v59, %v1325_v41  ;;  %v1425_v54 = vadd.f32 %v1401_v23, %v1319_v14  ;;  %v11352_v59 = vld [vmem:[#allocation49_spill] sm:$0xff] }
 0x263   : > { %v10012_v9 = vpack.i.bf16 %v1487_v53, %v1486_v34  ;;  %v723_v23 = vadd.f32 %v9540_v38, %v11352_v59 }
 0x264   : > { %v1492_v62 = vmax.f32 %v1480_v39, 0.0  ;;  %v1493_v16 = vmax.f32 %v10008_v47, 0.0  ;;  %v1455_v1 = vmul.f32 %v11351_v26, %v1431_v7  ;;  %v1449_v8 = vmul.f32 %v11346_v35, %v1425_v54  ;;  %v10017_v22 = vpop.permute.xlu1 %1276  ;;  %v1275_v40 = vpop.permute.xlu0 %1274  ;;  %v11353_v39 = vld [vmem:[#allocation52_spill] sm:$0xff] }
 0x265   : > { %8229 = vrot.lane.b32.xlu0 %v10012_v9, %s8930_s17  ;;  %v1298_v10 = vsel %vm1294_vm6, %v11339_v60, %v1275_v40  ;;  %v1299_v55 = vsel %vm1294_vm6, %v1275_v40, %v10017_v22  ;;  %v729_v7 = vadd.f32 %v9550_v49, %v11353_v39 }
 0x266   : > { %v1479_v4 = vadd.f32 %v9829_v2, %v1455_v1  ;;  %v1473_v21 = vadd.f32 %v9831_v33, %v1449_v8  ;;  %v10035_v63 = vpack.i.bf16 %v1493_v16, %v1492_v62  ;;  %v1322_v60 = vadd.f32 %v1298_v10, %v1216_v36 }
 0x267   : > { %v1323_v14 = vadd.f32 %v1299_v55, %v1217_v28  ;;  %v10054_v52 = vpack.c.bf16 %v1492_v62, %v1486_v34  ;;  %v819_v62 = vadd.f32 %v9594_v31, %v723_v23  ;;  %v825_v44 = vadd.f32 %v9604_v46, %v729_v7 }
 0x268   : > { %v1491_v3 = vmax.f32 %v1479_v4, 0.0  ;;  %v1485_v5 = vmax.f32 %v1473_v21, 0.0  ;;  %v1291_v15 = vpop.permute.xlu1 %1290  ;;  %v1289_v27 = vpop.permute.xlu0 %1288 }
 0x269   : > { %v1304_v20 = vsel %vm1294_vm6, %v9798_v32, %v1289_v27  ;;  %v1305_v17 = vsel %vm1294_vm6, %v1289_v27, %v1291_v15  ;;  %v915_v10 = vadd.f32 %v11321_v45, %v819_v62  ;;  %v921_v55 = vadd.f32 %v11323_v51, %v825_v44  ;;  %v3914_v44 = vld [vmem:[#allocation9 + $0x8] sm:$0x3f] }
 0x26a   : > { %v10041_v41 = vpack.i.bf16 %v1491_v3, %v1485_v5  ;;  %v10056_v32 = vpack.c.bf16 %v1491_v3, %v1485_v5  ;;  %v1328_v54 = vadd.f32 %v1304_v20, %v1222_v24  ;;  %v1329_v1 = vadd.f32 %v1305_v17, %v1223_v56 }
 0x26b   : > { %v1011_v43 = vadd.f32 %v11336_v48, %v915_v10  ;;  %v1017_v28 = vadd.f32 %v11338_v12, %v921_v55 }
 0x26c   : > { %v10046_v18 = vpop.permute.xlu1 %1382  ;;  %v1381_v61 = vpop.permute.xlu0 %1380  ;;  %8239 = vrot.lane.b32.xlu0 %v10041_v41, %s8930_s17 }
 0x26d   : > { %v1404_v58 = vsel %vm1400_vm7, %v9959_v50, %v1381_v61  ;;  %v1405_v37 = vsel %vm1400_vm7, %v1381_v61, %v10046_v18 }
 0x26e   : > { %v1428_v42 = vadd.f32 %v1404_v58, %v1322_v60  ;;  %v1429_v0 = vadd.f32 %v1405_v37, %v1323_v14  ;;  %v1107_v60 = vadd.f32 %v11348_v25, %v1011_v43  ;;  %v1113_v14 = vadd.f32 %v11350_v30, %v1017_v28 }
 0x270   : > { %v1452_v50 = vmul.f32 %v11346_v35, %v1428_v42  ;;  %v1453_v8 = vmul.f32 %v11346_v35, %v1429_v0  ;;  %v1397_v40 = vpop.permute.xlu1 %1396  ;;  %v1395_v34 = vpop.permute.xlu0 %1394  ;;  %v7735_v0 = vpack.c.bf16 %v1493_v16, %v1487_v53 }
 0x271   : > { %v1410_v36 = vsel %vm1400_vm7, %v9983_v57, %v1395_v34  ;;  %v1411_v38 = vsel %vm1400_vm7, %v1395_v34, %v1397_v40  ;;  %v3881_v34 = vld [vmem:[%s11214_s5] sm:$0xff] }
 0x272   : > { %v1476_v29 = vadd.f32 %v9831_v33, %v1452_v50  ;;  %v1477_v49 = vadd.f32 %v9831_v33, %v1453_v8  ;;  %v1434_v4 = vadd.f32 %v1410_v36, %v1328_v54  ;;  %v1435_v21 = vadd.f32 %v1411_v38, %v1329_v1 }
 0x274   : > { %v1488_v3 = vmax.f32 %v1476_v29, 0.0  ;;  %v10073_v5 = vmax.f32 %v1477_v49, 0.0  ;;  %v1458_v31 = vmul.f32 %v11351_v26, %v1434_v4  ;;  %v1459_v46 = vmul.f32 %v11351_v26, %v1435_v21  ;;  %v1187_v57 = vpop.permute.xlu1 %1186  ;;  %v1173_v27 = vpop.permute.xlu0 %1172 }
 0x275   : > { %v1200_v45 = vsel %vm1188_vm5, %v9910_v6, %v1187_v57  ;;  %v1194_v51 = vsel %vm1188_vm5, %v9879_v13, %v1173_v27 }
 0x276   : > { %v1482_v11 = vadd.f32 %v9829_v2, %v1458_v31  ;;  %v1483_v24 = vadd.f32 %v9829_v2, %v1459_v46  ;;  %v10088_v20 = vpack.i.bf16 %v10073_v5, %v1488_v3  ;;  %v1224_v58 = vadd.f32 %v1200_v45, %v1113_v14 }
 0x277   : > { %v1218_v37 = vadd.f32 %v1194_v51, %v1107_v60 }
 0x278   : > { %v1494_v48 = vmax.f32 %v1482_v11, 0.0  ;;  %v10090_v17 = vmax.f32 %v1483_v24, 0.0  ;;  %v1293_v12 = vpop.permute.xlu1 %1292  ;;  %v1279_v61 = vpop.permute.xlu0 %1278 }
 0x279   : > { %v1306_v56 = vsel %vm1294_vm6, %v1291_v15, %v1293_v12  ;;  %v1300_v6 = vsel %vm1294_vm6, %v10017_v22, %v1279_v61 }
 0x27a   : > { %v7733_v13 = vpack.c.bf16 %v1494_v48, %v1488_v3  ;;  %v10096_v25 = vpack.i.bf16 %v10090_v17, %v1494_v48  ;;  %v1330_v30 = vadd.f32 %v1306_v56, %v1224_v58  ;;  %v1324_v42 = vadd.f32 %v1300_v6, %v1218_v37 }
 0x27b   : > { %v10102_v59 = vpack.i.bf16 %v1494_v48, %v1488_v3  ;;  %v7739_v19 = vpack.c.bf16 %v10090_v17, %v10073_v5 }
 0x27c   : > { %v1399_v23 = vpop.permute.xlu1 %1398  ;;  %7734 = vmatprep.subr.bf16.mxu1 %v7733_v13  ;;  %v1385_v39 = vpop.permute.xlu0 %1384  ;;  %8249 = vrot.lane.b32.xlu0 %v10096_v25, %s8930_s17 }
 0x27d   : > { %v1412_v22 = vsel %vm1400_vm7, %v1397_v40, %v1399_v23  ;;  %v1406_v15 = vsel %vm1400_vm7, %v10046_v18, %v1385_v39  ;;  %7736 = vmatpush1.bf16.msra.mxu1 %v7735_v0  ;;  %v10146_v40 = vld [vmem:[#allocation4] sm:$0xff] }
 0x27e   : > { %v1436_v7 = vadd.f32 %v1412_v22, %v1330_v30  ;;  %v1430_v47 = vadd.f32 %v1406_v15, %v1324_v42  ;;  %v1499_v30 = vld [vmem:[#allocation4 + $0x8] sm:$0xff] }
 0x280   : > { %v1460_v53 = vmul.f32 %v11351_v26, %v1436_v7  ;;  %v1454_v16 = vmul.f32 %v11346_v35, %v1430_v47  ;;  %8254 = vrot.lane.b32.xlu0 %v10012_v9, %s8931_s14 }
 0x282   : > { %v1484_v54 = vadd.f32 %v9829_v2, %v1460_v53  ;;  %v1478_v1 = vadd.f32 %v9831_v33, %v1454_v16  ;;  %v8938_v2 = vmov 0.0  }
 0x283   : > { %1626 = vmatprep.mubr.f32.mxu0 %v8938_v2  ;;  %1913 = vmatprep.mubr.f32.mxu1 %v8938_v2 }
 0x284   : > { %v10117_v50 = vmax.f32 %v1484_v54, 0.0  ;;  %v10119_v18 = vmax.f32 %v1478_v1, 0.0  ;;  %8264 = vrot.lane.b32.xlu0 %v10041_v41, %s8931_s14  ;;  %7449 = vmatmul.mubr.msk.f32.vlgmr.msra.gmra.mrb[0].mxu1 %vm1558_vm8, %v10146_v40 }
 0x285   : > { %2177 = vmatprep.mubr.f32.mxu1 %v8938_v2 }
 0x286   : > { %v8223_v8 = vpack.i.bf16 %v10117_v50, %v10119_v18  ;;  %v8273_v35 = vpack.i.bf16 %v10117_v50, %v10090_v17  ;;  %v8268_v26 = vpack.i.bf16 %v10119_v18, %v10073_v5  ;;  %v7737_v33 = vpack.c.bf16 %v10117_v50, %v10119_v18 }
 0x288   : > { %8224 = vrot.lane.b32.xlu1 %v8223_v8, %s8930_s17  ;;  %8274 = vrot.lane.b32.xlu0 %v8273_v35, %s8931_s14 }
 0x28c   : > { %8234 = vrot.lane.b32.xlu1 %v10035_v63, %s8930_s17  ;;  %8284 = vrot.lane.b32.xlu0 %v10012_v9, %s8932_s24 }
 0x290   : > { %8244 = vrot.lane.b32.xlu1 %v10088_v20, %s8930_s17  ;;  %8294 = vrot.lane.b32.xlu0 %v10041_v41, %s8932_s24 }
 0x294   : > { %8259 = vrot.lane.b32.xlu1 %v10035_v63, %s8931_s14  ;;  %8304 = vrot.lane.b32.xlu0 %v8273_v35, %s8932_s24 }
 0x298   : > { %8269 = vrot.lane.b32.xlu1 %v8268_v26, %s8931_s14  ;;  %8314 = vrot.lane.b32.xlu0 %v10012_v9, %s8933_s22 }
 0x29c   : > { %8279 = vrot.lane.b32.xlu1 %v10102_v59, %s8931_s14  ;;  %8324 = vrot.lane.b32.xlu0 %v10041_v41, %s8933_s22 }
 0x2a0   : > { %8289 = vrot.lane.b32.xlu1 %v10035_v63, %s8932_s24  ;;  %8334 = vrot.lane.b32.xlu0 %v8273_v35, %s8933_s22 }
 0x2a4   : > { %8299 = vrot.lane.b32.xlu1 %v8268_v26, %s8932_s24  ;;  %8344 = vrot.lane.b32.xlu0 %v10012_v9, %s8934_s12 }
 0x2a8   : > { %8309 = vrot.lane.b32.xlu1 %v10102_v59, %s8932_s24  ;;  %8354 = vrot.lane.b32.xlu0 %v10041_v41, %s8934_s12 }
 0x2ac   : > { %8319 = vrot.lane.b32.xlu1 %v10035_v63, %s8933_s22  ;;  %8364 = vrot.lane.b32.xlu0 %v8273_v35, %s8934_s12 }
 0x2b0   : > { %8329 = vrot.lane.b32.xlu1 %v8268_v26, %s8933_s22  ;;  %8374 = vrot.lane.b32.xlu0 %v10012_v9, %s8935_s15 }
 0x2b4   : > { %8339 = vrot.lane.b32.xlu1 %v10102_v59, %s8933_s22  ;;  %8384 = vrot.lane.b32.xlu0 %v10041_v41, %s8935_s15  ;;  %s7606_s22 = sshll.u32 %s11371_s19, 4 }
 0x2b5   : > { %s577_s23 = scalar_lea.vmem %s11368_s21, %s7606_s22 }
 0x2b8   : > { %8349 = vrot.lane.b32.xlu1 %v10035_v63, %s8934_s12  ;;  %8394 = vrot.lane.b32.xlu0 %v8273_v35, %s8935_s15 }
 0x2bc   : > { %8359 = vrot.lane.b32.xlu1 %v8268_v26, %s8934_s12  ;;  %8404 = vrot.lane.b32.xlu0 %v10012_v9, %s8936_s30 }
 0x2c0   : > { %8369 = vrot.lane.b32.xlu1 %v10102_v59, %s8934_s12  ;;  %8414 = vrot.lane.b32.xlu0 %v10041_v41, %s8936_s30 }
 0x2c4   : > { %8379 = vrot.lane.b32.xlu1 %v10035_v63, %s8935_s15  ;;  %8424 = vrot.lane.b32.xlu0 %v8273_v35, %s8936_s30 }
 0x2c8   : > { %8389 = vrot.lane.b32.xlu1 %v8268_v26, %s8935_s15  ;;  %8434 = vrot.lane.b32.xlu0 %v10012_v9, %s8937_s27  ;;  %v3913_v9 = vld [vmem:[#allocation9] sm:$0xff] }
 0x2cc   : > { %8399 = vrot.lane.b32.xlu1 %v10102_v59, %s8935_s15  ;;  %8444 = vrot.lane.b32.xlu0 %v10041_v41, %s8937_s27  ;;  %v3893_v41 = vld [vmem:[#allocation6] sm:$0xff] }
 0x2d0   : > { %8409 = vrot.lane.b32.xlu1 %v10035_v63, %s8936_s30  ;;  %8454 = vrot.lane.b32.xlu0 %v10096_v25, %s8937_s27 }
 0x2d4   : > { %8419 = vrot.lane.b32.xlu1 %v8268_v26, %s8936_s30  ;;  %3884 = vperm.xlu0 %8221, %v3881_v34  }
 0x2d7   : > { %v8230_v62 = vpop.permute.xlu0 %8229 }
 0x2d8   : > { %8429 = vrot.lane.b32.xlu1 %v10102_v59, %s8936_s30  ;;  %3917 = vperm.xlu0 %8221, %v3913_v9   ;;  %v8231_v10 = vunpack.i.l.bf16 %v8230_v62 }
 0x2dc   : > { %8439 = vrot.lane.b32.xlu1 %v10035_v63, %s8937_s27  ;;  %v8232_v63 = vunpack.i.h.bf16 %v8230_v62 }
 0x2de   : > { %v8240_v36 = vpop.permute.xlu0 %8239  ;;  %v1537_v43 = vsel %vm695_vm0, %v8231_v10, %v8232_v63 }
 0x2df   : > { %v8241_v55 = vunpack.i.l.bf16 %v8240_v36  ;;  %v8242_v46 = vunpack.i.h.bf16 %v8240_v36 }
 0x2e0   : > { %8449 = vrot.lane.b32.xlu1 %v10088_v20, %s8937_s27 }
 0x2e1   : > { %v1536_v28 = vsel %vm695_vm0, %v8241_v55, %v8231_v10 }
 0x2e4   : > { %8459 = vrot.lane.b32.xlu1 %v8223_v8, %s8937_s27 }
 0x2e8   : > { %3896 = vperm.xlu1 %8222, %v3893_v41  }
 0x2ec   : > { %3922 = vperm.xlu1 %8222, %v3914_v44  }
 0x2ee   : > { %v8250_v38 = vpop.permute.xlu0 %8249 }
 0x2ef   : > { %v8252_v11 = vunpack.i.h.bf16 %v8250_v38  ;;  %v8251_v24 = vunpack.i.l.bf16 %v8250_v38 }
 0x2f1   : > { %v1544_v25 = vsel %vm695_vm0, %v8251_v24, %v8252_v11 }
 0x2f2   : > { %v10213_v29 = vpop.permute.xlu0 %8254 }
 0x2f3   : > { %v8257_v35 = vunpack.i.h.bf16 %v10213_v29  ;;  %v8256_v26 = vunpack.i.l.bf16 %v10213_v29 }
 0x2f6   : > { %v10215_v49 = vpop.permute.xlu0 %8264 }
 0x2f7   : > { %v8267_v38 = vunpack.i.h.bf16 %v10215_v49  ;;  %v8266_v29 = vunpack.i.l.bf16 %v10215_v49 }
 0x2f9   : > { %v2017_v50 = vsel %vm791_vm1, %v8266_v29, %v8256_v26 }
 0x2fa   : > { %v8225_v4 = vpop.permute.xlu1 %8224  ;;  %v10217_v21 = vpop.permute.xlu0 %8274 }
 0x2fb   : > { %v8227_v58 = vunpack.i.h.bf16 %v8225_v4  ;;  %v8226_v37 = vunpack.i.l.bf16 %v8225_v4  ;;  %v8276_v41 = vunpack.i.l.bf16 %v10217_v21  ;;  %v8277_v18 = vunpack.i.h.bf16 %v10217_v21  ;;  %v1992_v21 = vld [vmem:[#allocation4 + $0x10] sm:$0xff] }
 0x2fd   : > { %v7725_v22 = vpack.c.bf16 %v8227_v58, %v8226_v37  ;;  %v1545_v15 = vsel %vm695_vm0, %v8252_v11, %v8227_v58 }
 0x2fe   : > { %v8235_v3 = vpop.permute.xlu1 %8234  ;;  %v10219_v31 = vpop.permute.xlu0 %8284 }
 0x2ff   : > { %v8237_v57 = vunpack.i.h.bf16 %v8235_v3  ;;  %v8236_v27 = vunpack.i.l.bf16 %v8235_v3  ;;  %v2018_v3 = vsel %vm791_vm1, %v8256_v26, %v8257_v35  ;;  %v8286_v11 = vunpack.i.l.bf16 %v10219_v31 }
 0x301   : > { %v1542_v45 = vsel %vm695_vm0, %v8236_v27, %v8237_v57  ;;  %v1541_v51 = vsel %vm695_vm0, %v8242_v46, %v8236_v27  ;;  %v1543_v56 = vsel %vm695_vm0, %v8237_v57, %v8251_v24 }
 0x302   : > { %v8245_v60 = vpop.permute.xlu1 %8244  ;;  %v10225_v14 = vpop.permute.xlu0 %8294  ;;  %v7717_v20 = vpack.c.bf16 %v1542_v45, %v1537_v43  ;;  %v7719_v48 = vpack.c.bf16 %v1541_v51, %v1536_v28 }
 0x303   : > { %v8247_v12 = vunpack.i.h.bf16 %v8245_v60  ;;  %v8246_v61 = vunpack.i.l.bf16 %v8245_v60  ;;  %v2026_v60 = vsel %vm791_vm1, %v8276_v41, %v8277_v18 }
 0x304   : > { %7718 = vmatprep.subr.bf16.mxu0 %v7717_v20  ;;  %v8297_v20 = vunpack.i.h.bf16 %v10225_v14 }
 0x305   : > { %v1538_v6 = vsel %vm695_vm0, %v8232_v63, %v8246_v61  ;;  %7720 = vmatpush1.bf16.msra.mxu0 %v7719_v48  ;;  %v1539_v13 = vsel %vm695_vm0, %v8246_v61, %v8247_v12  ;;  %v1540_v39 = vsel %vm695_vm0, %v8247_v12, %v8226_v37 }
 0x306   : > { %v8260_v42 = vpop.permute.xlu1 %8259  ;;  %v10231_v0 = vpop.permute.xlu0 %8304  ;;  %v7721_v59 = vpack.c.bf16 %v1544_v25, %v1539_v13  ;;  %v7723_v23 = vpack.c.bf16 %v1543_v56, %v1538_v6  ;;  %v7727_v53 = vpack.c.bf16 %v1545_v15, %v1540_v39 }
 0x307   : > { %v8262_v16 = vunpack.i.h.bf16 %v8260_v42  ;;  %v8261_v54 = vunpack.i.l.bf16 %v8260_v42  ;;  %v8307_v42 = vunpack.i.h.bf16 %v10231_v0 }
 0x308   : > { %7722 = vmatprep.subr.bf16.mxu0 %v7721_v59  ;;  %7445 = vmatmul.mubr.msk.f32.vlgmr.msra.gmra.mrb[0].mxu0 %vm1558_vm8, %v1499_v30 }
 0x309   : > { %7724 = vmatpush1.bf16.msra.mxu0 %v7723_v23  ;;  %1697 = vmatprep.mubr.f32.mxu0 %v8938_v2  ;;  %v2022_v46 = vsel %vm791_vm1, %v8267_v38, %v8261_v54 }
 0x30a   : > { %v8270_v7 = vpop.permute.xlu1 %8269  ;;  %v10237_v47 = vpop.permute.xlu0 %8314  ;;  %7726 = vmatprep.subr.bf16.mxu0 %v7725_v22  ;;  %v7743_v51 = vpack.c.bf16 %v2022_v46, %v2017_v50 }
 0x30b   : > { %v8271_v62 = vunpack.i.l.bf16 %v8270_v7  ;;  %v8272_v57 = vunpack.i.h.bf16 %v8270_v7  ;;  %v8317_v39 = vunpack.i.h.bf16 %v10237_v47  ;;  %v8316_v22 = vunpack.i.l.bf16 %v10237_v47  ;;  %v2262_v47 = vld [vmem:[#allocation4 + $0x18] sm:$0xff] }
 0x30c   : > { %7446 = vmatmul.mubr.msk.f32.vlgmr.msra.gmra.mrb[2].mxu0 %vm1558_vm8, %v1499_v30 }
 0x30d   : > { %7728 = vmatpush1.bf16.msra.mxu0 %v7727_v53  ;;  %1768 = vmatprep.mubr.f32.mxu0 %v8938_v2  ;;  %v2021_v5 = vsel %vm791_vm1, %v8271_v62, %v8272_v57  ;;  %v7749_v17 = vpack.c.bf16 %v8277_v18, %v8272_v57 }
 0x30e   : > { %v8280_v1 = vpop.permute.xlu1 %8279  ;;  %v10241_v8 = vpop.permute.xlu0 %8324  ;;  %7730 = vmatprep.subr.bf16.mxu0 %v10054_v52  ;;  %v2023_v52 = vsel %vm791_vm1, %v8261_v54, %v8262_v16  ;;  %v7751_v56 = vpack.c.bf16 %v2026_v60, %v2021_v5 }
 0x30f   : > { %v8282_v34 = vunpack.i.h.bf16 %v8280_v1  ;;  %v8281_v9 = vunpack.i.l.bf16 %v8280_v1  ;;  %v7741_v49 = vpack.c.bf16 %v2023_v52, %v2018_v3 }
 0x310   : > { %7447 = vmatmul.mubr.msk.f32.vlgmr.msra.gmra.mrb[4].mxu0 %vm1558_vm8, %v1499_v30 }
 0x311   : > { %v2019_v44 = vsel %vm791_vm1, %v8257_v35, %v8281_v9  ;;  %v2024_v36 = vsel %vm791_vm1, %v8262_v16, %v8282_v34  ;;  %7732 = vmatpush1.bf16.msra.mxu0 %v10056_v32  ;;  %1842 = vmatprep.mubr.f32.mxu0 %v8938_v2  ;;  %v2020_v10 = vsel %vm791_vm1, %v8281_v9, %v8271_v62 }
 0x312   : > { %v8290_v4 = vpop.permute.xlu1 %8289  ;;  %v10255_v63 = vpop.permute.xlu0 %8334  ;;  %7738 = vmatprep.subr.bf16.mxu0 %v7737_v33  ;;  %v2025_v55 = vsel %vm791_vm1, %v8282_v34, %v8276_v41  ;;  %v7747_v32 = vpack.c.bf16 %v2024_v36, %v2019_v44  ;;  %v8287_v33 = vunpack.i.h.bf16 %v10219_v31  ;;  %v8327_v44 = vunpack.i.h.bf16 %v10241_v8 }
 0x313   : > { %v7745_v27 = vpack.c.bf16 %v2025_v55, %v2020_v10  ;;  %v8292_v43 = vunpack.i.h.bf16 %v8290_v4  ;;  %v8291_v28 = vunpack.i.l.bf16 %v8290_v4  ;;  %v8326_v36 = vunpack.i.l.bf16 %v10241_v8 }
 0x314   : > { %7448 = vmatmul.mubr.msk.f32.vlgmr.msra.gmra.mrb[0].mxu0 %vm1558_vm8, %v10146_v40  ;;  %v2288_v61 = vsel %vm887_vm2, %v8286_v11, %v8287_v33  ;;  %v2558_v4 = vsel %vm983_vm3, %v8316_v22, %v8317_v39  ;;  %v8337_v46 = vunpack.i.h.bf16 %v10255_v63  ;;  %v8336_v57 = vunpack.i.l.bf16 %v10255_v63 }
 0x315   : > { %7740 = vmatpush1.bf16.msra.mxu0 %v7739_v19  ;;  %1984 = vmatprep.mubr.f32.mxu0 %v8938_v2  ;;  %v8296_v19 = vunpack.i.l.bf16 %v10225_v14  ;;  %v2293_v31 = vsel %vm887_vm2, %v8291_v28, %v8292_v43  ;;  %v2292_v6 = vsel %vm887_vm2, %v8297_v20, %v8291_v28  ;;  %v2557_v8 = vsel %vm983_vm3, %v8326_v36, %v8316_v22 }
 0x316   : > { %7746 = vmatprep.subr.bf16.mxu1 %v7745_v27  ;;  %v8300_v24 = vpop.permute.xlu1 %8299  ;;  %v10274_v45 = vpop.permute.xlu0 %8344  ;;  %7742 = vmatprep.subr.bf16.mxu0 %v7741_v49  ;;  %v7753_v14 = vpack.c.bf16 %v2293_v31, %v2288_v61 }
 0x317   : > { %7748 = vmatpush1.bf16.msra.mxu1 %v7747_v32  ;;  %v8302_v13 = vunpack.i.h.bf16 %v8300_v24  ;;  %v8301_v25 = vunpack.i.l.bf16 %v8300_v24  ;;  %v2287_v30 = vsel %vm887_vm2, %v8296_v19, %v8286_v11  ;;  %v2566_v19 = vsel %vm983_vm3, %v8336_v57, %v8337_v46 }
 0x318   : > { %7450 = vmatmul.mubr.msk.f32.vlgmr.msra.gmra.mrb[4].mxu0 %vm1558_vm8, %v10146_v40  ;;  %v8306_v40 = vunpack.i.l.bf16 %v10231_v0  ;;  %v7755_v35 = vpack.c.bf16 %v2292_v6, %v2287_v30 }
 0x319   : > { %7744 = vmatpush1.bf16.msra.mxu0 %v7743_v51  ;;  %2106 = vmatprep.mubr.f32.mxu0 %v8938_v2  ;;  %v2291_v26 = vsel %vm887_vm2, %v8301_v25, %v8302_v13  ;;  %v7761_v34 = vpack.c.bf16 %v8307_v42, %v8302_v13 }
 0x31a   : > { %v8310_v48 = vpop.permute.xlu1 %8309  ;;  %v10284_v12 = vpop.permute.xlu0 %8354  ;;  %7750 = vmatprep.subr.bf16.mxu0 %v7749_v17  ;;  %7452 = vmatmul.mubr.msk.f32.vlgmr.msra.gmra.mrb[0].mxu1 %vm1558_vm8, %v1992_v21  ;;  %v2296_v62 = vsel %vm887_vm2, %v8306_v40, %v8307_v42  ;;  %v2532_v17 = vld [vmem:[#allocation4 + $0x20] sm:$0xff] }
 0x31b   : > { %v8312_v58 = vunpack.i.h.bf16 %v8310_v48  ;;  %v8311_v37 = vunpack.i.l.bf16 %v8310_v48  ;;  %2447 = vmatprep.mubr.f32.mxu1 %v8938_v2  ;;  %v7763_v29 = vpack.c.bf16 %v2296_v62, %v2291_v26  ;;  %v8356_v11 = vunpack.i.l.bf16 %v10284_v12 }
 0x31c   : > { %7451 = vmatmul.mubr.msk.f32.vlgmr.msra.gmra.mrb[0].mxu0 %vm1558_vm8, %v1992_v21 }
 0x31d   : > { %v2289_v59 = vsel %vm887_vm2, %v8287_v33, %v8311_v37  ;;  %v2294_v23 = vsel %vm887_vm2, %v8292_v43, %v8312_v58  ;;  %7752 = vmatpush1.bf16.msra.mxu0 %v7751_v56  ;;  %2248 = vmatprep.mubr.f32.mxu0 %v8938_v2  ;;  %v2290_v53 = vsel %vm887_vm2, %v8311_v37, %v8301_v25  ;;  %v8347_v43 = vunpack.i.h.bf16 %v10274_v45 }
 0x31e   : > { %v8320_v15 = vpop.permute.xlu1 %8319  ;;  %v10299_v7 = vpop.permute.xlu0 %8364  ;;  %7754 = vmatprep.subr.bf16.mxu0 %v7753_v14  ;;  %v2295_v16 = vsel %vm887_vm2, %v8312_v58, %v8306_v40  ;;  %v7759_v0 = vpack.c.bf16 %v2294_v23, %v2289_v59  ;;  %v8346_v33 = vunpack.i.l.bf16 %v10274_v45 }
 0x31f   : > { %v8322_v54 = vunpack.i.h.bf16 %v8320_v15  ;;  %v8321_v1 = vunpack.i.l.bf16 %v8320_v15  ;;  %v7757_v9 = vpack.c.bf16 %v2295_v16, %v2290_v53  ;;  %v8367_v13 = vunpack.i.h.bf16 %v10299_v7 }
 0x320   : > { %7453 = vmatmul.mubr.msk.f32.vlgmr.msra.gmra.mrb[4].mxu0 %vm1558_vm8, %v1992_v21  ;;  %v8357_v21 = vunpack.i.h.bf16 %v10284_v12  ;;  %v2827_v56 = vsel %vm1079_vm4, %v8356_v11, %v8346_v33  ;;  %v2828_v12 = vsel %vm1079_vm4, %v8346_v33, %v8347_v43  ;;  %v8366_v25 = vunpack.i.l.bf16 %v10299_v7 }
 0x321   : > { %7756 = vmatpush1.bf16.msra.mxu0 %v7755_v35  ;;  %2376 = vmatprep.mubr.f32.mxu0 %v8938_v2  ;;  %v2563_v41 = vsel %vm983_vm3, %v8321_v1, %v8322_v54  ;;  %v2562_v10 = vsel %vm983_vm3, %v8327_v44, %v8321_v1 }
 0x322   : > { %7758 = vmatprep.subr.bf16.mxu1 %v7757_v9  ;;  %v8330_v52 = vpop.permute.xlu1 %8329  ;;  %v10310_v38 = vpop.permute.xlu0 %8374  ;;  %7762 = vmatprep.subr.bf16.mxu0 %v7761_v34  ;;  %v7765_v3 = vpack.c.bf16 %v2563_v41, %v2558_v4  ;;  %v7767_v28 = vpack.c.bf16 %v2562_v10, %v2557_v8  ;;  %v2836_v7 = vsel %vm1079_vm4, %v8366_v25, %v8367_v13 }
 0x323   : > { %7760 = vmatpush1.bf16.msra.mxu1 %v7759_v0  ;;  %v8332_v55 = vunpack.i.h.bf16 %v8330_v52  ;;  %v8331_v32 = vunpack.i.l.bf16 %v8330_v52  ;;  %v2802_v0 = vld [vmem:[#allocation4 + $0x28] sm:$0xff]  ;;  %v8377_v34 = vunpack.i.h.bf16 %v10310_v38  ;;  %v8376_v9 = vunpack.i.l.bf16 %v10310_v38 }
 0x324   : > { %7454 = vmatmul.mubr.msk.f32.vlgmr.msra.gmra.mrb[0].mxu0 %vm1558_vm8, %v2262_v47 }
 0x325   : > { %7764 = vmatpush1.bf16.msra.mxu0 %v7763_v29  ;;  %2518 = vmatprep.mubr.f32.mxu0 %v8938_v2  ;;  %v2561_v24 = vsel %vm983_vm3, %v8331_v32, %v8332_v55  ;;  %v7773_v63 = vpack.c.bf16 %v8337_v46, %v8332_v55 }
 0x326   : > { %v8340_v27 = vpop.permute.xlu1 %8339  ;;  %v10319_v49 = vpop.permute.xlu0 %8384  ;;  %7766 = vmatprep.subr.bf16.mxu0 %v7765_v3  ;;  %7455 = vmatmul.mubr.msk.f32.vlgmr.msra.gmra.mrb[0].mxu1 %vm1558_vm8, %v2262_v47  ;;  %v7775_v61 = vpack.c.bf16 %v2566_v19, %v2561_v24  ;;  %v3098_v3 = vsel %vm1188_vm5, %v8376_v9, %v8377_v34 }
 0x327   : > { %v8342_v50 = vunpack.i.h.bf16 %v8340_v27  ;;  %v8341_v18 = vunpack.i.l.bf16 %v8340_v27  ;;  %2717 = vmatprep.mubr.f32.mxu1 %v8938_v2  ;;  %v8387_v38 = vunpack.i.h.bf16 %v10319_v49 }
 0x328   : > { %7456 = vmatmul.mubr.msk.f32.vlgmr.msra.gmra.mrb[4].mxu0 %vm1558_vm8, %v2262_v47  ;;  %v8386_v47 = vunpack.i.l.bf16 %v10319_v49 }
 0x329   : > { %v2559_v51 = vsel %vm983_vm3, %v8317_v39, %v8341_v18  ;;  %v2564_v5 = vsel %vm983_vm3, %v8322_v54, %v8342_v50  ;;  %7768 = vmatpush1.bf16.msra.mxu0 %v7767_v28  ;;  %2646 = vmatprep.mubr.f32.mxu0 %v8938_v2  ;;  %v2560_v20 = vsel %vm983_vm3, %v8341_v18, %v8331_v32 }
 0x32a   : > { %v8350_v31 = vpop.permute.xlu1 %8349  ;;  %v10333_v60 = vpop.permute.xlu0 %8394  ;;  %7774 = vmatprep.subr.bf16.mxu0 %v7773_v63  ;;  %v2565_v48 = vsel %vm983_vm3, %v8342_v50, %v8336_v57  ;;  %v7771_v40 = vpack.c.bf16 %v2564_v5, %v2559_v51  ;;  %v3097_v45 = vsel %vm1188_vm5, %v8386_v47, %v8376_v9  ;;  %v3072_v51 = vld [vmem:[#allocation4 + $0x30] sm:$0xff]  ;;  %vm7252_vm3 = vcmask 1041408  }
 0x32b   : > { %v8352_v58 = vunpack.i.h.bf16 %v8350_v31  ;;  %v8351_v37 = vunpack.i.l.bf16 %v8350_v31  ;;  %v7769_v6 = vpack.c.bf16 %v2565_v48, %v2560_v20  ;;  %v8397_v8 = vunpack.i.h.bf16 %v10333_v60 }
 0x32c   : > { %7457 = vmatmul.mubr.msk.f32.vlgmr.msra.gmra.mrb[0].mxu0 %vm1558_vm8, %v2532_v17  ;;  %v8396_v46 = vunpack.i.l.bf16 %v10333_v60 }
 0x32d   : > { %v2832_v14 = vsel %vm1079_vm4, %v8357_v21, %v8351_v37  ;;  %7776 = vmatpush1.bf16.msra.mxu0 %v7775_v61  ;;  %2788 = vmatprep.mubr.f32.mxu0 %v8938_v2  ;;  %v2833_v30 = vsel %vm1079_vm4, %v8351_v37, %v8352_v58 }
 0x32e   : > { %v7779_v42 = vpack.c.bf16 %v2832_v14, %v2827_v56  ;;  %7770 = vmatprep.subr.bf16.mxu1 %v7769_v6  ;;  %v8360_v59 = vpop.permute.xlu1 %8359  ;;  %v7777_v23 = vpack.c.bf16 %v2833_v30, %v2828_v12  ;;  %v10347_v15 = vpop.permute.xlu0 %8404  ;;  %v3106_v11 = vsel %vm1188_vm5, %v8396_v46, %v8397_v8 }
 0x32f   : > { %7772 = vmatpush1.bf16.msra.mxu1 %v7771_v40  ;;  %v8362_v39 = vunpack.i.h.bf16 %v8360_v59  ;;  %v8361_v22 = vunpack.i.l.bf16 %v8360_v59  ;;  %v8407_v31 = vunpack.i.h.bf16 %v10347_v15  ;;  %v8406_v60 = vunpack.i.l.bf16 %v10347_v15 }
 0x330   : > { %7778 = vmatprep.subr.bf16.mxu0 %v7777_v23  ;;  %7459 = vmatmul.mubr.msk.f32.vlgmr.msra.gmra.mrb[4].mxu0 %vm1558_vm8, %v2532_v17 }
 0x331   : > { %v2831_v53 = vsel %vm1079_vm4, %v8361_v22, %v8362_v39  ;;  %v7785_v16 = vpack.c.bf16 %v8367_v13, %v8362_v39  ;;  %7780 = vmatpush1.bf16.msra.mxu0 %v7779_v42  ;;  %2916 = vmatprep.mubr.f32.mxu0 %v8938_v2  ;;  %v3368_v42 = vsel %vm1294_vm6, %v8406_v60, %v8407_v31 }
 0x332   : > { %v7787_v54 = vpack.c.bf16 %v2836_v7, %v2831_v53  ;;  %v8370_v1 = vpop.permute.xlu1 %8369  ;;  %7458 = vmatmul.mubr.msk.f32.vlgmr.msra.gmra.mrb[0].mxu1 %vm1558_vm8, %v2532_v17  ;;  %v10363_v44 = vpop.permute.xlu0 %8414 }
 0x333   : > { %v8372_v35 = vunpack.i.h.bf16 %v8370_v1  ;;  %v8371_v26 = vunpack.i.l.bf16 %v8370_v1  ;;  %7786 = vmatprep.subr.bf16.mxu0 %v7785_v16  ;;  %2987 = vmatprep.mubr.f32.mxu1 %v8938_v2  ;;  %v8416_v20 = vunpack.i.l.bf16 %v10363_v44  ;;  %v8417_v6 = vunpack.i.h.bf16 %v10363_v44 }
 0x334   : > { %7460 = vmatmul.mubr.msk.f32.vlgmr.msra.gmra.mrb[0].mxu0 %vm1558_vm8, %v2802_v0 }
 0x335   : > { %v2829_v41 = vsel %vm1079_vm4, %v8347_v43, %v8371_v26  ;;  %v2834_v62 = vsel %vm1079_vm4, %v8352_v58, %v8372_v35  ;;  %7788 = vmatpush1.bf16.msra.mxu0 %v7787_v54  ;;  %v2830_v36 = vsel %vm1079_vm4, %v8371_v26, %v8361_v22  ;;  %v2835_v29 = vsel %vm1079_vm4, %v8372_v35, %v8366_v25 }
 0x336   : > { %v8380_v52 = vpop.permute.xlu1 %8379  ;;  %3058 = vmatprep.mubr.f32.mxu0 %v8938_v2  ;;  %v7783_v4 = vpack.c.bf16 %v2834_v62, %v2829_v41  ;;  %v7781_v32 = vpack.c.bf16 %v2835_v29, %v2830_v36  ;;  %v10377_v50 = vpop.permute.xlu0 %8424  ;;  %v3367_v14 = vsel %vm1294_vm6, %v8416_v20, %v8406_v60  ;;  %vm7260_vm4 = vcmask 91136  }
 0x337   : > { %v8382_v10 = vunpack.i.h.bf16 %v8380_v52  ;;  %v8381_v55 = vunpack.i.l.bf16 %v8380_v52  ;;  %v8427_v59 = vunpack.i.h.bf16 %v10377_v50  ;;  %v8426_v23 = vunpack.i.l.bf16 %v10377_v50 }
 0x338   : > { %7462 = vmatmul.mubr.msk.f32.vlgmr.msra.gmra.mrb[4].mxu0 %vm1558_vm8, %v2802_v0  ;;  %7782 = vmatprep.subr.bf16.mxu1 %v7781_v32 }
 0x339   : > { %v3102_v57 = vsel %vm1188_vm5, %v8387_v38, %v8381_v55  ;;  %v3103_v27 = vsel %vm1188_vm5, %v8381_v55, %v8382_v10  ;;  %3186 = vmatprep.mubr.f32.mxu0 %v8938_v2  ;;  %7784 = vmatpush1.bf16.msra.mxu1 %v7783_v4  ;;  %v3376_v1 = vsel %vm1294_vm6, %v8426_v23, %v8427_v59 }
 0x33a   : > { %v7791_v49 = vpack.c.bf16 %v3102_v57, %v3097_v45  ;;  %v8390_v43 = vpop.permute.xlu1 %8389  ;;  %v7789_v28 = vpack.c.bf16 %v3103_v27, %v3098_v3  ;;  %v10387_v48 = vpop.permute.xlu0 %8434 }
 0x33b   : > { %v8392_v18 = vunpack.i.h.bf16 %v8390_v43  ;;  %v8391_v33 = vunpack.i.l.bf16 %v8390_v43  ;;  %v8437_v44 = vunpack.i.h.bf16 %v10387_v48  ;;  %v8436_v36 = vunpack.i.l.bf16 %v10387_v48 }
 0x33c   : > { %7790 = vmatprep.subr.bf16.mxu0 %v7789_v28  ;;  %7461 = vmatmul.mubr.msk.f32.vlgmr.msra.gmra.mrb[0].mxu1 %vm1558_vm8, %v2802_v0 }
 0x33d   : > { %v3101_v24 = vsel %vm1188_vm5, %v8391_v33, %v8392_v18  ;;  %v7797_v63 = vpack.c.bf16 %v8397_v8, %v8392_v18  ;;  %7792 = vmatpush1.bf16.msra.mxu0 %v7791_v49  ;;  %3257 = vmatprep.mubr.f32.mxu1 %v8938_v2  ;;  %v3638_v43 = vsel %vm1400_vm7, %v8436_v36, %v8437_v44 }
 0x33e   : > { %v7799_v5 = vpack.c.bf16 %v3106_v11, %v3101_v24  ;;  %v8400_v17 = vpop.permute.xlu1 %8399  ;;  %v8445_v16 = vpop.permute.xlu0 %8444 }
 0x33f   : > { %v8402_v19 = vunpack.i.h.bf16 %v8400_v17  ;;  %v8401_v21 = vunpack.i.l.bf16 %v8400_v17  ;;  %7798 = vmatprep.subr.bf16.mxu0 %v7797_v63  ;;  %v8446_v52 = vunpack.i.l.bf16 %v8445_v16  ;;  %v8447_v8 = vunpack.i.h.bf16 %v8445_v16 }
 0x340   : > { %7463 = vmatmul.mubr.msk.f32.vlgmr.msra.gmra.mrb[0].mxu0 %vm1558_vm8, %v3072_v51 }
 0x341   : > { %v3099_v61 = vsel %vm1188_vm5, %v8377_v34, %v8401_v21  ;;  %v3104_v40 = vsel %vm1188_vm5, %v8382_v10, %v8402_v19  ;;  %7800 = vmatpush1.bf16.msra.mxu0 %v7799_v5  ;;  %v3100_v58 = vsel %vm1188_vm5, %v8401_v21, %v8391_v33  ;;  %v3105_v56 = vsel %vm1188_vm5, %v8402_v19, %v8396_v46  ;;  %v3342_v34 = vld [vmem:[#allocation4 + $0x38] sm:$0xff]  ;;  %v3612_v21 = vld [vmem:[#allocation4 + $0x40] sm:$0xff] }
 0x342   : > { %v8410_v37 = vpop.permute.xlu1 %8409  ;;  %3328 = vmatprep.mubr.f32.mxu0 %v8938_v2  ;;  %v7795_v12 = vpack.c.bf16 %v3104_v40, %v3099_v61  ;;  %v7793_v30 = vpack.c.bf16 %v3105_v56, %v3100_v58  ;;  %v8455_v29 = vpop.permute.xlu0 %8454  ;;  %v3637_v28 = vsel %vm1400_vm7, %v8446_v52, %v8436_v36  ;;  %v3912_v52 = vld [vmem:[#allocation7 + $0x8] sm:$0x3f] }
 0x343   : > { %v8412_v13 = vunpack.i.h.bf16 %v8410_v37  ;;  %v8411_v25 = vunpack.i.l.bf16 %v8410_v37  ;;  %v8457_v27 = vunpack.i.h.bf16 %v8455_v29  ;;  %v8456_v49 = vunpack.i.l.bf16 %v8455_v29 }
 0x344   : > { %7465 = vmatmul.mubr.msk.f32.vlgmr.msra.gmra.mrb[4].mxu0 %vm1558_vm8, %v3072_v51  ;;  %7794 = vmatprep.subr.bf16.mxu1 %v7793_v30 }
 0x345   : > { %v3372_v39 = vsel %vm1294_vm6, %v8417_v6, %v8411_v25  ;;  %v3373_v22 = vsel %vm1294_vm6, %v8411_v25, %v8412_v13  ;;  %3456 = vmatprep.mubr.f32.mxu0 %v8938_v2  ;;  %7796 = vmatpush1.bf16.msra.mxu1 %v7795_v12  ;;  %v3645_v5 = vsel %vm1400_vm7, %v8456_v49, %v8457_v27 }
 0x346   : > { %v7803_v15 = vpack.c.bf16 %v3372_v39, %v3367_v14  ;;  %v8420_v7 = vpop.permute.xlu1 %8419  ;;  %v7801_v53 = vpack.c.bf16 %v3373_v22, %v3368_v42 }
 0x347   : > { %v8422_v0 = vunpack.i.h.bf16 %v8420_v7  ;;  %v8421_v54 = vunpack.i.l.bf16 %v8420_v7 }
 0x348   : > { %7802 = vmatprep.subr.bf16.mxu0 %v7801_v53  ;;  %7464 = vmatmul.mubr.msk.f32.vlgmr.msra.gmra.mrb[0].mxu1 %vm1558_vm8, %v3072_v51 }
 0x349   : > { %v3371_v35 = vsel %vm1294_vm6, %v8421_v54, %v8422_v0  ;;  %v7809_v26 = vpack.c.bf16 %v8427_v59, %v8422_v0  ;;  %7804 = vmatpush1.bf16.msra.mxu0 %v7803_v15  ;;  %3527 = vmatprep.mubr.f32.mxu1 %v8938_v2 }
 0x34a   : > { %v7811_v9 = vpack.c.bf16 %v3376_v1, %v3371_v35  ;;  %v8430_v47 = vpop.permute.xlu1 %8429 }
 0x34b   : > { %v8432_v41 = vunpack.i.h.bf16 %v8430_v47  ;;  %v8431_v62 = vunpack.i.l.bf16 %v8430_v47  ;;  %7810 = vmatprep.subr.bf16.mxu0 %v7809_v26  ;;  %v3911_v26 = vld [vmem:[#allocation7] sm:$0xff] }
 0x34c   : > { %7466 = vmatmul.mubr.msk.f32.vlgmr.msra.gmra.mrb[0].mxu0 %vm1558_vm8, %v3342_v34 }
 0x34d   : > { %v3369_v38 = vsel %vm1294_vm6, %v8407_v31, %v8431_v62  ;;  %v3374_v4 = vsel %vm1294_vm6, %v8412_v13, %v8432_v41  ;;  %7812 = vmatpush1.bf16.msra.mxu0 %v7811_v9  ;;  %v3370_v10 = vsel %vm1294_vm6, %v8431_v62, %v8421_v54  ;;  %v3375_v55 = vsel %vm1294_vm6, %v8432_v41, %v8426_v23 }
 0x34e   : > { %v7807_v45 = vpack.c.bf16 %v3374_v4, %v3369_v38  ;;  %v8440_v32 = vpop.permute.xlu1 %8439  ;;  %v7805_v3 = vpack.c.bf16 %v3375_v55, %v3370_v10  ;;  %3598 = vmatprep.mubr.f32.mxu0 %v8938_v2  ;;  %vm7293_vm6 = vcmask 1024  }
 0x34f   : > { %v8442_v46 = vunpack.i.h.bf16 %v8440_v32  ;;  %v8441_v57 = vunpack.i.l.bf16 %v8440_v32 }
 0x350   : > { %7806 = vmatprep.subr.bf16.mxu1 %v7805_v3  ;;  %7468 = vmatmul.mubr.msk.f32.vlgmr.msra.gmra.mrb[4].mxu0 %vm1558_vm8, %v3342_v34 }
 0x351   : > { %v3642_v50 = vsel %vm1400_vm7, %v8447_v8, %v8441_v57  ;;  %7808 = vmatpush1.bf16.msra.mxu1 %v7807_v45  ;;  %v3643_v18 = vsel %vm1400_vm7, %v8441_v57, %v8442_v46  ;;  %3726 = vmatprep.mubr.f32.mxu0 %v8938_v2  ;;  %v3644_v17 = vsel %vm1400_vm7, %v8442_v46, %v8456_v49 }
 0x352   : > { %v7815_v33 = vpack.c.bf16 %v3642_v50, %v3637_v28  ;;  %v8450_v11 = vpop.permute.xlu1 %8449  ;;  %v7813_v24 = vpack.c.bf16 %v3643_v18, %v3638_v43 }
 0x353   : > { %v8452_v63 = vunpack.i.h.bf16 %v8450_v11  ;;  %v8451_v51 = vunpack.i.l.bf16 %v8450_v11  ;;  %v3885_v25 = vpop.permute.xlu0 %3884 }
 0x354   : > { %7467 = vmatmul.mubr.msk.f32.vlgmr.msra.gmra.mrb[0].mxu1 %vm1558_vm8, %v3342_v34  ;;  %7814 = vmatprep.subr.bf16.mxu0 %v7813_v24 }
 0x355   : > { %v3639_v19 = vsel %vm1400_vm7, %v8437_v44, %v8451_v51  ;;  %7816 = vmatpush1.bf16.msra.mxu0 %v7815_v33  ;;  %v3640_v31 = vsel %vm1400_vm7, %v8451_v51, %v8452_v63  ;;  %3797 = vmatprep.mubr.f32.mxu1 %v8938_v2 }
 0x356   : > { %v7819_v60 = vpack.c.bf16 %v3644_v17, %v3639_v19  ;;  %v8460_v20 = vpop.permute.xlu1 %8459  ;;  %v7817_v48 = vpack.c.bf16 %v3645_v5, %v3640_v31 }
 0x357   : > { %v8462_v61 = vunpack.i.h.bf16 %v8460_v20  ;;  %v8461_v40 = vunpack.i.l.bf16 %v8460_v20  ;;  %v3918_v43 = vpop.permute.xlu0 %3917 }
 0x358   : > { %7469 = vmatmul.mubr.msk.f32.vlgmr.msra.gmra.mrb[0].mxu0 %vm1558_vm8, %v3612_v21  ;;  %7818 = vmatprep.subr.bf16.mxu1 %v7817_v48 }
 0x359   : > { %v3641_v58 = vsel %vm1400_vm7, %v8452_v63, %v8461_v40  ;;  %v3646_v37 = vsel %vm1400_vm7, %v8457_v27, %v8462_v61  ;;  %v7821_v56 = vpack.c.bf16 %v8462_v61, %v8461_v40  ;;  %7820 = vmatpush1.bf16.msra.mxu1 %v7819_v60  ;;  %3868 = vmatprep.mubr.f32.mxu0 %v8938_v2 }
 0x35a   : > { %v7823_v6 = vpack.c.bf16 %v3646_v37, %v3641_v58 }
 0x35b   : > { %7822 = vmatprep.subr.bf16.mxu0 %v7821_v56 }
 0x35c   : > { %7470 = vmatmul.mubr.msk.f32.vlgmr.msra.gmra.mrb[0].mxu1 %vm1558_vm8, %v3612_v21  ;;  %7824 = vmatpush1.bf16.msra.mxu0 %v7823_v6 }
 0x35d   : > { %4506 = vmatprep.mubr.f32.mxu1 %v8938_v2 }
 0x35f   : > { %7471 = vmatmul.mubr.msk.f32.vlgmr.msra.gmra.mrb[4].mxu0 %vm1558_vm8, %v3612_v21 }
 0x360   : > { %3996 = vmatprep.mubr.f32.mxu0 %v8938_v2 }
 0x367   : > { %v3897_v59 = vpop.permute.xlu1 %3896 }
 0x36b   : > { %v3923_v50 = vpop.permute.xlu1 %3922 }
 0x3df   : > { %v1699_v12 = vpop.f32.mrb[2].mxu0 }
 0x3e0   : > { %v1701_v13 = vpop.f32.mrb[3].mxu0 }
 0x42b   : > { %v3728_v14 = vpop.f32.mrb[0].mxu0 }
 0x42c   : > { %v3887_v30 = vmul.f32 %v3885_v25, %v3728_v14  ;;  %v3730_v42 = vpop.f32.mrb[1].mxu0 }
 0x42d   : > { %v3888_v23 = vmul.f32 %v3885_v25, %v3730_v42 }
 0x42e   : > { %v3899_v39 = vadd.f32 %v3897_v59, %v3887_v30 }
 0x42f   : > { %v3900_v22 = vadd.f32 %v3897_v59, %v3888_v23  ;;  %v3799_v15 = vpop.f32.mrb[0].mxu1 }
 0x430   : > { %v8005_v7 = vadd.f32 %v3799_v15, %v1699_v12  ;;  %v3801_v53 = vpop.f32.mrb[1].mxu1  ;;  %v3905_v54 = vmax.f32 %v3899_v39, 0.0 }
 0x431   : > { %v3906_v16 = vmax.f32 %v3900_v22, 0.0  ;;  %v8006_v0 = vadd.f32 %v3801_v53, %v1701_v13 }
 0x432   : > { %v3889_v1 = vmul.f32 %v8005_v7, %v3885_v25  ;;  %v3870_v35 = vpop.f32.mrb[4].mxu0 }
 0x433   : > { %v3890_v34 = vmul.f32 %v8006_v0, %v3885_v25  ;;  %v3872_v9 = vpop.f32.mrb[5].mxu0  ;;  %3932 = vmatprep.subr.mxu0 %v3906_v16  ;;  %v3891_v41 = vmul.f32 %v3885_v25, %v3870_v35 }
 0x434   : > { %v3901_v47 = vadd.f32 %v3897_v59, %v3889_v1  ;;  %v3892_v62 = vmul.f32 %v3885_v25, %v3872_v9  ;;  %3933 = vmatpush1.msra.mxu0 %v3905_v54 }
 0x435   : > { %7472 = vmatmul.mubr.msk.f32.vlgmr.msra.gmra.mrb[6].mxu0 %vm3925_vm9, %v3911_v26  ;;  %v3902_v44 = vadd.f32 %v3897_v59, %v3890_v34  ;;  %v3903_v4 = vadd.f32 %v3897_v59, %v3891_v41 }
 0x436   : > { %v3904_v36 = vadd.f32 %v3897_v59, %v3892_v62  ;;  %4002 = vmatprep.mubr.f32.mxu0 %v8938_v2  ;;  %v3907_v38 = vmax.f32 %v3901_v47, 0.0 }
 0x437   : > { %v3908_v29 = vmax.f32 %v3902_v44, 0.0  ;;  %v3909_v55 = vmax.f32 %v3903_v4, 0.0 }
 0x438   : > { %v3910_v10 = vmax.f32 %v3904_v36, 0.0 }
 0x439   : > { %7473 = vmatmul.mubr.msk.f32.gmra.mrb[8].mxu0 %vm3925_vm9, %v3912_v52  ;;  %4009 = vmatprep.subr.mxu0 %v3908_v29 }
 0x43a   : > { %4010 = vmatpush1.msra.mxu0 %v3907_v38  ;;  %4073 = vmatprep.mubr.f32.mxu0 %v8938_v2 }
 0x43b   : > { %4086 = vmatprep.subr.mxu0 %v3910_v10 }
 0x43d   : > { %7474 = vmatmul.mubr.msk.f32.vlgmr.msra.gmra.mrb[10].mxu0 %vm3925_vm9, %v3911_v26 }
 0x43e   : > { %4087 = vmatpush1.msra.mxu0 %v3909_v55  ;;  %4079 = vmatprep.mubr.f32.mxu0 %v8938_v2 }
 0x441   : > { %7475 = vmatmul.mubr.msk.f32.gmra.mrb[12].mxu0 %vm3925_vm9, %v3912_v52 }
 0x442   : > { %4150 = vmatprep.mubr.f32.mxu0 %v8938_v2 }
 0x445   : > { %7476 = vmatmul.mubr.msk.f32.vlgmr.msra.gmra.mrb[14].mxu0 %vm3925_vm9, %v3911_v26 }
 0x446   : > { %4156 = vmatprep.mubr.f32.mxu0 %v8938_v2 }
 0x449   : > { %7477 = vmatmul.mubr.msk.f32.gmra.mrb[16].mxu0 %vm3925_vm9, %v3912_v52 }
 0x44a   : > { %4429 = vmatprep.mubr.f32.mxu0 %v8938_v2 }
 0x508   : > { %v3998_v45 = vpop.f32.mrb[6].mxu0 }
 0x509   : > { %v4000_v32 = vpop.f32.mrb[7].mxu0  ;;  %v3999_v37 = vadd.f32 %v3998_v45, %v3918_v43 }
 0x50a   : > { %v4001_v56 = vadd.f32 %v4000_v32, %v3918_v43 }
 0x50c   : > { %v4004_v3 = vpop.f32.mrb[8].mxu0 }
 0x50d   : > { %v4006_v8 = vpop.f32.mrb[9].mxu0  ;;  %v4005_v48 = vadd.f32 %v4004_v3, %v3923_v50 }
 0x50e   : > { %v4007_v61 = vadd.f32 %v4006_v8, %v3923_v50 }
 0x50f   : > { %v8488_v6 = vpack.i.bf16 %v4005_v48, %v3999_v37 }
 0x510   : > { %v4075_v46 = vpop.f32.mrb[10].mxu0  ;;  %v8483_v12 = vpack.i.bf16 %v4007_v61, %v4001_v56 }
 0x511   : > { %v4077_v57 = vpop.f32.mrb[11].mxu0  ;;  %v4076_v60 = vadd.f32 %v4075_v46, %v3918_v43 }
 0x512   : > { %v4078_v18 = vadd.f32 %v4077_v57, %v3918_v43 }
 0x514   : > { %v4081_v27 = vpop.f32.mrb[12].mxu0 }
 0x515   : > { %v4083_v49 = vpop.f32.mrb[13].mxu0  ;;  %v4082_v5 = vadd.f32 %v4081_v27, %v3923_v50 }
 0x516   : > { %v4084_v24 = vadd.f32 %v4083_v49, %v3923_v50 }
 0x517   : > { %v8478_v40 = vpack.i.bf16 %v4082_v5, %v4076_v60 }
 0x518   : > { %v4152_v28 = vpop.f32.mrb[14].mxu0 }
 0x519   : > { %v4153_v33 = vadd.f32 %v4152_v28, %v3918_v43  ;;  %v4154_v11 = vpop.f32.mrb[15].mxu0 }
 0x51a   : > { %v4155_v63 = vadd.f32 %v4154_v11, %v3918_v43 }
 0x51b   : > { %v8463_v51 = vpack.i.bf16 %v4153_v33, %v4078_v18 }
 0x51c   : > { %v8468_v17 = vpack.i.bf16 %v4084_v24, %v4155_v63  ;;  %v4158_v19 = vpop.f32.mrb[16].mxu0 }
 0x51d   : > { %v4159_v21 = vadd.f32 %v4158_v19, %v3923_v50  ;;  %v4160_v31 = vpop.f32.mrb[17].mxu0  ;;  %8464 = vrot.lane.b32.xlu0 %v8463_v51, %s8932_s24 }
 0x51e   : > { %v4161_v20 = vadd.f32 %v4160_v31, %v3923_v50  ;;  %8469 = vrot.lane.b32.xlu1 %v8468_v17, %s8932_s24 }
 0x520   : > { %v8473_v58 = vpack.i.bf16 %v4161_v20, %v4159_v21 }
 0x522   : > { %8479 = vrot.lane.b32.xlu1 %v8478_v40, %s8932_s24  ;;  %8474 = vrot.lane.b32.xlu0 %v8473_v58, %s8932_s24 }
 0x526   : > { %8489 = vrot.lane.b32.xlu1 %v8488_v6, %s8932_s24  ;;  %8484 = vrot.lane.b32.xlu0 %v8483_v12, %s8932_s24  ;;  %s11361_s24 = sld [smem:[#allocation55_spill]] }
 0x58f   : > { %v8465_v13 = vpop.permute.xlu0 %8464 }
 0x590   : > { %v8467_v25 = vunpack.i.h.bf16 %v8465_v13  ;;  %v8466_v14 = vunpack.i.l.bf16 %v8465_v13  ;;  %v8470_v30 = vpop.permute.xlu1 %8469 }
 0x591   : > { %v8471_v42 = vunpack.i.l.bf16 %v8470_v30  ;;  %v8472_v1 = vunpack.i.h.bf16 %v8470_v30 }
 0x592   : > { %v4202_v59 = vsel %vm887_vm2, %v8466_v14, %v8467_v25 }
 0x593   : > { %v4224_v23 = vmax.f32 %v4078_v18, %v4202_v59  ;;  %v4203_v39 = vsel %vm887_vm2, %v8467_v25, %v8471_v42  ;;  %v4226_v26 = vmax.f32 %v4155_v63, %v8471_v42 }
 0x594   : > { %v4225_v22 = vmax.f32 %v4153_v33, %v4203_v39  ;;  %v8480_v15 = vpop.permute.xlu1 %8479  ;;  %v8475_v7 = vpop.permute.xlu0 %8474 }
 0x595   : > { %v8482_v53 = vunpack.i.h.bf16 %v8480_v15  ;;  %v8481_v16 = vunpack.i.l.bf16 %v8480_v15  ;;  %v8477_v0 = vunpack.i.h.bf16 %v8475_v7  ;;  %v8476_v54 = vunpack.i.l.bf16 %v8475_v7 }
 0x596   : > { %v8493_v35 = vpack.i.bf16 %v4225_v22, %v4224_v23 }
 0x597   : > { %v4232_v34 = vmax.f32 %v4161_v20, %v8477_v0  ;;  %v4208_v9 = vsel %vm887_vm2, %v8476_v54, %v8477_v0  ;;  %v4201_v47 = vsel %vm887_vm2, %v8481_v16, %v8466_v14  ;;  %v4206_v41 = vsel %vm887_vm2, %v8482_v53, %v8472_v1 }
 0x598   : > { %v4231_v62 = vmax.f32 %v4159_v21, %v4208_v9  ;;  %v4207_v44 = vsel %vm887_vm2, %v8472_v1, %v8476_v54  ;;  %v8490_v36 = vpop.permute.xlu1 %8489  ;;  %v8485_v52 = vpop.permute.xlu0 %8484  ;;  %8494 = vrot.lane.b32.xlu0 %v8493_v35, %s8930_s17  ;;  %v4223_v32 = vmax.f32 %v4076_v60, %v4201_v47  ;;  %v4229_v3 = vmax.f32 %v4082_v5, %v4206_v41 }
 0x599   : > { %v4230_v29 = vmax.f32 %v4084_v24, %v4207_v44  ;;  %v8492_v38 = vunpack.i.h.bf16 %v8490_v36  ;;  %v8491_v4 = vunpack.i.l.bf16 %v8490_v36  ;;  %v8487_v10 = vunpack.i.h.bf16 %v8485_v52 }
 0x59a   : > { %v8503_v55 = vpack.i.bf16 %v4232_v34, %v4231_v62  ;;  %v8486_v45 = vunpack.i.l.bf16 %v8485_v52  ;;  %v8508_v11 = vpack.i.bf16 %v4229_v3, %v4223_v32 }
 0x59b   : > { %v4205_v8 = vsel %vm887_vm2, %v8487_v10, %v8482_v53  ;;  %v8498_v46 = vpack.i.bf16 %v4230_v29, %v4226_v26  ;;  %v4204_v57 = vsel %vm887_vm2, %v8492_v38, %v8487_v10 }
 0x59c   : > { %v4228_v27 = vmax.f32 %v4007_v61, %v4205_v8  ;;  %v4199_v49 = vsel %vm887_vm2, %v8491_v4, %v8486_v45  ;;  %v4200_v43 = vsel %vm887_vm2, %v8486_v45, %v8481_v16  ;;  %8504 = vrot.lane.b32.xlu0 %v8503_v55, %s8930_s17  ;;  %v4227_v50 = vmax.f32 %v4005_v48, %v4204_v57  ;;  %v6880_v8 = vld [vmem:[%s11219_s10 + $0x8] sm:$0xf] }
 0x59d   : > { %v4222_v28 = vmax.f32 %v4001_v56, %v4200_v43  ;;  %8499 = vrot.lane.b32.xlu1 %v8498_v46, %s8930_s17  ;;  %v4221_v18 = vmax.f32 %v3999_v37, %v4199_v49  ;;  %v6901_v46 = vld [vmem:[#allocation10] sm:$0xff]  ;;  %v6902_v57 = vld [vmem:[#allocation10 + $0x8] sm:$0xf] }
 0x59e   : > { %v6935_v49 = vld [vmem:[%s11222_s13] sm:$0xff] }
 0x59f   : > { %v8513_v33 = vpack.i.bf16 %v4228_v27, %v4222_v28  ;;  %v8518_v24 = vpack.i.bf16 %v4227_v50, %v4221_v18 }
 0x5a1   : > { %8514 = vrot.lane.b32.xlu0 %v8513_v33, %s8930_s17  ;;  %8509 = vrot.lane.b32.xlu1 %v8508_v11, %s8930_s17 }
 0x5a5   : > { %8519 = vrot.lane.b32.xlu1 %v8518_v24, %s8930_s17  ;;  %s8943_s17 = smov 12  }
 0x60a   : > { %v8495_v63 = vpop.permute.xlu0 %8494 }
 0x60b   : > { %v8497_v51 = vunpack.i.h.bf16 %v8495_v63  ;;  %v8496_v5 = vunpack.i.l.bf16 %v8495_v63 }
 0x60d   : > { %v4272_v60 = vsel %vm695_vm0, %v8496_v5, %v8497_v51 }
 0x60e   : > { %v8505_v17 = vpop.permute.xlu0 %8504  ;;  %v10473_v56 = vmax.f32 %v4224_v23, %v4272_v60 }
 0x60f   : > { %v8500_v19 = vpop.permute.xlu1 %8499  ;;  %v8507_v21 = vunpack.i.h.bf16 %v8505_v17  ;;  %v8506_v31 = vunpack.i.l.bf16 %v8505_v17 }
 0x610   : > { %v8502_v20 = vunpack.i.h.bf16 %v8500_v19  ;;  %v8501_v48 = vunpack.i.l.bf16 %v8500_v19 }
 0x611   : > { %v4278_v61 = vsel %vm695_vm0, %v8506_v31, %v8507_v21 }
 0x612   : > { %v4273_v40 = vsel %vm695_vm0, %v8497_v51, %v8501_v48  ;;  %v4277_v58 = vsel %vm695_vm0, %v8502_v20, %v8506_v31  ;;  %v4298_v37 = vmax.f32 %v4231_v62, %v4278_v61 }
 0x613   : > { %v4293_v6 = vmax.f32 %v4225_v22, %v4273_v40  ;;  %v10475_v12 = vmax.f32 %v4230_v29, %v4277_v58  ;;  %v8515_v13 = vpop.permute.xlu0 %8514  ;;  %v8510_v25 = vpop.permute.xlu1 %8509 }
 0x614   : > { %v8517_v14 = vunpack.i.h.bf16 %v8515_v13  ;;  %v8516_v30 = vunpack.i.l.bf16 %v8515_v13  ;;  %v8512_v42 = vunpack.i.h.bf16 %v8510_v25  ;;  %v8511_v59 = vunpack.i.l.bf16 %v8510_v25 }
 0x615   : > { %v10478_v39 = vpack.i.bf16 %v4293_v6, %v10473_v56  ;;  %v10481_v15 = vpack.i.bf16 %v4298_v37, %v10475_v12  ;;  %v7849_v10 = vpack.c.bf16 %v10475_v12, %v10473_v56  ;;  %v10523_v45 = vpack.c.bf16 %v4298_v37, %v4293_v6 }
 0x616   : > { %v4275_v7 = vsel %vm695_vm0, %v8517_v14, %v8512_v42  ;;  %v4276_v23 = vsel %vm695_vm0, %v8512_v42, %v8502_v20  ;;  %v4270_v22 = vsel %vm695_vm0, %v8516_v30, %v8511_v59  ;;  %v4271_v53 = vsel %vm695_vm0, %v8511_v59, %v8496_v5 }
 0x617   : > { %v10487_v16 = vmax.f32 %v4229_v3, %v4276_v23  ;;  %v10489_v0 = vmax.f32 %v4222_v28, %v4270_v22  ;;  %v10491_v54 = vmax.f32 %v4223_v32, %v4271_v53  ;;  %8524 = vrot.lane.b32.xlu0 %v10478_v39, %s8931_s14  ;;  %v8520_v1 = vpop.permute.xlu1 %8519  ;;  %8529 = vrot.lane.b32.xlu1 %v10481_v15, %s8931_s14  ;;  %v6879_v3 = vld [vmem:[%s11219_s10] sm:$0xff] }
 0x618   : > { %v8522_v35 = vunpack.i.h.bf16 %v8520_v1  ;;  %v8521_v26 = vunpack.i.l.bf16 %v8520_v1  ;;  %v10497_v34 = vmax.f32 %v4228_v27, %v4275_v7  ;;  %v6936_v27 = vld [vmem:[%s11222_s13 + $0x8] sm:$0x3] }
 0x619   : > { %v8533_v9 = vpack.i.bf16 %v10487_v16, %v10491_v54  ;;  %v8538_v47 = vpack.i.bf16 %v10491_v54, %v10489_v0  ;;  %v7852_v55 = vpack.c.bf16 %v10487_v16, %v10491_v54 }
 0x61a   : > { %v4274_v41 = vsel %vm695_vm0, %v8522_v35, %v8517_v14  ;;  %v4269_v62 = vsel %vm695_vm0, %v8521_v26, %v8516_v30  ;;  %v8543_v52 = vpack.i.bf16 %v10487_v16, %v10497_v34  ;;  %v7843_v38 = vpack.c.bf16 %v10497_v34, %v10489_v0 }
 0x61b   : > { %v10505_v44 = vmax.f32 %v4227_v50, %v4274_v41  ;;  %v10507_v36 = vmax.f32 %v4221_v18, %v4269_v62  ;;  %8534 = vrot.lane.b32.xlu0 %v8533_v9, %s8931_s14  ;;  %8539 = vrot.lane.b32.xlu1 %v8538_v47, %s8939_s18  ;;  %v8608_v32 = vpack.i.bf16 %v10497_v34, %v10489_v0  ;;  %vm6610_vm0 = vcmask 97280  }
 0x61d   : > { %v8548_v29 = vpack.i.bf16 %v10505_v44, %v10507_v36  ;;  %v7846_v4 = vpack.c.bf16 %v10505_v44, %v10507_v36 }
 0x61f   : > { %8544 = vrot.lane.b32.xlu0 %v8543_v52, %s8939_s18  ;;  %8549 = vrot.lane.b32.xlu1 %v8548_v29, %s8939_s18 }
 0x623   : > { %8554 = vrot.lane.b32.xlu0 %v10478_v39, %s8939_s18  ;;  %8559 = vrot.lane.b32.xlu1 %v10481_v15, %s8939_s18  ;;  %s11359_s18 = sld [smem:[#allocation54_spill]] }
 0x627   : > { %8564 = vrot.lane.b32.xlu0 %v8538_v47, %s8935_s15  ;;  %8569 = vrot.lane.b32.xlu1 %v8543_v52, %s8935_s15 }
 0x62b   : > { %8574 = vrot.lane.b32.xlu0 %v8548_v29, %s8935_s15  ;;  %8579 = vrot.lane.b32.xlu1 %v10478_v39, %s8935_s15 }
 0x62f   : > { %8584 = vrot.lane.b32.xlu0 %v10481_v15, %s8935_s15  ;;  %8589 = vrot.lane.b32.xlu1 %v8538_v47, %s8937_s27 }
 0x633   : > { %8594 = vrot.lane.b32.xlu0 %v8543_v52, %s8937_s27  ;;  %8599 = vrot.lane.b32.xlu1 %v8548_v29, %s8937_s27 }
 0x637   : > { %8604 = vrot.lane.b32.xlu0 %v10478_v39, %s8937_s27  ;;  %8614 = vrot.lane.b32.xlu1 %v10481_v15, %s8937_s27  ;;  %s11356_s27 = sld [smem:[#allocation53_spill]] }
 0x63b   : > { %8609 = vrot.lane.b32.xlu0 %v8608_v32, %s8931_s14  ;;  %8619 = vrot.lane.b32.xlu1 %v8548_v29, %s8931_s14 }
 0x63d   : > { %v10604_v58 = vld [vmem:[%s11356_s27 + $0x10] sm:$0xff]  ;;  %v10628_v14 = vld [vmem:[%s11356_s27 + $0x18] sm:$0xf]  ;;  %v10648_v7 = vld [vmem:[%s11356_s27] sm:$0xff] }
 0x63e   : > { %v10670_v9 = vld [vmem:[%s11356_s27 + $0x8] sm:$0xf] }
 0x63f   : > { %8624 = vrot.lane.b32.xlu0 %v8538_v47, %s8940_s20  ;;  %8629 = vrot.lane.b32.xlu1 %v8543_v52, %s8940_s20 }
 0x643   : > { %8634 = vrot.lane.b32.xlu0 %v8548_v29, %s8940_s20  ;;  %8639 = vrot.lane.b32.xlu1 %v10478_v39, %s8940_s20 }
 0x647   : > { %8644 = vrot.lane.b32.xlu0 %v10481_v15, %s8940_s20  ;;  %8649 = vrot.lane.b32.xlu1 %v8538_v47, %s8941_s25  ;;  %s11360_s20 = smov %s11359_s18 }
 0x64b   : > { %8654 = vrot.lane.b32.xlu0 %v8543_v52, %s8941_s25  ;;  %8659 = vrot.lane.b32.xlu1 %v8548_v29, %s8941_s25 }
 0x64f   : > { %8664 = vrot.lane.b32.xlu0 %v10478_v39, %s8941_s25  ;;  %8669 = vrot.lane.b32.xlu1 %v10481_v15, %s8941_s25 }
 0x653   : > { %8674 = vrot.lane.b32.xlu0 %v8538_v47, %s8942_s16  ;;  %8679 = vrot.lane.b32.xlu1 %v8543_v52, %s8942_s16 }
 0x657   : > { %8684 = vrot.lane.b32.xlu0 %v8548_v29, %s8942_s16  ;;  %8689 = vrot.lane.b32.xlu1 %v10478_v39, %s8942_s16 }
 0x65b   : > { %8694 = vrot.lane.b32.xlu0 %v10481_v15, %s8942_s16  ;;  %8699 = vrot.lane.b32.xlu1 %v8538_v47, %s8943_s17 }
 0x65f   : > { %8704 = vrot.lane.b32.xlu0 %v8543_v52, %s8943_s17  ;;  %8709 = vrot.lane.b32.xlu1 %v8548_v29, %s8943_s17 }
 0x663   : > { %8714 = vrot.lane.b32.xlu0 %v10478_v39, %s8943_s17  ;;  %8719 = vrot.lane.b32.xlu1 %v10481_v15, %s8943_s17 }
 0x667   : > { %6883 = vperm.xlu0 %8221, %v6879_v3   ;;  %6888 = vperm.xlu1 %8222, %v6880_v8  }
 0x66b   : > { %6905 = vperm.xlu0 %8221, %v6901_v46   ;;  %6910 = vperm.xlu1 %8222, %v6902_v57  }
 0x66f   : > { %6944 = vperm.xlu0 %8221, %v6936_v27   ;;  %6939 = vperm.xlu1 %8222, %v6935_v49  }
 0x689   : > { %v10564_v43 = vpop.permute.xlu0 %8524  ;;  %v10568_v18 = vpop.permute.xlu1 %8529 }
 0x68a   : > { %v8527_v28 = vunpack.i.h.bf16 %v10564_v43  ;;  %v8526_v50 = vunpack.i.l.bf16 %v10564_v43  ;;  %v8532_v33 = vunpack.i.h.bf16 %v10568_v18  ;;  %v8531_v11 = vunpack.i.l.bf16 %v10568_v18 }
 0x68c   : > { %v4337_v24 = vsel %vm791_vm1, %v8526_v50, %v8527_v28  ;;  %v4341_v63 = vsel %vm791_vm1, %v8531_v11, %v8532_v33 }
 0x68d   : > { %v10578_v51 = vpop.permute.xlu0 %8534  ;;  %v7831_v17 = vpack.c.bf16 %v4341_v63, %v4337_v24  ;;  %v10587_v31 = vpop.permute.xlu1 %8539 }
 0x68e   : > { %v8537_v19 = vunpack.i.h.bf16 %v10578_v51  ;;  %v8536_v21 = vunpack.i.l.bf16 %v10578_v51  ;;  %v8542_v30 = vunpack.i.h.bf16 %v10587_v31  ;;  %v8541_v42 = vunpack.i.l.bf16 %v10587_v31 }
 0x68f   : > { %7833 = vmatprep.subr.msk.bf16.mxu1 %vm10581_vm12, %v7831_v17 }
 0x690   : > { %v4340_v60 = vsel %vm791_vm1, %v8537_v19, %v8531_v11  ;;  %v4336_v20 = vsel %vm791_vm1, %v8536_v21, %v8526_v50  ;;  %v4864_v56 = vsel %vm4862_vm14, %v8541_v42, %v8542_v30  ;;  %v10722_v50 = vld [vmem:[%s11356_s27 + $0x20] sm:$0xff] }
 0x691   : > { %v7834_v48 = vpack.c.bf16 %v4340_v60, %v4336_v20  ;;  %v10597_v61 = vpop.permute.xlu0 %8544  ;;  %v8550_v40 = vpop.permute.xlu1 %8549 }
 0x692   : > { %v8547_v6 = vunpack.i.h.bf16 %v10597_v61  ;;  %v8546_v13 = vunpack.i.l.bf16 %v10597_v61  ;;  %v8552_v23 = vunpack.i.h.bf16 %v8550_v40  ;;  %v8551_v22 = vunpack.i.l.bf16 %v8550_v40 }
 0x693   : > { %7836 = vmatpush1.bf16.msk.msra.mxu1 %vm10581_vm12, %v7834_v48 }
 0x694   : > { %7845 = vmatprep.subr.msk.bf16.mxu1 %vm10581_vm12, %v7843_v38  ;;  %v4868_v39 = vsel %vm4862_vm14, %v8546_v13, %v8547_v6  ;;  %v4867_v41 = vsel %vm4862_vm14, %v8552_v23, %v8546_v13  ;;  %v4863_v62 = vsel %vm4862_vm14, %v8551_v22, %v8541_v42 }
 0x695   : > { %v10611_v37 = vpop.permute.xlu0 %8554  ;;  %v10615_v25 = vpop.permute.xlu1 %8559  ;;  %v7861_v12 = vpack.c.bf16 %v4868_v39, %v4864_v56  ;;  %v7864_v36 = vpack.c.bf16 %v4867_v41, %v4863_v62 }
 0x696   : > { %7486 = vmatmul.mubr.msk.f32.vlgmr.msra.gmra.mrb[2].mxu1 %vm4347_vm13, %v10604_v58  ;;  %v8557_v0 = vunpack.i.h.bf16 %v10611_v37  ;;  %v8556_v1 = vunpack.i.l.bf16 %v10611_v37  ;;  %v8562_v35 = vunpack.i.h.bf16 %v10615_v25  ;;  %v8561_v26 = vunpack.i.l.bf16 %v10615_v25 }
 0x697   : > { %7848 = vmatpush1.bf16.msk.msra.mxu1 %vm10581_vm12, %v7846_v4  ;;  %4512 = vmatprep.mubr.f32.mxu1 %v8938_v2 }
 0x698   : > { %7851 = vmatprep.subr.msk.bf16.mxu1 %vm10581_vm12, %v7849_v10  ;;  %v4866_v16 = vsel %vm4862_vm14, %v8556_v1, %v8557_v0  ;;  %v4870_v54 = vsel %vm4862_vm14, %v8561_v26, %v8562_v35  ;;  %v4865_v8 = vsel %vm4862_vm14, %v8542_v30, %v8556_v1  ;;  %v4869_v46 = vsel %vm4862_vm14, %v8547_v6, %v8561_v26  ;;  %v10736_v30 = vld [vmem:[%s11356_s27 + $0x28] sm:$0xf] }
 0x699   : > { %v10637_v59 = vpop.permute.xlu0 %8564  ;;  %v10640_v15 = vpop.permute.xlu1 %8569  ;;  %v7867_v52 = vpack.c.bf16 %v4870_v54, %v4866_v16  ;;  %v7870_v11 = vpack.c.bf16 %v4869_v46, %v4865_v8 }
 0x69a   : > { %7487 = vmatmul.mubr.msk.f32.gmra.mrb[4].mxu1 %vm4347_vm13, %v10628_v14  ;;  %v8567_v38 = vunpack.i.h.bf16 %v10637_v59  ;;  %v8566_v4 = vunpack.i.l.bf16 %v10637_v59  ;;  %v8572_v10 = vunpack.i.h.bf16 %v10640_v15 }
 0x69b   : > { %4674 = vmatprep.mubr.f32.mxu1 %v8938_v2 }
 0x69c   : > { %v5155_v57 = vsel %vm1188_vm5, %v8566_v4, %v8567_v38 }
 0x69d   : > { %v10651_v53 = vpop.permute.xlu0 %8574  ;;  %v10657_v34 = vpop.permute.xlu1 %8579 }
 0x69e   : > { %7493 = vmatmul.mubr.msk.f32.vlgmr.msra.gmra.mrb[6].mxu1 %vm4347_vm13, %v10648_v7  ;;  %v8577_v17 = vunpack.i.h.bf16 %v10651_v53  ;;  %v8576_v31 = vunpack.i.l.bf16 %v10651_v53  ;;  %v8582_v42 = vunpack.i.h.bf16 %v10657_v34 }
 0x69f   : > { %7854 = vmatpush1.bf16.msk.msra.mxu1 %vm10581_vm12, %v7852_v55  ;;  %4680 = vmatprep.mubr.f32.mxu1 %v8938_v2  ;;  %v8571_v55 = vunpack.i.l.bf16 %v10640_v15  ;;  %v10812_v15 = vld [vmem:[%s11356_s27 + $0x30] sm:$0xff] }
 0x6a0   : > { %7863 = vmatprep.subr.msk.bf16.mxu1 %vm10581_vm12, %v7861_v12  ;;  %v8581_v12 = vunpack.i.l.bf16 %v10657_v34  ;;  %v5154_v1 = vsel %vm1188_vm5, %v8576_v31, %v8566_v4 }
 0x6a1   : > { %v10674_v47 = vpop.permute.xlu0 %8584  ;;  %v10684_v44 = vpop.permute.xlu1 %8589  ;;  %v5159_v27 = vsel %vm1188_vm5, %v8571_v55, %v8572_v10  ;;  %v5158_v26 = vsel %vm1188_vm5, %v8577_v17, %v8571_v55 }
 0x6a2   : > { %7494 = vmatmul.mubr.msk.f32.gmra.mrb[8].mxu1 %vm4347_vm13, %v10670_v9  ;;  %v7879_v24 = vpack.c.bf16 %v5159_v27, %v5155_v57  ;;  %v8587_v61 = vunpack.i.h.bf16 %v10674_v47  ;;  %v8586_v40 = vunpack.i.l.bf16 %v10674_v47  ;;  %v7882_v16 = vpack.c.bf16 %v5158_v26, %v5154_v1 }
 0x6a3   : > { %4751 = vmatprep.mubr.f32.mxu1 %v8938_v2  ;;  %v5157_v43 = vsel %vm1188_vm5, %v8581_v12, %v8582_v42  ;;  %v8591_v4 = vunpack.i.l.bf16 %v10684_v44  ;;  %v7873_v57 = vpack.c.bf16 %v8562_v35, %v8557_v0  ;;  %v10843_v0 = vld [vmem:[%s11356_s27 + $0x38] sm:$0xf] }
 0x6a4   : > { %v5161_v62 = vsel %vm1188_vm5, %v8586_v40, %v8587_v61  ;;  %v5160_v55 = vsel %vm1188_vm5, %v8572_v10, %v8586_v40  ;;  %v7891_v31 = vpack.c.bf16 %v8587_v61, %v8582_v42 }
 0x6a5   : > { %v10689_v29 = vpop.permute.xlu0 %8594  ;;  %v10695_v32 = vpop.permute.xlu1 %8599 }
 0x6a6   : > { %7497 = vmatmul.mubr.msk.f32.vlgmr.msra.gmra.mrb[2].mxu1 %vm4347_vm13, %v10648_v7  ;;  %v8597_v18 = vunpack.i.h.bf16 %v10689_v29 }
 0x6a7   : > { %7866 = vmatpush1.bf16.msk.msra.mxu1 %vm10581_vm12, %v7864_v36  ;;  %4757 = vmatprep.mubr.f32.mxu1 %v8938_v2 }
 0x6a8   : > { %7869 = vmatprep.subr.msk.bf16.mxu1 %vm10581_vm12, %v7867_v52  ;;  %v8592_v52 = vunpack.i.h.bf16 %v10684_v44  ;;  %v5156_v44 = vsel %vm1188_vm5, %v8567_v38, %v8581_v12  ;;  %vm7291_vm5 = vcmask 7168  }
 0x6a9   : > { %v10704_v3 = vpop.permute.xlu0 %8604  ;;  %v10714_v49 = vpop.permute.xlu1 %8614  ;;  %v7888_v10 = vpack.c.bf16 %v5160_v55, %v5156_v44 }
 0x6aa   : > { %7498 = vmatmul.mubr.msk.f32.gmra.mrb[4].mxu1 %vm4347_vm13, %v10670_v9  ;;  %v5446_v46 = vsel %vm1400_vm7, %v8591_v4, %v8592_v52  ;;  %v8606_v38 = vunpack.i.l.bf16 %v10704_v3  ;;  %v8617_v37 = vunpack.i.h.bf16 %v10714_v49  ;;  %v8616_v25 = vunpack.i.l.bf16 %v10714_v49 }
 0x6ab   : > { %4956 = vmatprep.mubr.f32.mxu1 %v8938_v2 }
 0x6ac   : > { %v5447_v34 = vsel %vm1400_vm7, %v8592_v52, %v8606_v38  ;;  %v5451_v47 = vsel %vm1400_vm7, %v8597_v18, %v8616_v25 }
 0x6ad   : > { %v8610_v63 = vpop.permute.xlu0 %8609  ;;  %v8620_v48 = vpop.permute.xlu1 %8619  ;;  %v7906_v42 = vpack.c.bf16 %v5451_v47, %v5447_v34 }
 0x6ae   : > { %v8612_v60 = vunpack.i.h.bf16 %v8610_v63  ;;  %v8611_v20 = vunpack.i.l.bf16 %v8610_v63  ;;  %7506 = vmatmul.mubr.msk.f32.vlgmr.msra.gmra.mrb[6].mxu1 %vm4347_vm13, %v10722_v50  ;;  %v8622_v6 = vunpack.i.h.bf16 %v8620_v48  ;;  %v8621_v13 = vunpack.i.l.bf16 %v8620_v48 }
 0x6af   : > { %7872 = vmatpush1.bf16.msk.msra.mxu1 %vm10581_vm12, %v7870_v11  ;;  %4962 = vmatprep.mubr.f32.mxu1 %v8938_v2  ;;  %v8602_v11 = vunpack.i.h.bf16 %v10695_v32 }
 0x6b0   : > { %v4339_v39 = vsel %vm791_vm1, %v8612_v60, %v8537_v19  ;;  %v4335_v56 = vsel %vm791_vm1, %v8611_v20, %v8536_v21  ;;  %7881 = vmatprep.subr.msk.bf16.mxu1 %vm10581_vm12, %v7879_v24  ;;  %v4338_v22 = vsel %vm791_vm1, %v8622_v6, %v8612_v60  ;;  %v4334_v53 = vsel %vm791_vm1, %v8621_v13, %v8611_v20 }
 0x6b1   : > { %v7825_v23 = vpack.c.bf16 %v4339_v39, %v4335_v56  ;;  %v7828_v41 = vpack.c.bf16 %v4338_v22, %v4334_v53  ;;  %v10752_v19 = vpop.permute.xlu0 %8624  ;;  %v10754_v51 = vpop.permute.xlu1 %8629  ;;  %v7837_v21 = vpack.c.bf16 %v8532_v33, %v8527_v28  ;;  %v7885_v28 = vpack.c.bf16 %v5161_v62, %v5157_v43  ;;  %v7529_v53 = vld [vmem:[%s11356_s27 + $0x48] sm:$0xf] }
 0x6b2   : > { %7507 = vmatmul.mubr.msk.f32.gmra.mrb[8].mxu1 %vm4347_vm13, %v10736_v30  ;;  %v8596_v33 = vunpack.i.l.bf16 %v10689_v29  ;;  %v8601_v24 = vunpack.i.l.bf16 %v10695_v32  ;;  %v5452_v32 = vsel %vm1400_vm7, %v8616_v25, %v8617_v37  ;;  %v8626_v20 = vunpack.i.l.bf16 %v10752_v19  ;;  %v7528_v29 = vld [vmem:[%s11356_s27 + $0x40] sm:$0xff] }
 0x6b3   : > { %7827 = vmatprep.subr.msk.bf16.mxu0 %vm10581_vm12, %v7825_v23  ;;  %5033 = vmatprep.mubr.f32.mxu1 %v8938_v2  ;;  %v8632_v48 = vunpack.i.h.bf16 %v10754_v51  ;;  %v8631_v40 = vunpack.i.l.bf16 %v10754_v51  ;;  %vm6953_vm1 = vcmask 1043456  }
 0x6b4   : > { %7830 = vmatpush1.bf16.msk.msra.mxu0 %vm10581_vm12, %v7828_v41  ;;  %v5450_v8 = vsel %vm1400_vm7, %v8596_v33, %v8597_v18  ;;  %v5449_v35 = vsel %vm1400_vm7, %v8602_v11, %v8596_v33  ;;  %vm11151_vm2 = vmpackc.low %vm6953_vm1, %vm8944_vm11 }
 0x6b5   : > { %7839 = vmatprep.subr.msk.bf16.mxu0 %vm10581_vm12, %v7837_v21  ;;  %v10783_v54 = vpop.permute.xlu0 %8634  ;;  %v10785_v36 = vpop.permute.xlu1 %8639  ;;  %v7897_v27 = vpack.c.bf16 %v5450_v8, %v5446_v46  ;;  %v5742_v13 = vsel %vm5736_vm15, %v8631_v40, %v8632_v48  ;;  %v7541_v46 = vld [vmem:[%s11356_s27 + $0x50] sm:$0xff] }
 0x6b6   : > { %7510 = vmatmul.mubr.msk.f32.vlgmr.msra.gmra.mrb[2].mxu1 %vm4347_vm13, %v10722_v50  ;;  %v8637_v56 = vunpack.i.h.bf16 %v10783_v54  ;;  %v8636_v12 = vunpack.i.l.bf16 %v10783_v54  ;;  %v8642_v41 = vunpack.i.h.bf16 %v10785_v36  ;;  %v8641_v51 = vunpack.i.l.bf16 %v10785_v36 }
 0x6b7   : > { %7884 = vmatpush1.bf16.msk.msra.mxu1 %vm10581_vm12, %v7882_v16  ;;  %7482 = vmatmul.mubr.msk.f32.vlgmr.msra.gmra.mrb[18].mxu0 %vm4347_vm13, %v10604_v58 }
 0x6b8   : > { %7887 = vmatprep.subr.msk.bf16.mxu1 %vm10581_vm12, %v7885_v28  ;;  %7842 = vmatpush3.bf16.msk.msra.mxu0 %vm10581_vm12, %v7837_v21  ;;  %v5741_v21 = vsel %vm5736_vm15, %v8637_v56, %v8631_v40  ;;  %v5740_v43 = vsel %vm5736_vm15, %v8641_v51, %v8642_v41 }
 0x6b9   : > { %7857 = vmatprep.subr.msk.bf16.mxu0 %vm10581_vm12, %v10523_v45  ;;  %5039 = vmatprep.mubr.f32.mxu1 %v8938_v2  ;;  %v10826_v63 = vpop.permute.xlu0 %8644  ;;  %v10828_v59 = vpop.permute.xlu1 %8649 }
 0x6ba   : > { %4435 = vmatprep.mubr.f32.mxu0 %v8938_v2  ;;  %7511 = vmatmul.mubr.msk.f32.gmra.mrb[4].mxu1 %vm4347_vm13, %v10736_v30  ;;  %v8647_v23 = vunpack.i.h.bf16 %v10826_v63  ;;  %v8646_v22 = vunpack.i.l.bf16 %v10826_v63  ;;  %v8651_v55 = vunpack.i.l.bf16 %v10828_v59 }
 0x6bb   : > { %7483 = vmatmul.mubr.msk.f32.gmra.mrb[20].mxu0 %vm4347_vm13, %v10628_v14  ;;  %5247 = vmatprep.mubr.f32.mxu1 %v8938_v2 }
 0x6bc   : > { %7651 = vmatprep.mubr.msk.f32.mxu0 %vm4347_vm13, %v10604_v58  ;;  %v8607_v58 = vunpack.i.h.bf16 %v10704_v3  ;;  %v5744_v62 = vsel %vm5736_vm15, %v8646_v22, %v8647_v23  ;;  %v7927_v54 = vpack.c.bf16 %v8647_v23, %v8642_v41  ;;  %v5743_v8 = vsel %vm5736_vm15, %v8632_v48, %v8646_v22 }
 0x6bd   : > { %v10862_v3 = vpop.permute.xlu0 %8654  ;;  %v10864_v49 = vpop.permute.xlu1 %8659  ;;  %v7921_v28 = vpack.c.bf16 %v5744_v62, %v5740_v43 }
 0x6be   : > { %7519 = vmatmul.mubr.msk.f32.vlgmr.msra.gmra.mrb[6].mxu1 %vm4347_vm13, %v10812_v15  ;;  %v8657_v36 = vunpack.i.h.bf16 %v10862_v3  ;;  %v8656_v52 = vunpack.i.l.bf16 %v10862_v3  ;;  %v7555_v3 = vld [vmem:[%s11356_s27 + $0x68] sm:$0xf] }
 0x6bf   : > { %7890 = vmatpush1.bf16.msk.msra.mxu1 %vm10581_vm12, %v7888_v10  ;;  %7652 = vmatmul.mubr.msk.f32.vlgmr.msra.gmra.mrb[22].mxu0 %vm4347_vm13, %v10628_v14  ;;  %v5445_v14 = vsel %vm1400_vm7, %v8601_v24, %v8591_v4  ;;  %v8652_v4 = vunpack.i.h.bf16 %v10828_v59 }
 0x6c0   : > { %7860 = vmatpush3.bf16.msk.msra.mxu0 %vm10581_vm12, %v10523_v45  ;;  %7899 = vmatprep.subr.msk.bf16.mxu1 %vm10581_vm12, %v7897_v27  ;;  %v5448_v45 = vsel %vm1400_vm7, %v8606_v38, %v8607_v58  ;;  %v7900_v17 = vpack.c.bf16 %v5449_v35, %v5445_v14  ;;  %v8661_v38 = vunpack.i.l.bf16 %v10864_v49 }
 0x6c1   : > { %7875 = vmatprep.subr.msk.bf16.mxu0 %vm10581_vm12, %v7873_v57  ;;  %5253 = vmatprep.mubr.f32.mxu1 %v8938_v2  ;;  %v7903_v60 = vpack.c.bf16 %v5452_v32, %v5448_v45  ;;  %v10891_v61 = vpop.permute.xlu0 %8664  ;;  %v6029_v63 = vsel %vm1558_vm8, %v8651_v55, %v8652_v4 }
 0x6c2   : > { %7520 = vmatmul.mubr.msk.f32.gmra.mrb[8].mxu1 %vm4347_vm13, %v10843_v0  ;;  %7658 = vmatprep.mubr.msk.f32.mxu0 %vm4347_vm13, %v10648_v7  ;;  %v8627_v7 = vunpack.i.h.bf16 %v10752_v19  ;;  %v8667_v44 = vunpack.i.h.bf16 %v10891_v61  ;;  %v6028_v14 = vsel %vm1558_vm8, %v8661_v38, %v8651_v55 }
 0x6c3   : > { %5324 = vmatprep.mubr.f32.mxu1 %v8938_v2 }
 0x6c4   : > { %v5738_v6 = vsel %vm5736_vm15, %v8626_v20, %v8627_v7 }
 0x6c5   : > { %v7915_v39 = vpack.c.bf16 %v5742_v13, %v5738_v6  ;;  %v10919_v1 = vpop.permute.xlu0 %8674 }
 0x6c6   : > { %7523 = vmatmul.mubr.msk.f32.vlgmr.msra.gmra.mrb[2].mxu1 %vm4347_vm13, %v10812_v15  ;;  %v8677_v48 = vunpack.i.h.bf16 %v10919_v1  ;;  %v8676_v40 = vunpack.i.l.bf16 %v10919_v1 }
 0x6c7   : > { %7902 = vmatpush1.bf16.msk.msra.mxu1 %vm10581_vm12, %v7900_v17  ;;  %7659 = vmatmul.mubr.msk.f32.vlgmr.msra.gmra.mrb[22].mxu0 %vm4347_vm13, %v10670_v9  ;;  %v10893_v9 = vpop.permute.xlu1 %8669 }
 0x6c8   : > { %7878 = vmatpush3.bf16.msk.msra.mxu0 %vm10581_vm12, %v7873_v57  ;;  %7905 = vmatprep.subr.msk.bf16.mxu1 %vm10581_vm12, %v7903_v60  ;;  %v8672_v10 = vunpack.i.h.bf16 %v10893_v9  ;;  %v5739_v57 = vsel %vm5736_vm15, %v8627_v7, %v8641_v51  ;;  %v8671_v19 = vunpack.i.l.bf16 %v10893_v9  ;;  %v7554_v9 = vld [vmem:[%s11356_s27 + $0x60] sm:$0xff] }
 0x6c9   : > { %7893 = vmatprep.subr.msk.bf16.mxu0 %vm10581_vm12, %v7891_v31  ;;  %5330 = vmatprep.mubr.f32.mxu1 %v8938_v2  ;;  %v10940_v18 = vpop.permute.xlu0 %8684  ;;  %v7924_v24 = vpack.c.bf16 %v5743_v8, %v5739_v57 }
 0x6ca   : > { %7524 = vmatmul.mubr.msk.f32.gmra.mrb[4].mxu1 %vm4347_vm13, %v10843_v0  ;;  %7665 = vmatprep.mubr.msk.f32.mxu0 %vm4347_vm13, %v10722_v50  ;;  %v7909_v50 = vpack.c.bf16 %v8617_v37, %v8607_v58  ;;  %v8662_v58 = vunpack.i.h.bf16 %v10864_v49  ;;  %v8666_v37 = vunpack.i.l.bf16 %v10891_v61  ;;  %v7945_v25 = vpack.c.bf16 %v8672_v10, %v8667_v44 }
 0x6cb   : > { %5538 = vmatprep.mubr.f32.mxu1 %v8938_v2  ;;  %v10921_v26 = vpop.permute.xlu1 %8679  ;;  %v6035_v17 = vsel %vm1558_vm8, %v8671_v19, %v8672_v10 }
 0x6cc   : > { %v6032_v35 = vsel %vm1558_vm8, %v8662_v58, %v8656_v52  ;;  %v6031_v49 = vsel %vm1558_vm8, %v8666_v37, %v8667_v44  ;;  %v8682_v34 = vunpack.i.h.bf16 %v10921_v26  ;;  %v8681_v47 = vunpack.i.l.bf16 %v10921_v26 }
 0x6cd   : > { %v10975_v27 = vpop.permute.xlu0 %8694  ;;  %v7936_v60 = vpack.c.bf16 %v6032_v35, %v6028_v14  ;;  %v8686_v26 = vunpack.i.l.bf16 %v10940_v18 }
 0x6ce   : > { %7532 = vmatmul.mubr.msk.f32.vlgmr.msra.gmra.mrb[6].mxu1 %vm4347_vm13, %v7528_v29  ;;  %v6324_v56 = vsel %vm4347_vm13, %v8681_v47, %v8682_v34  ;;  %v8696_v41 = vunpack.i.l.bf16 %v10975_v27 }
 0x6cf   : > { %7908 = vmatpush1.bf16.msk.msra.mxu1 %vm10581_vm12, %v7906_v42  ;;  %7666 = vmatmul.mubr.msk.f32.vlgmr.msra.gmra.mrb[22].mxu0 %vm4347_vm13, %v10736_v30  ;;  %v5737_v30 = vsel %vm5736_vm15, %v8636_v12, %v8626_v20  ;;  %v10942_v33 = vpop.permute.xlu1 %8689  ;;  %v7939_v20 = vpack.c.bf16 %v6035_v17, %v6031_v49  ;;  %v6034_v42 = vsel %vm1558_vm8, %v8657_v36, %v8671_v19 }
 0x6d0   : > { %7896 = vmatpush3.bf16.msk.msra.mxu0 %vm10581_vm12, %v7891_v31  ;;  %7917 = vmatprep.subr.msk.bf16.mxu1 %vm10581_vm12, %v7915_v39  ;;  %v7918_v16 = vpack.c.bf16 %v5741_v21, %v5737_v30  ;;  %v8697_v31 = vunpack.i.h.bf16 %v10975_v27  ;;  %v8692_v7 = vunpack.i.h.bf16 %v10942_v33  ;;  %v6320_v39 = vsel %vm4347_vm13, %v8676_v40, %v8677_v48  ;;  %v7567_v30 = vld [vmem:[%s11356_s27 + $0x70] sm:$0xff] }
 0x6d1   : > { %7911 = vmatprep.subr.msk.bf16.mxu0 %vm10581_vm12, %v7909_v50  ;;  %5544 = vmatprep.mubr.f32.mxu1 %v8938_v2  ;;  %v11000_v45 = vpop.permute.xlu0 %8704  ;;  %v7951_v22 = vpack.c.bf16 %v6324_v56, %v6320_v39  ;;  %v8691_v21 = vunpack.i.l.bf16 %v10942_v33  ;;  %v6319_v62 = vsel %vm4347_vm13, %v8686_v26, %v8676_v40 }
 0x6d2   : > { %7533 = vmatmul.mubr.msk.f32.gmra.mrb[8].mxu1 %vm4347_vm13, %v7529_v53  ;;  %7672 = vmatprep.mubr.msk.f32.mxu0 %vm4347_vm13, %v10812_v15  ;;  %v6033_v15 = vsel %vm1558_vm8, %v8656_v52, %v8657_v36  ;;  %v7963_v61 = vpack.c.bf16 %v8697_v31, %v8692_v7  ;;  %v6326_v43 = vsel %vm4347_vm13, %v8696_v41, %v8697_v31  ;;  %v7580_v36 = vld [vmem:[%s11356_s27 + $0x80] sm:$0xff]  ;;  %v8707_v52 = vunpack.i.h.bf16 %v11000_v45 }
 0x6d3   : > { %5615 = vmatprep.mubr.f32.mxu1 %v8938_v2  ;;  %v10977_v11 = vpop.permute.xlu1 %8699  ;;  %v7933_v59 = vpack.c.bf16 %v6033_v15, %v6029_v63  ;;  %v6322_v33 = vsel %vm4347_vm13, %v8691_v21, %v8692_v7  ;;  %v6325_v15 = vsel %vm4347_vm13, %v8682_v34, %v8696_v41  ;;  %v6321_v10 = vsel %vm4347_vm13, %v8677_v48, %v8691_v21 }
 0x6d4   : > { %v8702_v55 = vunpack.i.h.bf16 %v10977_v11  ;;  %v8701_v8 = vunpack.i.l.bf16 %v10977_v11  ;;  %v7960_v57 = vpack.c.bf16 %v6325_v15, %v6321_v10 }
 0x6d5   : > { %v11022_v6 = vpop.permute.xlu0 %8714 }
 0x6d6   : > { %7536 = vmatmul.mubr.msk.f32.vlgmr.msra.gmra.mrb[2].mxu1 %vm4347_vm13, %v7528_v29  ;;  %v8717_v12 = vunpack.i.h.bf16 %v11022_v6  ;;  %v6612_v27 = vsel %vm6610_vm0, %v8701_v8, %v8702_v55 }
 0x6d7   : > { %7920 = vmatpush1.bf16.msk.msra.mxu1 %vm10581_vm12, %v7918_v16  ;;  %7673 = vmatmul.mubr.msk.f32.vlgmr.msra.gmra.mrb[22].mxu0 %vm4347_vm13, %v10843_v0  ;;  %v7542_v0 = vld [vmem:[%s11356_s27 + $0x58] sm:$0xf]  ;;  %v11002_v32 = vpop.permute.xlu1 %8709 }
 0x6d8   : > { %7914 = vmatpush3.bf16.msk.msra.mxu0 %vm10581_vm12, %v7909_v50  ;;  %7923 = vmatprep.subr.msk.bf16.mxu1 %vm10581_vm12, %v7921_v28  ;;  %v7568_v28 = vld [vmem:[%s11356_s27 + $0x78] sm:$0xf]  ;;  %v8711_v63 = vunpack.i.l.bf16 %v11002_v32 }
 0x6d9   : > { %7929 = vmatprep.subr.msk.bf16.mxu0 %vm10581_vm12, %v7927_v54  ;;  %5621 = vmatprep.mubr.f32.mxu1 %v8938_v2 }
 0x6da   : > { %7537 = vmatmul.mubr.msk.f32.gmra.mrb[4].mxu1 %vm4347_vm13, %v7529_v53  ;;  %7679 = vmatprep.mubr.msk.f32.mxu0 %vm4347_vm13, %v7528_v29  ;;  %v6030_v29 = vsel %vm1558_vm8, %v8652_v4, %v8666_v37  ;;  %v8706_v4 = vunpack.i.l.bf16 %v11000_v45  ;;  %v6611_v38 = vsel %vm6610_vm0, %v8711_v63, %v8701_v8 }
 0x6db   : > { %5830 = vmatprep.mubr.f32.mxu1 %v8938_v2  ;;  %v11024_v13 = vpop.permute.xlu1 %8719  ;;  %v7942_v23 = vpack.c.bf16 %v6034_v42, %v6030_v29 }
 0x6dc   : > { %v8722_v50 = vunpack.i.h.bf16 %v11024_v13  ;;  %v6616_v44 = vsel %vm6610_vm0, %v8706_v4, %v8707_v52  ;;  %v8721_v1 = vunpack.i.l.bf16 %v11024_v13 }
 0x6dd   : > { %v7969_v11 = vpack.c.bf16 %v6616_v44, %v6612_v27 }
 0x6de   : > { %7545 = vmatmul.mubr.msk.f32.vlgmr.msra.gmra.mrb[6].mxu1 %vm4347_vm13, %v7541_v46  ;;  %v7981_v51 = vpack.c.bf16 %v8722_v50, %v8717_v12  ;;  %v6617_v14 = vsel %vm6610_vm0, %v8707_v52, %v8721_v1 }
 0x6df   : > { %7926 = vmatpush1.bf16.msk.msra.mxu1 %vm10581_vm12, %v7924_v24  ;;  %7680 = vmatmul.mubr.msk.f32.vlgmr.msra.gmra.mrb[22].mxu0 %vm4347_vm13, %v7529_v53  ;;  %v8687_v53 = vunpack.i.h.bf16 %v10940_v18  ;;  %v8712_v24 = vunpack.i.h.bf16 %v11002_v32 }
 0x6e0   : > { %7932 = vmatpush3.bf16.msk.msra.mxu0 %vm10581_vm12, %v7927_v54  ;;  %7935 = vmatprep.subr.msk.bf16.mxu1 %vm10581_vm12, %v7933_v59  ;;  %v7957_v54 = vpack.c.bf16 %v6326_v43, %v6322_v33  ;;  %v8716_v59 = vunpack.i.l.bf16 %v11022_v6 }
 0x6e1   : > { %7947 = vmatprep.subr.msk.bf16.mxu0 %vm10581_vm12, %v7945_v25  ;;  %5836 = vmatprep.mubr.f32.mxu1 %v8938_v2  ;;  %v6323_v16 = vsel %vm4347_vm13, %v8687_v53, %v8681_v47  ;;  %v6615_v58 = vsel %vm6610_vm0, %v8712_v24, %v8706_v4 }
 0x6e2   : > { %7546 = vmatmul.mubr.msk.f32.gmra.mrb[8].mxu1 %vm4347_vm13, %v7542_v0  ;;  %7686 = vmatprep.mubr.msk.f32.mxu0 %vm4347_vm13, %v7541_v46  ;;  %v7954_v18 = vpack.c.bf16 %v6323_v16, %v6319_v62  ;;  %v6614_v37 = vsel %vm6610_vm0, %v8716_v59, %v8717_v12  ;;  %v7972_v19 = vpack.c.bf16 %v6615_v58, %v6611_v38  ;;  %v6933_v58 = vld [vmem:[%s11359_s18] sm:$0xff] }
 0x6e3   : > { %5907 = vmatprep.mubr.f32.mxu1 %v8938_v2  ;;  %v6613_v35 = vsel %vm6610_vm0, %v8702_v55, %v8716_v59 }
 0x6e4   : > { %v7978_v45 = vpack.c.bf16 %v6617_v14, %v6613_v35  ;;  %v7208_v35 = vld [vmem:[%s11361_s24] sm:$0x1f] }
 0x6e6   : > { %7549 = vmatmul.mubr.msk.f32.vlgmr.msra.gmra.mrb[2].mxu1 %vm4347_vm13, %v7541_v46  ;;  %v7581_v46 = vld [vmem:[%s11356_s27 + $0x88] sm:$0xf]  ;;  %v6884_v7 = vpop.permute.xlu0 %6883 }
 0x6e7   : > { %7938 = vmatpush1.bf16.msk.msra.mxu1 %vm10581_vm12, %v7936_v60  ;;  %7687 = vmatmul.mubr.msk.f32.vlgmr.msra.gmra.mrb[22].mxu0 %vm4347_vm13, %v7542_v0  ;;  %v6889_v60 = vpop.permute.xlu1 %6888 }
 0x6e8   : > { %7941 = vmatprep.subr.msk.bf16.mxu1 %vm10581_vm12, %v7939_v20  ;;  %7950 = vmatpush3.bf16.msk.msra.mxu0 %vm10581_vm12, %v7945_v25  ;;  %v6618_v25 = vsel %vm6610_vm0, %v8721_v1, %v8722_v50 }
 0x6e9   : > { %7965 = vmatprep.subr.msk.bf16.mxu0 %vm10581_vm12, %v7963_v61  ;;  %5913 = vmatprep.mubr.f32.mxu1 %v8938_v2 }
 0x6ea   : > { %7550 = vmatmul.mubr.msk.f32.gmra.mrb[4].mxu1 %vm4347_vm13, %v7542_v0  ;;  %7693 = vmatprep.mubr.msk.f32.mxu0 %vm4347_vm13, %v7554_v9  ;;  %v7975_v0 = vpack.c.bf16 %v6618_v25, %v6614_v37  ;;  %v6906_v47 = vpop.permute.xlu0 %6905 }
 0x6eb   : > { %6121 = vmatprep.mubr.f32.mxu1 %v8938_v2  ;;  %v6911_v40 = vpop.permute.xlu1 %6910 }
 0x6ee   : > { %7558 = vmatmul.mubr.msk.f32.vlgmr.msra.gmra.mrb[6].mxu1 %vm4347_vm13, %v7554_v9 }
 0x6ef   : > { %7944 = vmatpush1.bf16.msk.msra.mxu1 %vm10581_vm12, %v7942_v23  ;;  %7694 = vmatmul.mubr.msk.f32.vlgmr.msra.gmra.mrb[22].mxu0 %vm4347_vm13, %v7555_v3  ;;  %v6940_v14 = vpop.permute.xlu1 %6939 }
 0x6f0   : > { %7953 = vmatprep.subr.msk.bf16.mxu1 %vm10581_vm12, %v7951_v22  ;;  %7968 = vmatpush3.bf16.msk.msra.mxu0 %vm10581_vm12, %v7963_v61 }
 0x6f1   : > { %7983 = vmatprep.subr.msk.bf16.mxu0 %vm10581_vm12, %v7981_v51  ;;  %6127 = vmatprep.mubr.f32.mxu1 %v8938_v2 }
 0x6f2   : > { %7559 = vmatmul.mubr.msk.f32.gmra.mrb[8].mxu1 %vm4347_vm13, %v7555_v3  ;;  %7700 = vmatprep.mubr.msk.f32.mxu0 %vm4347_vm13, %v7567_v30 }
 0x6f3   : > { %6198 = vmatprep.mubr.f32.mxu1 %v8938_v2 }
 0x6f6   : > { %7562 = vmatmul.mubr.msk.f32.vlgmr.msra.gmra.mrb[2].mxu1 %vm4347_vm13, %v7554_v9 }
 0x6f7   : > { %7956 = vmatpush1.bf16.msk.msra.mxu1 %vm10581_vm12, %v7954_v18  ;;  %7701 = vmatmul.mubr.msk.f32.vlgmr.msra.gmra.mrb[22].mxu0 %vm4347_vm13, %v7568_v28 }
 0x6f8   : > { %7959 = vmatprep.subr.msk.bf16.mxu1 %vm10581_vm12, %v7957_v54  ;;  %7986 = vmatpush3.bf16.msk.msra.mxu0 %vm10581_vm12, %v7981_v51 }
 0x6f9   : > { %6204 = vmatprep.mubr.f32.mxu1 %v8938_v2  ;;  %7707 = vmatprep.mubr.msk.f32.mxu0 %vm4347_vm13, %v7580_v36 }
 0x6fa   : > { %7563 = vmatmul.mubr.msk.f32.gmra.mrb[4].mxu1 %vm4347_vm13, %v7555_v3 }
 0x6fb   : > { %6412 = vmatprep.mubr.f32.mxu1 %v8938_v2 }
 0x6fe   : > { %7571 = vmatmul.mubr.msk.f32.vlgmr.msra.gmra.mrb[6].mxu1 %vm4347_vm13, %v7567_v30 }
 0x6ff   : > { %7962 = vmatpush1.bf16.msk.msra.mxu1 %vm10581_vm12, %v7960_v57  ;;  %7708 = vmatmul.mubr.msk.f32.vlgmr.msra.gmra.mrb[22].mxu0 %vm4347_vm13, %v7581_v46 }
 0x700   : > { %7971 = vmatprep.subr.msk.bf16.mxu1 %vm10581_vm12, %v7969_v11  ;;  %6418 = vmatprep.mubr.f32.mxu1 %v8938_v2 }
 0x701   : > { %7033 = vmatprep.mubr.f32.mxu0 %v8938_v2 }
 0x702   : > { %7572 = vmatmul.mubr.msk.f32.gmra.mrb[8].mxu1 %vm4347_vm13, %v7568_v28 }
 0x703   : > { %6489 = vmatprep.mubr.f32.mxu1 %v8938_v2 }
 0x706   : > { %7575 = vmatmul.mubr.msk.f32.vlgmr.msra.gmra.mrb[2].mxu1 %vm4347_vm13, %v7567_v30 }
 0x707   : > { %7974 = vmatpush1.bf16.msk.msra.mxu1 %vm10581_vm12, %v7972_v19  ;;  %6495 = vmatprep.mubr.f32.mxu1 %v8938_v2 }
 0x708   : > { %7977 = vmatprep.subr.msk.bf16.mxu1 %vm10581_vm12, %v7975_v0  ;;  %v6934_v0 = vld [vmem:[%s11360_s20 + $0x8] sm:$0x3] }
 0x70a   : > { %7576 = vmatmul.mubr.msk.f32.gmra.mrb[4].mxu1 %vm4347_vm13, %v7568_v28 }
 0x70b   : > { %6704 = vmatprep.mubr.f32.mxu1 %v8938_v2 }
 0x70e   : > { %7584 = vmatmul.mubr.msk.f32.vlgmr.msra.gmra.mrb[6].mxu1 %vm4347_vm13, %v7580_v36 }
 0x70f   : > { %7980 = vmatpush1.bf16.msk.msra.mxu1 %vm10581_vm12, %v7978_v45  ;;  %6710 = vmatprep.mubr.f32.mxu1 %v8938_v2 }
 0x712   : > { %7585 = vmatmul.mubr.msk.f32.gmra.mrb[8].mxu1 %vm4347_vm13, %v7581_v46 }
 0x713   : > { %6781 = vmatprep.mubr.f32.mxu1 %v8938_v2 }
 0x716   : > { %7588 = vmatmul.mubr.msk.f32.vlgmr.msra.gmra.mrb[2].mxu1 %vm4347_vm13, %v7580_v36 }
 0x717   : > { %6787 = vmatprep.mubr.f32.mxu1 %v8938_v2 }
 0x71a   : > { %7589 = vmatmul.mubr.msk.f32.gmra.mrb[4].mxu1 %vm4347_vm13, %v7581_v46 }
 0x78a   : > { %v4431_v32 = vpop.f32.mrb[18].mxu0 }
 0x78b   : > { %v4433_v49 = vpop.f32.mrb[19].mxu0 }
 0x78e   : > { %v4437_v17 = vpop.f32.mrb[20].mxu0 }
 0x78f   : > { %v4439_v31 = vpop.f32.mrb[21].mxu0 }
 0x7d2   : > { %v7709_v5 = vpop.f32.mrb[22].mxu0 }
 0x7d3   : > { %v6900_v20 = vmul.f32 %v7709_v5, %v6889_v60  ;;  %v6860_v48 = vpop.f32.mrb[23].mxu0 }
 0x7d4   : > { %v6895_v34 = vmul.f32 %v6884_v7, %v6860_v48  ;;  %v6945_v48 = vpop.permute.xlu0 %6944 }
 0x7d5   : > { %v6922_v61 = vadd.f32 %v6911_v40, %v6900_v20 }
 0x7d6   : > { %v6917_v9 = vadd.f32 %v6906_v47, %v6895_v34 }
 0x7d7   : > { %v6932_v6 = vmax.f32 %v6922_v61, 0.0 }
 0x7d8   : > { %v6927_v13 = vmax.f32 %v6917_v9, 0.0 }
 0x7da   : > { %v7999_v29 = vpack.c.bf16 %v6932_v6, %v6927_v13 }
 0x7e1   : > { %v6706_v42 = vpop.f32.mrb[6].mxu1 }
 0x7e2   : > { %v8007_v39 = vadd.f32 %v6706_v42, %v4431_v32  ;;  %v6708_v56 = vpop.f32.mrb[7].mxu1 }
 0x7e3   : > { %v8008_v12 = vadd.f32 %v6708_v56, %v4433_v49  ;;  %v11362_v49 = vld [vmem:[#allocation17_spill] sm:$0xff] }
 0x7e4   : > { %v6891_v50 = vmul.f32 %v8007_v39, %v6884_v7 }
 0x7e5   : > { %v6892_v3 = vmul.f32 %v8008_v12, %v6884_v7  ;;  %v6712_v23 = vpop.f32.mrb[8].mxu1 }
 0x7e6   : > { %v8009_v22 = vadd.f32 %v6712_v23, %v4437_v17  ;;  %v6714_v53 = vpop.f32.mrb[9].mxu1  ;;  %v6913_v41 = vadd.f32 %v6906_v47, %v6891_v50  ;;  %v11363_v17 = vsub.s32 0, %v11362_v49 }
 0x7e7   : > { %v8010_v26 = vadd.f32 %v6714_v53, %v4439_v31  ;;  %v6914_v30 = vadd.f32 %v6906_v47, %v6892_v3  ;;  %v11365_v3 = vsub.s32 2, %v11362_v49 }
 0x7e8   : > { %v6896_v51 = vmul.f32 %v8009_v22, %v6889_v60  ;;  %v6923_v54 = vmax.f32 %v6913_v41, 0.0  ;;  %v7213_v31 = vrot.slane %v7208_v35, %v11363_v17  ;;  %v11366_v41 = vsub.s32 3, %v11362_v49 }
 0x7e9   : > { %v6897_v21 = vmul.f32 %v8010_v26, %v6889_v60  ;;  %v6783_v62 = vpop.f32.mrb[2].mxu1  ;;  %v6924_v52 = vmax.f32 %v6914_v30, 0.0  ;;  %v7221_v23 = vrot.slane %v7208_v35, %v11365_v3 }
 0x7ea   : > { %v6918_v16 = vadd.f32 %v6911_v40, %v6896_v51  ;;  %v6893_v43 = vmul.f32 %v6884_v7, %v6783_v62  ;;  %v6785_v28 = vpop.f32.mrb[3].mxu1  ;;  %v7225_v51 = vrot.slane %v7208_v35, %v11366_v41 }
 0x7eb   : > { %v6919_v18 = vadd.f32 %v6911_v40, %v6897_v21  ;;  %v6894_v33 = vmul.f32 %v6884_v7, %v6785_v28 }
 0x7ec   : > { %v6928_v36 = vmax.f32 %v6918_v16, 0.0  ;;  %v6915_v15 = vadd.f32 %v6906_v47, %v6893_v43 }
 0x7ed   : > { %v6929_v4 = vmax.f32 %v6919_v18, 0.0  ;;  %v6789_v55 = vpop.f32.mrb[4].mxu1  ;;  %v6916_v27 = vadd.f32 %v6906_v47, %v6894_v33 }
 0x7ee   : > { %v7990_v8 = vpack.c.bf16 %v6928_v36, %v6923_v54  ;;  %v6898_v44 = vmul.f32 %v6889_v60, %v6789_v55  ;;  %v6791_v10 = vpop.f32.mrb[5].mxu1  ;;  %v6925_v59 = vmax.f32 %v6915_v15, 0.0 }
 0x7ef   : > { %v7987_v57 = vpack.c.bf16 %v6929_v4, %v6924_v52  ;;  %v6899_v11 = vmul.f32 %v6889_v60, %v6791_v10  ;;  %v6926_v38 = vmax.f32 %v6916_v27, 0.0 }
 0x7f0   : > { %v6920_v24 = vadd.f32 %v6911_v40, %v6898_v44 }
 0x7f1   : > { %v6921_v63 = vadd.f32 %v6911_v40, %v6899_v11  ;;  %7989 = vmatprep.subr.msk.bf16.mxu0 %vm11151_vm2, %v7987_v57  ;;  %v11367_v57 = vsub.s32 4, %v11362_v49 }
 0x7f2   : > { %v6930_v1 = vmax.f32 %v6920_v24, 0.0  ;;  %7992 = vmatpush1.bf16.msk.msra.mxu0 %vm11151_vm2, %v7990_v8 }
 0x7f3   : > { %v6931_v37 = vmax.f32 %v6921_v63, 0.0  ;;  %v7229_v27 = vrot.slane %v7208_v35, %v11367_v57 }
 0x7f4   : > { %v7996_v25 = vpack.c.bf16 %v6930_v1, %v6925_v59 }
 0x7f5   : > { %v7993_v19 = vpack.c.bf16 %v6931_v37, %v6926_v38  ;;  %7595 = vmatmul.mubr.msk.f32.vlgmr.msra.gmra.mrb[24].mxu0 %vm6610_vm0, %v6933_v58 }
 0x7f6   : > { %7039 = vmatprep.mubr.f32.mxu0 %v8938_v2 }
 0x7f7   : > { %7995 = vmatprep.subr.msk.bf16.mxu0 %vm11151_vm2, %v7993_v19 }
 0x7f8   : > { %7998 = vmatpush1.bf16.msk.msra.mxu0 %vm11151_vm2, %v7996_v25 }
 0x7f9   : > { %7596 = vmatmul.mubr.msk.f32.gmra.mrb[26].mxu0 %vm6610_vm0, %v6934_v0  ;;  %8001 = vmatprep.subr.msk.bf16.mxu0 %vm11151_vm2, %v7999_v29 }
 0x7fa   : > { %7110 = vmatprep.mubr.f32.mxu0 %v8938_v2 }
 0x7fd   : > { %7599 = vmatmul.mubr.msk.f32.vlgmr.msra.gmra.mrb[28].mxu0 %vm6610_vm0, %v6933_v58 }
 0x7fe   : > { %8004 = vmatpush3.bf16.msk.msra.mxu0 %vm11151_vm2, %v7999_v29  ;;  %7116 = vmatprep.mubr.f32.mxu0 %v8938_v2  ;;  %v11364_v2 = vsub.s32 1, %v11362_v49 }
 0x800   : > { %v7217_v5 = vrot.slane %v7208_v35, %v11364_v2 }
 0x801   : > { %7600 = vmatmul.mubr.msk.f32.gmra.mrb[30].mxu0 %vm6610_vm0, %v6934_v0 }
 0x802   : > { %7714 = vmatprep.mubr.msk.f32.mxu0 %vm6610_vm0, %v6933_v58 }
 0x805   : > { %7715 = vmatmul.mubr.msk.f32.vlgmr.msra.gmra.mrb[32].mxu0 %vm6610_vm0, %v6934_v0 }
 0x8c8   : > { %v7035_v45 = vpop.f32.mrb[24].mxu0 }
 0x8c9   : > { %v7036_v32 = vadd.f32 %v7035_v45, %v6940_v14  ;;  %v7037_v60 = vpop.f32.mrb[25].mxu0 }
 0x8ca   : > { %v7038_v7 = vadd.f32 %v7037_v60, %v6940_v14 }
 0x8cb   : > { %v7198_v20 = vmax.f32 %v7036_v32, 0.0 }
 0x8cc   : > { %v7199_v40 = vmax.f32 %v7038_v7, 0.0  ;;  %v7041_v34 = vpop.f32.mrb[26].mxu0 }
 0x8cd   : > { %v7235_v47 = vmul.f32 %v7213_v31, %v7198_v20  ;;  %v7042_v61 = vadd.f32 %v7041_v34, %v6945_v48  ;;  %v7043_v9 = vpop.f32.mrb[27].mxu0 }
 0x8ce   : > { %v7236_v6 = vmul.f32 %v7217_v5, %v7199_v40  ;;  %v7044_v13 = vadd.f32 %v7043_v9, %v6945_v48 }
 0x8cf   : > { %v7203_v29 = vmax.f32 %v7042_v61, 0.0 }
 0x8d0   : > { %v7245_v42 = vadd.f32 %v7236_v6, %v7235_v47  ;;  %v7204_v39 = vmax.f32 %v7044_v13, 0.0  ;;  %v7112_v56 = vpop.f32.mrb[28].mxu0 }
 0x8d1   : > { %v7240_v12 = vmul.f32 %v7213_v31, %v7203_v29  ;;  %v7113_v50 = vadd.f32 %v7112_v56, %v6940_v14  ;;  %v7114_v22 = vpop.f32.mrb[29].mxu0 }
 0x8d2   : > { %v7241_v53 = vmul.f32 %v7217_v5, %v7204_v39  ;;  %v7115_v26 = vadd.f32 %v7114_v22, %v6940_v14 }
 0x8d3   : > { %v7253_v30 = vsel %vm7252_vm3, %v7240_v12, 0.0  ;;  %v7200_v21 = vmax.f32 %v7113_v50, 0.0 }
 0x8d4   : > { %v7254_v62 = vsel %vm7252_vm3, %v7241_v53, 0.0  ;;  %v7201_v16 = vmax.f32 %v7115_v26, 0.0  ;;  %v7118_v43 = vpop.f32.mrb[30].mxu0 }
 0x8d5   : > { %v7255_v28 = vadd.f32 %v7254_v62, %v7253_v30  ;;  %v7237_v18 = vmul.f32 %v7221_v23, %v7200_v21  ;;  %v7119_v33 = vadd.f32 %v7118_v43, %v6945_v48  ;;  %v7120_v54 = vpop.f32.mrb[31].mxu0 }
 0x8d6   : > { %v7238_v36 = vmul.f32 %v7225_v51, %v7201_v16  ;;  %v7121_v52 = vadd.f32 %v7120_v54, %v6945_v48 }
 0x8d7   : > { %v7246_v4 = vadd.f32 %v7245_v42, %v7237_v18  ;;  %v7205_v55 = vmax.f32 %v7119_v33, 0.0 }
 0x8d8   : > { %v7206_v8 = vmax.f32 %v7121_v52, 0.0  ;;  %v7716_v15 = vpop.f32.mrb[32].mxu0 }
 0x8d9   : > { %v7247_v44 = vadd.f32 %v7246_v4, %v7238_v36  ;;  %v7242_v10 = vmul.f32 %v7221_v23, %v7205_v55  ;;  %v7195_v46 = vadd.f32 %v7716_v15, %v6945_v48  ;;  %v7189_v11 = vpop.f32.mrb[33].mxu0 }
 0x8da   : > { %v7243_v24 = vmul.f32 %v7225_v51, %v7206_v8  ;;  %v7190_v63 = vadd.f32 %v7189_v11, %v6940_v14 }
 0x8db   : > { %v7256_v59 = vsel %vm7252_vm3, %v7242_v10, 0.0  ;;  %v7207_v1 = vmax.f32 %v7195_v46, 0.0 }
 0x8dc   : > { %v7257_v58 = vadd.f32 %v7256_v59, %v7255_v28  ;;  %v7258_v38 = vsel %vm7252_vm3, %v7243_v24, 0.0  ;;  %v7202_v37 = vmax.f32 %v7190_v63, 0.0 }
 0x8dd   : > { %v7244_v25 = vmul.f32 %v7229_v27, %v7207_v1 }
 0x8de   : > { %v7239_v19 = vmul.f32 %v7229_v27, %v7202_v37  ;;  %v7259_v0 = vadd.f32 %v7258_v38, %v7257_v58 }
 0x8df   : > { %v7261_v45 = vsel %vm7260_vm4, %v7244_v25, 0.0 }
 0x8e0   : > { %v7262_v32 = vadd.f32 %v7261_v45, %v7259_v0  ;;  %v7248_v17 = vsel %vm6610_vm0, %v7239_v19, 0.0 }
 0x8e1   : > { %v7249_v49 = vadd.f32 %v7248_v17, %v7247_v44 }
 0x8e2   : > { %7263 = vadd.xlane.f32.xlu0 %v7262_v32 }
 0x8e3   : > { %7250 = vadd.xlane.f32.xlu1 %v7249_v49 }
 0x96f   : > { %v7264_v35 = vpop.xlane.xlu0 %7263 }
 0x970   : > { %v7265_v14 = vsel %vm7252_vm3, %v7264_v35, -inf  ;;  %v7251_v31 = vpop.xlane.xlu1 %7250 }
 0x971   : > { %v7266_v60 = vmax.f32 %v7251_v31, %v7265_v14 }
 0x973   : > { %v7267_v7 = vrot.slane %v7266_v60, 4 }
 0x975   : > { %v7268_v2 = vmax.f32 %v7266_v60, %v7267_v7 }
 0x977   : > { %v7269_v5 = vrot.slane %v7268_v2, 2 }
 0x979   : > { %v7270_v20 = vmax.f32 %v7268_v2, %v7269_v5 }
 0x97b   : > { %v7271_v48 = vrot.slane %v7270_v20, 1 }
 0x97d   : > { %v7272_v40 = vmax.f32 %v7270_v20, %v7271_v48 }
 0x97f   : > { %v7273_v34 = vsub.f32 %v7251_v31, %v7272_v40  ;;  %v7274_v47 = vsub.f32 %v7264_v35, %v7272_v40 }
 0x981   : > { %v7275_v61 = vmul.f32 1.442695, %v7273_v34  ;;  %v7277_v9 = vmul.f32 1.442695, %v7274_v47 }
 0x983   : > { %8723 = vpow2.f32 %v7275_v61 }
 0x984   : > { %8725 = vpow2.f32 %v7277_v9 }
 0x98d   : > { %v8724_v6 = vpop.eup %8723 }
 0x98e   : > { %v8726_v13 = vpop.eup %8725 }
 0x98f   : > { %v7279_v29 = vsel %vm7252_vm3, %v8726_v13, 0.0 }
 0x990   : > { %v7280_v42 = vadd.f32 %v8724_v6, %v7279_v29 }
 0x992   : > { %v7281_v39 = vrot.slane %v7280_v42, 4 }
 0x994   : > { %v7282_v56 = vadd.f32 %v7281_v39, %v7280_v42 }
 0x996   : > { %v7283_v12 = vrot.slane %v7282_v56, 2 }
 0x998   : > { %v7284_v50 = vadd.f32 %v7283_v12, %v7282_v56 }
 0x99a   : > { %v7285_v3 = vrot.slane %v7284_v50, 1 }
 0x99c   : > { %v7286_v23 = vadd.f32 %v7285_v3, %v7284_v50 }
 0x99e   : > { %8727 = vlog2.f32 %v7286_v23 }
 0x9a8   : > { %v8728_v22 = vpop.eup %8727 }
 0x9a9   : > { %v7288_v53 = vmul.f32 0.6931472, %v8728_v22 }
 0x9ab   : > { %v7289_v26 = vsub.f32 %v7273_v34, %v7288_v53  ;;  %v7290_v41 = vsub.f32 %v7274_v47, %v7288_v53 }
 0x9ad   : > { %7292 = vst.msk [vmem:[%s577_s23] sm:$0xff] %vm7291_vm5, %v7289_v26 }
 0x9ae   : > { %7294 = vst.msk [vmem:[%s577_s23 + $0x8] sm:$0x3] %vm7293_vm6, %v7290_v41 }
 0x9af PF: > { %s11369_s26 = sld [smem:[#allocation16_spill]] }
 0x9b5   : > { %s29_s18 = sadd.s32 1, %s11369_s26  }
 0x9b6   : > { %p26_p9 = scmp.ge.s32.totalorder %s29_s18, 4  }
 0x9b8   :  { %28 = sbr.rel (!%p26_p9) target bundleno = 9 (0x9), region = 159 }
 0x9bf   :  { %7316 = vsyncpa [#allocation3], 1 }
 0x9c0   :  { %7318 = vsyncpa [#allocation3 + $0x1], 1 }
 0x9c1   :  { %7319 = vsyncpa [#allocation5], 1 }
 0x9c2   :  { %7320 = vsyncpa [#allocation8], 1 }
 0x9c3   :  { %7321 = vsyncpa [#allocation11], 1 }

</bundles_post_ra>
